<compile_context>
chip_gen: v6e
topology: v6e:2x2x1
jax: 0.10.0
libtpu: 0.0.40
codegen_flags: <defaults>
</compile_context>

<pallas_src>
import functools

import jax
import jax.numpy as jnp
import numpy as np
from jax.experimental import pallas as pl
from jax.experimental.pallas import tpu as pltpu

LANE = 128
BN = 8  # images per grid step (multiple of 8 keeps all row slices tile-aligned)


# ---------------------------------------------------------------------------
# The fused kernel
# ---------------------------------------------------------------------------
def _lenet_kernel(x_ref, t1_ref, b1_ref, t2_ref, b2_ref,
                  wf1_ref, bf1_ref, wf2_ref, bf2_ref, wf3_ref, bf3_ref,
                  o_ref, *, bn):
    f32, bf16 = jnp.float32, jnp.bfloat16

    # ---- conv1 + ReLU + 2x2 maxpool --------------------------------------
    # Pooled row ph = 2*j + p (p = parity, j = 0..6).  Conv row 2*ph + d reads
    # image row 4*j + s with s = 2*p + d + kh, i.e. mod-4 plane s % 4 at row
    # offset s // 4: a contiguous, aligned slice of x_ref.
    # max-before-(bias+ReLU) pooling is exact (per-channel bias, monotonic ReLU).
    h1_par = []
    for p in range(2):
        zp = None
        for d in range(2):                                    # pool tap over conv rows
            z = None
            for kh in range(5):
                s = 2 * p + d + kh
                xs = x_ref[s % 4, s // 4:s // 4 + 7, :, :]    # (7, bn, 128) bf16
                xs = xs.reshape(7 * bn, LANE)
                zz = jnp.dot(xs, t1_ref[kh], preferred_element_type=f32)
                z = zz if z is None else z + zz
            zd = jnp.maximum(z[:, 0:128], z[:, 128:256])      # pool over width
            zp = zd if zp is None else jnp.maximum(zp, zd)    # pool over rows
        h1_par.append(jnp.maximum(zp + b1_ref[...], 0.0))
    # h1_par[p]: (7*bn, 128) f32, rows (j, n), lanes pw*6 + c (84 valid, rest 0)

    # ---- conv2 + ReLU + 2x2 maxpool --------------------------------------
    z2p = None
    for d in range(2):
        z2 = None
        for kh in range(5):
            s = d + kh                                        # h1 row = 2*ph2 + s
            off = (s // 2) * bn
            hs = h1_par[s % 2][off:off + 5 * bn, :].astype(bf16)   # (5*bn, 128)
            zz = jnp.dot(hs, t2_ref[kh], preferred_element_type=f32)
            z2 = zz if z2 is None else z2 + zz
        zd = jnp.maximum(z2[:, 0:128], z2[:, 128:256])
        z2p = zd if z2p is None else jnp.maximum(z2p, zd)
    h2 = jnp.maximum(z2p + b2_ref[...], 0.0)
    # h2: (5*bn, 128) f32, rows (ph2, n), lanes pw2*16 + c (80 valid, rest 0)

    # ---- fc1 (PyTorch (c, h, w) flatten folded into the wf1 slabs) + ReLU --
    f1 = None
    for h in range(5):
        zz = jnp.dot(h2[h * bn:(h + 1) * bn, :].astype(bf16), wf1_ref[h],
                     preferred_element_type=f32)
        f1 = zz if f1 is None else f1 + zz
    f1 = jnp.maximum(f1 + bf1_ref[...], 0.0)                  # (bn, 128)

    # ---- fc2 + ReLU, fc3 (lane-dense (bn, 128) store, lanes 0..9 valid) ----
    f2 = jnp.maximum(
        jnp.dot(f1.astype(bf16), wf2_ref[...], preferred_element_type=f32)
        + bf2_ref[...], 0.0)
    o_ref[...] = (jnp.dot(f2.astype(bf16), wf3_ref[...],
                          preferred_element_type=f32) + bf3_ref[...])


# ---------------------------------------------------------------------------
# Forward pass (matches torch Net.forward)
# ---------------------------------------------------------------------------
def net_forward(x, packed, *, bn=BN):
    N = x.shape[0]
    n_pad = -(-N // bn) * bn

    # NHWC, flatten (W, C) into the lane dim (w*3 + c) and zero-pad 96 -> 128.
    xf = jnp.transpose(x, (0, 2, 3, 1)).reshape(N, 32, 96)
    xf = jnp.pad(xf, ((0, n_pad - N), (0, 0), (0, LANE - 96)))
    # Split rows by (row mod 4): x4[q, r, n, :] = image row 4*r + q of example n.
    x4 = xf.reshape(n_pad, 8, 4, LANE).transpose(2, 1, 0, 3).astype(jnp.bfloat16)

    kernel = functools.partial(_lenet_kernel, bn=bn)
    out = pl.pallas_call(
        kernel,
        out_shape=jax.ShapeDtypeStruct((n_pad, LANE), jnp.float32),
        grid=(n_pad // bn,),
        in_specs=[
            pl.BlockSpec((4, 8, bn, LANE), lambda i: (0, 0, i, 0)),   # input tile
            pl.BlockSpec((5, LANE, 256), lambda i: (0, 0, 0)),        # t1
            pl.BlockSpec((1, LANE), lambda i: (0, 0)),                # b1
            pl.BlockSpec((5, LANE, 256), lambda i: (0, 0, 0)),        # t2
            pl.BlockSpec((1, LANE), lambda i: (0, 0)),                # b2
            pl.BlockSpec((5, LANE, LANE), lambda i: (0, 0, 0)),       # wf1
            pl.BlockSpec((1, LANE), lambda i: (0, 0)),                # bf1
            pl.BlockSpec((LANE, LANE), lambda i: (0, 0)),             # wf2
            pl.BlockSpec((1, LANE), lambda i: (0, 0)),                # bf2
            pl.BlockSpec((LANE, LANE), lambda i: (0, 0)),             # wf3
            pl.BlockSpec((1, LANE), lambda i: (0, 0)),                # bf3
        ],
        out_specs=pl.BlockSpec((bn, LANE), lambda i: (i, 0)),
        compiler_params=pltpu.CompilerParams(
            dimension_semantics=("parallel",)),
    )(x4, packed["t1"], packed["b1"], packed["t2"], packed["b2"],
      packed["wf1"], packed["bf1"], packed["wf2"], packed["bf2"],
      packed["wf3"], packed["bf3"])
    return out[:N, :10]


# ---------------------------------------------------------------------------
# Parameter init (PyTorch-default-style) and kernel-layout packing
# ---------------------------------------------------------------------------
def init_params(key):
    ks = jax.random.split(key, 10)

    def u(k, shape, fan_in):
        bound = 1.0 / np.sqrt(fan_in)
        return jax.random.uniform(k, shape, jnp.float32, -bound, bound)

    return {
        "conv1_w": u(ks[0], (6, 3, 5, 5), 75), "conv1_b": u(ks[1], (6,), 75),
        "conv2_w": u(ks[2], (16, 6, 5, 5), 150), "conv2_b": u(ks[3], (16,), 150),
        "fc1_w": u(ks[4], (120, 400), 400), "fc1_b": u(ks[5], (120,), 400),
        "fc2_w": u(ks[6], (84, 120), 120), "fc2_b": u(ks[7], (84,), 120),
        "fc3_w": u(ks[8], (10, 84), 84), "fc3_b": u(ks[9], (10,), 84),
    }


def pack_params(p):
    w1 = np.asarray(p["conv1_w"]); b1 = np.asarray(p["conv1_b"])
    w2 = np.asarray(p["conv2_w"]); b2 = np.asarray(p["conv2_b"])
    fw1 = np.asarray(p["fc1_w"]); fb1 = np.asarray(p["fc1_b"])
    fw2 = np.asarray(p["fc2_w"]); fb2 = np.asarray(p["fc2_b"])
    fw3 = np.asarray(p["fc3_w"]); fb3 = np.asarray(p["fc3_b"])

    # conv1 block-Toeplitz slabs: t1[kh][w*3+ci, e*128 + pw*6 + co]
    #   = w1[co, ci, kh, w - (2*pw + e)]  (zero outside the 5-tap window)
    t1 = np.zeros((5, LANE, 256), np.float32)
    for kh in range(5):
        for e in range(2):
            for pw in range(14):
                for kw in range(5):
                    w_in = 2 * pw + e + kw
                    t1[kh, w_in * 3:w_in * 3 + 3,
                       e * 128 + pw * 6:e * 128 + pw * 6 + 6] = w1[:, :, kh, kw].T

    # conv2 block-Toeplitz slabs: t2[kh][pw*6+ci, e*128 + pw2*16 + co]
    t2 = np.zeros((5, LANE, 256), np.float32)
    for kh in range(5):
        for e in range(2):
            for pw2 in range(5):
                for kw in range(5):
                    w_in = 2 * pw2 + e + kw
                    t2[kh, w_in * 6:w_in * 6 + 6,
                       e * 128 + pw2 * 16:e * 128 + pw2 * 16 + 16] = w2[:, :, kh, kw].T

    # fc1 with PyTorch's (c, h, w) flatten folded in: one slab per spatial row h,
    #   wf1[h][w*16 + c, o] = fc1_w[o, c*25 + h*5 + w]
    wf1 = np.zeros((5, LANE, LANE), np.float32)
    for h in range(5):
        for w in range(5):
            for c in range(16):
                wf1[h, w * 16 + c, :120] = fw1[:, c * 25 + h * 5 + w]

    wf2 = np.zeros((LANE, LANE), np.float32); wf2[:120, :84] = fw2.T
    wf3 = np.zeros((LANE, LANE), np.float32); wf3[:84, :10] = fw3.T

    def lane_pad(v):
        out = np.zeros((1, LANE), np.float32)
        out[0, :v.shape[0]] = v
        return jnp.asarray(out)

    bf16 = jnp.bfloat16
    return {
        "t1": jnp.asarray(t1, bf16), "b1": lane_pad(np.tile(b1, 14)),
        "t2": jnp.asarray(t2, bf16), "b2": lane_pad(np.tile(b2, 5)),
        "wf1": jnp.asarray(wf1, bf16), "bf1": lane_pad(fb1),
        "wf2": jnp.asarray(wf2, bf16), "bf2": lane_pad(fb2),
        "wf3": jnp.asarray(wf3, bf16), "bf3": lane_pad(fb3),
    }


# ---------------------------------------------------------------------------
# Pure-JAX f32 reference (correctness validation)
# ---------------------------------------------------------------------------
def reference_forward(x, p):
    def conv(x, w, b):
        y = jax.lax.conv_general_dilated(
            x, w, window_strides=(1, 1), padding="VALID",
            dimension_numbers=("NCHW", "OIHW", "NCHW"))
        return y + b.reshape(1, -1, 1, 1)

    def pool(x):
        return jax.lax.reduce_window(x, -jnp.inf, jax.lax.max,
                                     (1, 1, 2, 2), (1, 1, 2, 2), "VALID")

    h = pool(jax.nn.relu(conv(x, p["conv1_w"], p["conv1_b"])))
    h = pool(jax.nn.relu(conv(h, p["conv2_w"], p["conv2_b"])))
    h = h.reshape(h.shape[0], -1)
    h = jax.nn.relu(h @ p["fc1_w"].T + p["fc1_b"])
    h = jax.nn.relu(h @ p["fc2_w"].T + p["fc2_b"])
    return h @ p["fc3_w"].T + p["fc3_b"]


if __name__ == "__main__":
    key = jax.random.PRNGKey(0)
    k_param, k_x = jax.random.split(key)
    params = init_params(k_param)
    packed = pack_params(params)

    # Net.forward implies CIFAR-sized input: (N, 3, 32, 32).  N=10 exercises
    # both the batch-tiled grid (2 steps of bn=8) and the pad-to-tile path.
    x = jax.random.normal(k_x, (10, 3, 32, 32), dtype=jnp.float32)

    fwd = jax.jit(lambda xx: net_forward(xx, packed))
    out = jax.block_until_ready(fwd(x))                       # (10, 10)

    ref = jax.block_until_ready(reference_forward(x, params))
    assert out.shape == (10, 10)
    # bf16 GEMM operands with f32 accumulation vs. an all-f32 reference:
    # observed error is ~5e-3 rms on O(0.3) logits, so 5e-2 is a safe bound
    # that still catches any real indexing/weight-packing bug (O(1) errors).
    np.testing.assert_allclose(np.asarray(out), np.asarray(ref),
                               rtol=5e-2, atol=5e-2)

    print("KERNEL_OK")
</pallas_src>

<mosaic_0001>
module attributes {stable_mosaic.version = 11 : i64} {
  func.func @_lenet_kernel(%arg0: i32, %arg1: memref<4x8x8x128xbf16, #tpu.memory_space<vmem>>, %arg2: memref<5x128x256xbf16, #tpu.memory_space<vmem>>, %arg3: memref<1x128xf32, #tpu.memory_space<vmem>>, %arg4: memref<5x128x256xbf16, #tpu.memory_space<vmem>>, %arg5: memref<1x128xf32, #tpu.memory_space<vmem>>, %arg6: memref<5x128x128xbf16, #tpu.memory_space<vmem>>, %arg7: memref<1x128xf32, #tpu.memory_space<vmem>>, %arg8: memref<128x128xbf16, #tpu.memory_space<vmem>>, %arg9: memref<1x128xf32, #tpu.memory_space<vmem>>, %arg10: memref<128x128xbf16, #tpu.memory_space<vmem>>, %arg11: memref<1x128xf32, #tpu.memory_space<vmem>>, %arg12: memref<8x128xf32, #tpu.memory_space<vmem>>) attributes {dimension_semantics = [#tpu.dimension_semantics<parallel>], iteration_bounds = array<i64: 2>, scalar_prefetch = 0 : i64, scratch_operands = 0 : i64, tpu.core_type = #tpu.core_type<tc>, window_params = [{transform_indices = @transform_0, window_bounds = array<i64: 4, 8, 8, 128>}, {pipeline_mode = #tpu.pipeline_mode<synchronous>, transform_indices = @transform_1, window_bounds = array<i64: 5, 128, 256>}, {pipeline_mode = #tpu.pipeline_mode<synchronous>, transform_indices = @transform_2, window_bounds = array<i64: 1, 128>}, {pipeline_mode = #tpu.pipeline_mode<synchronous>, transform_indices = @transform_3, window_bounds = array<i64: 5, 128, 256>}, {pipeline_mode = #tpu.pipeline_mode<synchronous>, transform_indices = @transform_4, window_bounds = array<i64: 1, 128>}, {pipeline_mode = #tpu.pipeline_mode<synchronous>, transform_indices = @transform_5, window_bounds = array<i64: 5, 128, 128>}, {pipeline_mode = #tpu.pipeline_mode<synchronous>, transform_indices = @transform_6, window_bounds = array<i64: 1, 128>}, {pipeline_mode = #tpu.pipeline_mode<synchronous>, transform_indices = @transform_7, window_bounds = array<i64: 128, 128>}, {pipeline_mode = #tpu.pipeline_mode<synchronous>, transform_indices = @transform_8, window_bounds = array<i64: 1, 128>}, {pipeline_mode = #tpu.pipeline_mode<synchronous>, transform_indices = @transform_9, window_bounds = array<i64: 128, 128>}, {pipeline_mode = #tpu.pipeline_mode<synchronous>, transform_indices = @transform_10, window_bounds = array<i64: 1, 128>}, {transform_indices = @transform_11, window_bounds = array<i64: 8, 128>}]} {
    %c0 = arith.constant 0 : index
    %c0_0 = arith.constant 0 : index
    %c0_1 = arith.constant 0 : index
    %c0_2 = arith.constant 0 : index
    %0 = vector.load %arg1[%c0, %c0_0, %c0_1, %c0_2] : memref<4x8x8x128xbf16, #tpu.memory_space<vmem>>, vector<1x7x8x128xbf16>
    %1 = vector.shape_cast %0 : vector<1x7x8x128xbf16> to vector<7x8x128xbf16>
    %2 = vector.shape_cast %1 : vector<7x8x128xbf16> to vector<56x128xbf16>
    %c0_3 = arith.constant 0 : index
    %c0_4 = arith.constant 0 : index
    %c0_5 = arith.constant 0 : index
    %3 = vector.load %arg2[%c0_3, %c0_4, %c0_5] : memref<5x128x256xbf16, #tpu.memory_space<vmem>>, vector<1x128x256xbf16>
    %4 = vector.shape_cast %3 : vector<1x128x256xbf16> to vector<128x256xbf16>
    %cst = arith.constant dense<0.000000e+00> : vector<56x256xf32>
    %5 = tpu.matmul %2, %4, %cst {dimension_numbers = #tpu.dot_dimension_numbers<[1], [0], [0], [1], [0, 0, 1, 1], [], []>} : vector<56x128xbf16>, vector<128x256xbf16>, vector<56x256xf32> -> vector<56x256xf32>
    %c1 = arith.constant 1 : index
    %c0_6 = arith.constant 0 : index
    %c0_7 = arith.constant 0 : index
    %c0_8 = arith.constant 0 : index
    %6 = vector.load %arg1[%c1, %c0_6, %c0_7, %c0_8] : memref<4x8x8x128xbf16, #tpu.memory_space<vmem>>, vector<1x7x8x128xbf16>
    %7 = vector.shape_cast %6 : vector<1x7x8x128xbf16> to vector<7x8x128xbf16>
    %8 = vector.shape_cast %7 : vector<7x8x128xbf16> to vector<56x128xbf16>
    %c1_9 = arith.constant 1 : index
    %c0_10 = arith.constant 0 : index
    %c0_11 = arith.constant 0 : index
    %9 = vector.load %arg2[%c1_9, %c0_10, %c0_11] : memref<5x128x256xbf16, #tpu.memory_space<vmem>>, vector<1x128x256xbf16>
    %10 = vector.shape_cast %9 : vector<1x128x256xbf16> to vector<128x256xbf16>
    %cst_12 = arith.constant dense<0.000000e+00> : vector<56x256xf32>
    %11 = tpu.matmul %8, %10, %cst_12 {dimension_numbers = #tpu.dot_dimension_numbers<[1], [0], [0], [1], [0, 0, 1, 1], [], []>} : vector<56x128xbf16>, vector<128x256xbf16>, vector<56x256xf32> -> vector<56x256xf32>
    %12 = arith.addf %5, %11 : vector<56x256xf32>
    %c2 = arith.constant 2 : index
    %c0_13 = arith.constant 0 : index
    %c0_14 = arith.constant 0 : index
    %c0_15 = arith.constant 0 : index
    %13 = vector.load %arg1[%c2, %c0_13, %c0_14, %c0_15] : memref<4x8x8x128xbf16, #tpu.memory_space<vmem>>, vector<1x7x8x128xbf16>
    %14 = vector.shape_cast %13 : vector<1x7x8x128xbf16> to vector<7x8x128xbf16>
    %15 = vector.shape_cast %14 : vector<7x8x128xbf16> to vector<56x128xbf16>
    %c2_16 = arith.constant 2 : index
    %c0_17 = arith.constant 0 : index
    %c0_18 = arith.constant 0 : index
    %16 = vector.load %arg2[%c2_16, %c0_17, %c0_18] : memref<5x128x256xbf16, #tpu.memory_space<vmem>>, vector<1x128x256xbf16>
    %17 = vector.shape_cast %16 : vector<1x128x256xbf16> to vector<128x256xbf16>
    %cst_19 = arith.constant dense<0.000000e+00> : vector<56x256xf32>
    %18 = tpu.matmul %15, %17, %cst_19 {dimension_numbers = #tpu.dot_dimension_numbers<[1], [0], [0], [1], [0, 0, 1, 1], [], []>} : vector<56x128xbf16>, vector<128x256xbf16>, vector<56x256xf32> -> vector<56x256xf32>
    %19 = arith.addf %12, %18 : vector<56x256xf32>
    %c3 = arith.constant 3 : index
    %c0_20 = arith.constant 0 : index
    %c0_21 = arith.constant 0 : index
    %c0_22 = arith.constant 0 : index
    %20 = vector.load %arg1[%c3, %c0_20, %c0_21, %c0_22] : memref<4x8x8x128xbf16, #tpu.memory_space<vmem>>, vector<1x7x8x128xbf16>
    %21 = vector.shape_cast %20 : vector<1x7x8x128xbf16> to vector<7x8x128xbf16>
    %22 = vector.shape_cast %21 : vector<7x8x128xbf16> to vector<56x128xbf16>
    %c3_23 = arith.constant 3 : index
    %c0_24 = arith.constant 0 : index
    %c0_25 = arith.constant 0 : index
    %23 = vector.load %arg2[%c3_23, %c0_24, %c0_25] : memref<5x128x256xbf16, #tpu.memory_space<vmem>>, vector<1x128x256xbf16>
    %24 = vector.shape_cast %23 : vector<1x128x256xbf16> to vector<128x256xbf16>
    %cst_26 = arith.constant dense<0.000000e+00> : vector<56x256xf32>
    %25 = tpu.matmul %22, %24, %cst_26 {dimension_numbers = #tpu.dot_dimension_numbers<[1], [0], [0], [1], [0, 0, 1, 1], [], []>} : vector<56x128xbf16>, vector<128x256xbf16>, vector<56x256xf32> -> vector<56x256xf32>
    %26 = arith.addf %19, %25 : vector<56x256xf32>
    %c0_27 = arith.constant 0 : index
    %c1_28 = arith.constant 1 : index
    %c0_29 = arith.constant 0 : index
    %c0_30 = arith.constant 0 : index
    %27 = vector.load %arg1[%c0_27, %c1_28, %c0_29, %c0_30] : memref<4x8x8x128xbf16, #tpu.memory_space<vmem>>, vector<1x7x8x128xbf16>
    %28 = vector.shape_cast %27 : vector<1x7x8x128xbf16> to vector<7x8x128xbf16>
    %29 = vector.shape_cast %28 : vector<7x8x128xbf16> to vector<56x128xbf16>
    %c4 = arith.constant 4 : index
    %c0_31 = arith.constant 0 : index
    %c0_32 = arith.constant 0 : index
    %30 = vector.load %arg2[%c4, %c0_31, %c0_32] : memref<5x128x256xbf16, #tpu.memory_space<vmem>>, vector<1x128x256xbf16>
    %31 = vector.shape_cast %30 : vector<1x128x256xbf16> to vector<128x256xbf16>
    %cst_33 = arith.constant dense<0.000000e+00> : vector<56x256xf32>
    %32 = tpu.matmul %29, %31, %cst_33 {dimension_numbers = #tpu.dot_dimension_numbers<[1], [0], [0], [1], [0, 0, 1, 1], [], []>} : vector<56x128xbf16>, vector<128x256xbf16>, vector<56x256xf32> -> vector<56x256xf32>
    %33 = arith.addf %26, %32 : vector<56x256xf32>
    %34 = vector.extract_strided_slice %33 {offsets = [0, 0], sizes = [56, 128], strides = [1, 1]} : vector<56x256xf32> to vector<56x128xf32>
    %35 = vector.extract_strided_slice %33 {offsets = [0, 128], sizes = [56, 128], strides = [1, 1]} : vector<56x256xf32> to vector<56x128xf32>
    %36 = arith.maximumf %34, %35 : vector<56x128xf32>
    %c1_34 = arith.constant 1 : index
    %c0_35 = arith.constant 0 : index
    %c0_36 = arith.constant 0 : index
    %c0_37 = arith.constant 0 : index
    %37 = vector.load %arg1[%c1_34, %c0_35, %c0_36, %c0_37] : memref<4x8x8x128xbf16, #tpu.memory_space<vmem>>, vector<1x7x8x128xbf16>
    %38 = vector.shape_cast %37 : vector<1x7x8x128xbf16> to vector<7x8x128xbf16>
    %39 = vector.shape_cast %38 : vector<7x8x128xbf16> to vector<56x128xbf16>
    %c0_38 = arith.constant 0 : index
    %c0_39 = arith.constant 0 : index
    %c0_40 = arith.constant 0 : index
    %40 = vector.load %arg2[%c0_38, %c0_39, %c0_40] : memref<5x128x256xbf16, #tpu.memory_space<vmem>>, vector<1x128x256xbf16>
    %41 = vector.shape_cast %40 : vector<1x128x256xbf16> to vector<128x256xbf16>
    %cst_41 = arith.constant dense<0.000000e+00> : vector<56x256xf32>
    %42 = tpu.matmul %39, %41, %cst_41 {dimension_numbers = #tpu.dot_dimension_numbers<[1], [0], [0], [1], [0, 0, 1, 1], [], []>} : vector<56x128xbf16>, vector<128x256xbf16>, vector<56x256xf32> -> vector<56x256xf32>
    %c2_42 = arith.constant 2 : index
    %c0_43 = arith.constant 0 : index
    %c0_44 = arith.constant 0 : index
    %c0_45 = arith.constant 0 : index
    %43 = vector.load %arg1[%c2_42, %c0_43, %c0_44, %c0_45] : memref<4x8x8x128xbf16, #tpu.memory_space<vmem>>, vector<1x7x8x128xbf16>
    %44 = vector.shape_cast %43 : vector<1x7x8x128xbf16> to vector<7x8x128xbf16>
    %45 = vector.shape_cast %44 : vector<7x8x128xbf16> to vector<56x128xbf16>
    %c1_46 = arith.constant 1 : index
    %c0_47 = arith.constant 0 : index
    %c0_48 = arith.constant 0 : index
    %46 = vector.load %arg2[%c1_46, %c0_47, %c0_48] : memref<5x128x256xbf16, #tpu.memory_space<vmem>>, vector<1x128x256xbf16>
    %47 = vector.shape_cast %46 : vector<1x128x256xbf16> to vector<128x256xbf16>
    %cst_49 = arith.constant dense<0.000000e+00> : vector<56x256xf32>
    %48 = tpu.matmul %45, %47, %cst_49 {dimension_numbers = #tpu.dot_dimension_numbers<[1], [0], [0], [1], [0, 0, 1, 1], [], []>} : vector<56x128xbf16>, vector<128x256xbf16>, vector<56x256xf32> -> vector<56x256xf32>
    %49 = arith.addf %42, %48 : vector<56x256xf32>
    %c3_50 = arith.constant 3 : index
    %c0_51 = arith.constant 0 : index
    %c0_52 = arith.constant 0 : index
    %c0_53 = arith.constant 0 : index
    %50 = vector.load %arg1[%c3_50, %c0_51, %c0_52, %c0_53] : memref<4x8x8x128xbf16, #tpu.memory_space<vmem>>, vector<1x7x8x128xbf16>
    %51 = vector.shape_cast %50 : vector<1x7x8x128xbf16> to vector<7x8x128xbf16>
    %52 = vector.shape_cast %51 : vector<7x8x128xbf16> to vector<56x128xbf16>
    %c2_54 = arith.constant 2 : index
    %c0_55 = arith.constant 0 : index
    %c0_56 = arith.constant 0 : index
    %53 = vector.load %arg2[%c2_54, %c0_55, %c0_56] : memref<5x128x256xbf16, #tpu.memory_space<vmem>>, vector<1x128x256xbf16>
    %54 = vector.shape_cast %53 : vector<1x128x256xbf16> to vector<128x256xbf16>
    %cst_57 = arith.constant dense<0.000000e+00> : vector<56x256xf32>
    %55 = tpu.matmul %52, %54, %cst_57 {dimension_numbers = #tpu.dot_dimension_numbers<[1], [0], [0], [1], [0, 0, 1, 1], [], []>} : vector<56x128xbf16>, vector<128x256xbf16>, vector<56x256xf32> -> vector<56x256xf32>
    %56 = arith.addf %49, %55 : vector<56x256xf32>
    %c0_58 = arith.constant 0 : index
    %c1_59 = arith.constant 1 : index
    %c0_60 = arith.constant 0 : index
    %c0_61 = arith.constant 0 : index
    %57 = vector.load %arg1[%c0_58, %c1_59, %c0_60, %c0_61] : memref<4x8x8x128xbf16, #tpu.memory_space<vmem>>, vector<1x7x8x128xbf16>
    %58 = vector.shape_cast %57 : vector<1x7x8x128xbf16> to vector<7x8x128xbf16>
    %59 = vector.shape_cast %58 : vector<7x8x128xbf16> to vector<56x128xbf16>
    %c3_62 = arith.constant 3 : index
    %c0_63 = arith.constant 0 : index
    %c0_64 = arith.constant 0 : index
    %60 = vector.load %arg2[%c3_62, %c0_63, %c0_64] : memref<5x128x256xbf16, #tpu.memory_space<vmem>>, vector<1x128x256xbf16>
    %61 = vector.shape_cast %60 : vector<1x128x256xbf16> to vector<128x256xbf16>
    %cst_65 = arith.constant dense<0.000000e+00> : vector<56x256xf32>
    %62 = tpu.matmul %59, %61, %cst_65 {dimension_numbers = #tpu.dot_dimension_numbers<[1], [0], [0], [1], [0, 0, 1, 1], [], []>} : vector<56x128xbf16>, vector<128x256xbf16>, vector<56x256xf32> -> vector<56x256xf32>
    %63 = arith.addf %56, %62 : vector<56x256xf32>
    %c1_66 = arith.constant 1 : index
    %c1_67 = arith.constant 1 : index
    %c0_68 = arith.constant 0 : index
    %c0_69 = arith.constant 0 : index
    %64 = vector.load %arg1[%c1_66, %c1_67, %c0_68, %c0_69] : memref<4x8x8x128xbf16, #tpu.memory_space<vmem>>, vector<1x7x8x128xbf16>
    %65 = vector.shape_cast %64 : vector<1x7x8x128xbf16> to vector<7x8x128xbf16>
    %66 = vector.shape_cast %65 : vector<7x8x128xbf16> to vector<56x128xbf16>
    %c4_70 = arith.constant 4 : index
    %c0_71 = arith.constant 0 : index
    %c0_72 = arith.constant 0 : index
    %67 = vector.load %arg2[%c4_70, %c0_71, %c0_72] : memref<5x128x256xbf16, #tpu.memory_space<vmem>>, vector<1x128x256xbf16>
    %68 = vector.shape_cast %67 : vector<1x128x256xbf16> to vector<128x256xbf16>
    %cst_73 = arith.constant dense<0.000000e+00> : vector<56x256xf32>
    %69 = tpu.matmul %66, %68, %cst_73 {dimension_numbers = #tpu.dot_dimension_numbers<[1], [0], [0], [1], [0, 0, 1, 1], [], []>} : vector<56x128xbf16>, vector<128x256xbf16>, vector<56x256xf32> -> vector<56x256xf32>
    %70 = arith.addf %63, %69 : vector<56x256xf32>
    %71 = vector.extract_strided_slice %70 {offsets = [0, 0], sizes = [56, 128], strides = [1, 1]} : vector<56x256xf32> to vector<56x128xf32>
    %72 = vector.extract_strided_slice %70 {offsets = [0, 128], sizes = [56, 128], strides = [1, 1]} : vector<56x256xf32> to vector<56x128xf32>
    %73 = arith.maximumf %71, %72 : vector<56x128xf32>
    %74 = arith.maximumf %36, %73 : vector<56x128xf32>
    %c0_74 = arith.constant 0 : index
    %c0_75 = arith.constant 0 : index
    %75 = vector.load %arg3[%c0_74, %c0_75] : memref<1x128xf32, #tpu.memory_space<vmem>>, vector<1x128xf32>
    %76 = vector.broadcast %75 : vector<1x128xf32> to vector<56x128xf32>
    %77 = arith.addf %74, %76 : vector<56x128xf32>
    %cst_76 = arith.constant 0.000000e+00 : f32
    %78 = vector.broadcast %cst_76 : f32 to vector<56x128xf32>
    %79 = arith.maximumf %77, %78 : vector<56x128xf32>
    %c2_77 = arith.constant 2 : index
    %c0_78 = arith.constant 0 : index
    %c0_79 = arith.constant 0 : index
    %c0_80 = arith.constant 0 : index
    %80 = vector.load %arg1[%c2_77, %c0_78, %c0_79, %c0_80] : memref<4x8x8x128xbf16, #tpu.memory_space<vmem>>, vector<1x7x8x128xbf16>
    %81 = vector.shape_cast %80 : vector<1x7x8x128xbf16> to vector<7x8x128xbf16>
    %82 = vector.shape_cast %81 : vector<7x8x128xbf16> to vector<56x128xbf16>
    %c0_81 = arith.constant 0 : index
    %c0_82 = arith.constant 0 : index
    %c0_83 = arith.constant 0 : index
    %83 = vector.load %arg2[%c0_81, %c0_82, %c0_83] : memref<5x128x256xbf16, #tpu.memory_space<vmem>>, vector<1x128x256xbf16>
    %84 = vector.shape_cast %83 : vector<1x128x256xbf16> to vector<128x256xbf16>
    %cst_84 = arith.constant dense<0.000000e+00> : vector<56x256xf32>
    %85 = tpu.matmul %82, %84, %cst_84 {dimension_numbers = #tpu.dot_dimension_numbers<[1], [0], [0], [1], [0, 0, 1, 1], [], []>} : vector<56x128xbf16>, vector<128x256xbf16>, vector<56x256xf32> -> vector<56x256xf32>
    %c3_85 = arith.constant 3 : index
    %c0_86 = arith.constant 0 : index
    %c0_87 = arith.constant 0 : index
    %c0_88 = arith.constant 0 : index
    %86 = vector.load %arg1[%c3_85, %c0_86, %c0_87, %c0_88] : memref<4x8x8x128xbf16, #tpu.memory_space<vmem>>, vector<1x7x8x128xbf16>
    %87 = vector.shape_cast %86 : vector<1x7x8x128xbf16> to vector<7x8x128xbf16>
    %88 = vector.shape_cast %87 : vector<7x8x128xbf16> to vector<56x128xbf16>
    %c1_89 = arith.constant 1 : index
    %c0_90 = arith.constant 0 : index
    %c0_91 = arith.constant 0 : index
    %89 = vector.load %arg2[%c1_89, %c0_90, %c0_91] : memref<5x128x256xbf16, #tpu.memory_space<vmem>>, vector<1x128x256xbf16>
    %90 = vector.shape_cast %89 : vector<1x128x256xbf16> to vector<128x256xbf16>
    %cst_92 = arith.constant dense<0.000000e+00> : vector<56x256xf32>
    %91 = tpu.matmul %88, %90, %cst_92 {dimension_numbers = #tpu.dot_dimension_numbers<[1], [0], [0], [1], [0, 0, 1, 1], [], []>} : vector<56x128xbf16>, vector<128x256xbf16>, vector<56x256xf32> -> vector<56x256xf32>
    %92 = arith.addf %85, %91 : vector<56x256xf32>
    %c0_93 = arith.constant 0 : index
    %c1_94 = arith.constant 1 : index
    %c0_95 = arith.constant 0 : index
    %c0_96 = arith.constant 0 : index
    %93 = vector.load %arg1[%c0_93, %c1_94, %c0_95, %c0_96] : memref<4x8x8x128xbf16, #tpu.memory_space<vmem>>, vector<1x7x8x128xbf16>
    %94 = vector.shape_cast %93 : vector<1x7x8x128xbf16> to vector<7x8x128xbf16>
    %95 = vector.shape_cast %94 : vector<7x8x128xbf16> to vector<56x128xbf16>
    %c2_97 = arith.constant 2 : index
    %c0_98 = arith.constant 0 : index
    %c0_99 = arith.constant 0 : index
    %96 = vector.load %arg2[%c2_97, %c0_98, %c0_99] : memref<5x128x256xbf16, #tpu.memory_space<vmem>>, vector<1x128x256xbf16>
    %97 = vector.shape_cast %96 : vector<1x128x256xbf16> to vector<128x256xbf16>
    %cst_100 = arith.constant dense<0.000000e+00> : vector<56x256xf32>
    %98 = tpu.matmul %95, %97, %cst_100 {dimension_numbers = #tpu.dot_dimension_numbers<[1], [0], [0], [1], [0, 0, 1, 1], [], []>} : vector<56x128xbf16>, vector<128x256xbf16>, vector<56x256xf32> -> vector<56x256xf32>
    %99 = arith.addf %92, %98 : vector<56x256xf32>
    %c1_101 = arith.constant 1 : index
    %c1_102 = arith.constant 1 : index
    %c0_103 = arith.constant 0 : index
    %c0_104 = arith.constant 0 : index
    %100 = vector.load %arg1[%c1_101, %c1_102, %c0_103, %c0_104] : memref<4x8x8x128xbf16, #tpu.memory_space<vmem>>, vector<1x7x8x128xbf16>
    %101 = vector.shape_cast %100 : vector<1x7x8x128xbf16> to vector<7x8x128xbf16>
    %102 = vector.shape_cast %101 : vector<7x8x128xbf16> to vector<56x128xbf16>
    %c3_105 = arith.constant 3 : index
    %c0_106 = arith.constant 0 : index
    %c0_107 = arith.constant 0 : index
    %103 = vector.load %arg2[%c3_105, %c0_106, %c0_107] : memref<5x128x256xbf16, #tpu.memory_space<vmem>>, vector<1x128x256xbf16>
    %104 = vector.shape_cast %103 : vector<1x128x256xbf16> to vector<128x256xbf16>
    %cst_108 = arith.constant dense<0.000000e+00> : vector<56x256xf32>
    %105 = tpu.matmul %102, %104, %cst_108 {dimension_numbers = #tpu.dot_dimension_numbers<[1], [0], [0], [1], [0, 0, 1, 1], [], []>} : vector<56x128xbf16>, vector<128x256xbf16>, vector<56x256xf32> -> vector<56x256xf32>
    %106 = arith.addf %99, %105 : vector<56x256xf32>
    %c2_109 = arith.constant 2 : index
    %c1_110 = arith.constant 1 : index
    %c0_111 = arith.constant 0 : index
    %c0_112 = arith.constant 0 : index
    %107 = vector.load %arg1[%c2_109, %c1_110, %c0_111, %c0_112] : memref<4x8x8x128xbf16, #tpu.memory_space<vmem>>, vector<1x7x8x128xbf16>
    %108 = vector.shape_cast %107 : vector<1x7x8x128xbf16> to vector<7x8x128xbf16>
    %109 = vector.shape_cast %108 : vector<7x8x128xbf16> to vector<56x128xbf16>
    %c4_113 = arith.constant 4 : index
    %c0_114 = arith.constant 0 : index
    %c0_115 = arith.constant 0 : index
    %110 = vector.load %arg2[%c4_113, %c0_114, %c0_115] : memref<5x128x256xbf16, #tpu.memory_space<vmem>>, vector<1x128x256xbf16>
    %111 = vector.shape_cast %110 : vector<1x128x256xbf16> to vector<128x256xbf16>
    %cst_116 = arith.constant dense<0.000000e+00> : vector<56x256xf32>
    %112 = tpu.matmul %109, %111, %cst_116 {dimension_numbers = #tpu.dot_dimension_numbers<[1], [0], [0], [1], [0, 0, 1, 1], [], []>} : vector<56x128xbf16>, vector<128x256xbf16>, vector<56x256xf32> -> vector<56x256xf32>
    %113 = arith.addf %106, %112 : vector<56x256xf32>
    %114 = vector.extract_strided_slice %113 {offsets = [0, 0], sizes = [56, 128], strides = [1, 1]} : vector<56x256xf32> to vector<56x128xf32>
    %115 = vector.extract_strided_slice %113 {offsets = [0, 128], sizes = [56, 128], strides = [1, 1]} : vector<56x256xf32> to vector<56x128xf32>
    %116 = arith.maximumf %114, %115 : vector<56x128xf32>
    %c3_117 = arith.constant 3 : index
    %c0_118 = arith.constant 0 : index
    %c0_119 = arith.constant 0 : index
    %c0_120 = arith.constant 0 : index
    %117 = vector.load %arg1[%c3_117, %c0_118, %c0_119, %c0_120] : memref<4x8x8x128xbf16, #tpu.memory_space<vmem>>, vector<1x7x8x128xbf16>
    %118 = vector.shape_cast %117 : vector<1x7x8x128xbf16> to vector<7x8x128xbf16>
    %119 = vector.shape_cast %118 : vector<7x8x128xbf16> to vector<56x128xbf16>
    %c0_121 = arith.constant 0 : index
    %c0_122 = arith.constant 0 : index
    %c0_123 = arith.constant 0 : index
    %120 = vector.load %arg2[%c0_121, %c0_122, %c0_123] : memref<5x128x256xbf16, #tpu.memory_space<vmem>>, vector<1x128x256xbf16>
    %121 = vector.shape_cast %120 : vector<1x128x256xbf16> to vector<128x256xbf16>
    %cst_124 = arith.constant dense<0.000000e+00> : vector<56x256xf32>
    %122 = tpu.matmul %119, %121, %cst_124 {dimension_numbers = #tpu.dot_dimension_numbers<[1], [0], [0], [1], [0, 0, 1, 1], [], []>} : vector<56x128xbf16>, vector<128x256xbf16>, vector<56x256xf32> -> vector<56x256xf32>
    %c0_125 = arith.constant 0 : index
    %c1_126 = arith.constant 1 : index
    %c0_127 = arith.constant 0 : index
    %c0_128 = arith.constant 0 : index
    %123 = vector.load %arg1[%c0_125, %c1_126, %c0_127, %c0_128] : memref<4x8x8x128xbf16, #tpu.memory_space<vmem>>, vector<1x7x8x128xbf16>
    %124 = vector.shape_cast %123 : vector<1x7x8x128xbf16> to vector<7x8x128xbf16>
    %125 = vector.shape_cast %124 : vector<7x8x128xbf16> to vector<56x128xbf16>
    %c1_129 = arith.constant 1 : index
    %c0_130 = arith.constant 0 : index
    %c0_131 = arith.constant 0 : index
    %126 = vector.load %arg2[%c1_129, %c0_130, %c0_131] : memref<5x128x256xbf16, #tpu.memory_space<vmem>>, vector<1x128x256xbf16>
    %127 = vector.shape_cast %126 : vector<1x128x256xbf16> to vector<128x256xbf16>
    %cst_132 = arith.constant dense<0.000000e+00> : vector<56x256xf32>
    %128 = tpu.matmul %125, %127, %cst_132 {dimension_numbers = #tpu.dot_dimension_numbers<[1], [0], [0], [1], [0, 0, 1, 1], [], []>} : vector<56x128xbf16>, vector<128x256xbf16>, vector<56x256xf32> -> vector<56x256xf32>
    %129 = arith.addf %122, %128 : vector<56x256xf32>
    %c1_133 = arith.constant 1 : index
    %c1_134 = arith.constant 1 : index
    %c0_135 = arith.constant 0 : index
    %c0_136 = arith.constant 0 : index
    %130 = vector.load %arg1[%c1_133, %c1_134, %c0_135, %c0_136] : memref<4x8x8x128xbf16, #tpu.memory_space<vmem>>, vector<1x7x8x128xbf16>
    %131 = vector.shape_cast %130 : vector<1x7x8x128xbf16> to vector<7x8x128xbf16>
    %132 = vector.shape_cast %131 : vector<7x8x128xbf16> to vector<56x128xbf16>
    %c2_137 = arith.constant 2 : index
    %c0_138 = arith.constant 0 : index
    %c0_139 = arith.constant 0 : index
    %133 = vector.load %arg2[%c2_137, %c0_138, %c0_139] : memref<5x128x256xbf16, #tpu.memory_space<vmem>>, vector<1x128x256xbf16>
    %134 = vector.shape_cast %133 : vector<1x128x256xbf16> to vector<128x256xbf16>
    %cst_140 = arith.constant dense<0.000000e+00> : vector<56x256xf32>
    %135 = tpu.matmul %132, %134, %cst_140 {dimension_numbers = #tpu.dot_dimension_numbers<[1], [0], [0], [1], [0, 0, 1, 1], [], []>} : vector<56x128xbf16>, vector<128x256xbf16>, vector<56x256xf32> -> vector<56x256xf32>
    %136 = arith.addf %129, %135 : vector<56x256xf32>
    %c2_141 = arith.constant 2 : index
    %c1_142 = arith.constant 1 : index
    %c0_143 = arith.constant 0 : index
    %c0_144 = arith.constant 0 : index
    %137 = vector.load %arg1[%c2_141, %c1_142, %c0_143, %c0_144] : memref<4x8x8x128xbf16, #tpu.memory_space<vmem>>, vector<1x7x8x128xbf16>
    %138 = vector.shape_cast %137 : vector<1x7x8x128xbf16> to vector<7x8x128xbf16>
    %139 = vector.shape_cast %138 : vector<7x8x128xbf16> to vector<56x128xbf16>
    %c3_145 = arith.constant 3 : index
    %c0_146 = arith.constant 0 : index
    %c0_147 = arith.constant 0 : index
    %140 = vector.load %arg2[%c3_145, %c0_146, %c0_147] : memref<5x128x256xbf16, #tpu.memory_space<vmem>>, vector<1x128x256xbf16>
    %141 = vector.shape_cast %140 : vector<1x128x256xbf16> to vector<128x256xbf16>
    %cst_148 = arith.constant dense<0.000000e+00> : vector<56x256xf32>
    %142 = tpu.matmul %139, %141, %cst_148 {dimension_numbers = #tpu.dot_dimension_numbers<[1], [0], [0], [1], [0, 0, 1, 1], [], []>} : vector<56x128xbf16>, vector<128x256xbf16>, vector<56x256xf32> -> vector<56x256xf32>
    %143 = arith.addf %136, %142 : vector<56x256xf32>
    %c3_149 = arith.constant 3 : index
    %c1_150 = arith.constant 1 : index
    %c0_151 = arith.constant 0 : index
    %c0_152 = arith.constant 0 : index
    %144 = vector.load %arg1[%c3_149, %c1_150, %c0_151, %c0_152] : memref<4x8x8x128xbf16, #tpu.memory_space<vmem>>, vector<1x7x8x128xbf16>
    %145 = vector.shape_cast %144 : vector<1x7x8x128xbf16> to vector<7x8x128xbf16>
    %146 = vector.shape_cast %145 : vector<7x8x128xbf16> to vector<56x128xbf16>
    %c4_153 = arith.constant 4 : index
    %c0_154 = arith.constant 0 : index
    %c0_155 = arith.constant 0 : index
    %147 = vector.load %arg2[%c4_153, %c0_154, %c0_155] : memref<5x128x256xbf16, #tpu.memory_space<vmem>>, vector<1x128x256xbf16>
    %148 = vector.shape_cast %147 : vector<1x128x256xbf16> to vector<128x256xbf16>
    %cst_156 = arith.constant dense<0.000000e+00> : vector<56x256xf32>
    %149 = tpu.matmul %146, %148, %cst_156 {dimension_numbers = #tpu.dot_dimension_numbers<[1], [0], [0], [1], [0, 0, 1, 1], [], []>} : vector<56x128xbf16>, vector<128x256xbf16>, vector<56x256xf32> -> vector<56x256xf32>
    %150 = arith.addf %143, %149 : vector<56x256xf32>
    %151 = vector.extract_strided_slice %150 {offsets = [0, 0], sizes = [56, 128], strides = [1, 1]} : vector<56x256xf32> to vector<56x128xf32>
    %152 = vector.extract_strided_slice %150 {offsets = [0, 128], sizes = [56, 128], strides = [1, 1]} : vector<56x256xf32> to vector<56x128xf32>
    %153 = arith.maximumf %151, %152 : vector<56x128xf32>
    %154 = arith.maximumf %116, %153 : vector<56x128xf32>
    %c0_157 = arith.constant 0 : index
    %c0_158 = arith.constant 0 : index
    %155 = vector.load %arg3[%c0_157, %c0_158] : memref<1x128xf32, #tpu.memory_space<vmem>>, vector<1x128xf32>
    %156 = vector.broadcast %155 : vector<1x128xf32> to vector<56x128xf32>
    %157 = arith.addf %154, %156 : vector<56x128xf32>
    %cst_159 = arith.constant 0.000000e+00 : f32
    %158 = vector.broadcast %cst_159 : f32 to vector<56x128xf32>
    %159 = arith.maximumf %157, %158 : vector<56x128xf32>
    %160 = vector.extract_strided_slice %79 {offsets = [0, 0], sizes = [40, 128], strides = [1, 1]} : vector<56x128xf32> to vector<40x128xf32>
    %161 = arith.truncf %160 : vector<40x128xf32> to vector<40x128xbf16>
    %c0_160 = arith.constant 0 : index
    %c0_161 = arith.constant 0 : index
    %c0_162 = arith.constant 0 : index
    %162 = vector.load %arg4[%c0_160, %c0_161, %c0_162] : memref<5x128x256xbf16, #tpu.memory_space<vmem>>, vector<1x128x256xbf16>
    %163 = vector.shape_cast %162 : vector<1x128x256xbf16> to vector<128x256xbf16>
    %cst_163 = arith.constant dense<0.000000e+00> : vector<40x256xf32>
    %164 = tpu.matmul %161, %163, %cst_163 {dimension_numbers = #tpu.dot_dimension_numbers<[1], [0], [0], [1], [0, 0, 1, 1], [], []>} : vector<40x128xbf16>, vector<128x256xbf16>, vector<40x256xf32> -> vector<40x256xf32>
    %165 = vector.extract_strided_slice %159 {offsets = [0, 0], sizes = [40, 128], strides = [1, 1]} : vector<56x128xf32> to vector<40x128xf32>
    %166 = arith.truncf %165 : vector<40x128xf32> to vector<40x128xbf16>
    %c1_164 = arith.constant 1 : index
    %c0_165 = arith.constant 0 : index
    %c0_166 = arith.constant 0 : index
    %167 = vector.load %arg4[%c1_164, %c0_165, %c0_166] : memref<5x128x256xbf16, #tpu.memory_space<vmem>>, vector<1x128x256xbf16>
    %168 = vector.shape_cast %167 : vector<1x128x256xbf16> to vector<128x256xbf16>
    %cst_167 = arith.constant dense<0.000000e+00> : vector<40x256xf32>
    %169 = tpu.matmul %166, %168, %cst_167 {dimension_numbers = #tpu.dot_dimension_numbers<[1], [0], [0], [1], [0, 0, 1, 1], [], []>} : vector<40x128xbf16>, vector<128x256xbf16>, vector<40x256xf32> -> vector<40x256xf32>
    %170 = arith.addf %164, %169 : vector<40x256xf32>
    %171 = vector.extract_strided_slice %79 {offsets = [8, 0], sizes = [40, 128], strides = [1, 1]} : vector<56x128xf32> to vector<40x128xf32>
    %172 = arith.truncf %171 : vector<40x128xf32> to vector<40x128xbf16>
    %c2_168 = arith.constant 2 : index
    %c0_169 = arith.constant 0 : index
    %c0_170 = arith.constant 0 : index
    %173 = vector.load %arg4[%c2_168, %c0_169, %c0_170] : memref<5x128x256xbf16, #tpu.memory_space<vmem>>, vector<1x128x256xbf16>
    %174 = vector.shape_cast %173 : vector<1x128x256xbf16> to vector<128x256xbf16>
    %cst_171 = arith.constant dense<0.000000e+00> : vector<40x256xf32>
    %175 = tpu.matmul %172, %174, %cst_171 {dimension_numbers = #tpu.dot_dimension_numbers<[1], [0], [0], [1], [0, 0, 1, 1], [], []>} : vector<40x128xbf16>, vector<128x256xbf16>, vector<40x256xf32> -> vector<40x256xf32>
    %176 = arith.addf %170, %175 : vector<40x256xf32>
    %177 = vector.extract_strided_slice %159 {offsets = [8, 0], sizes = [40, 128], strides = [1, 1]} : vector<56x128xf32> to vector<40x128xf32>
    %178 = arith.truncf %177 : vector<40x128xf32> to vector<40x128xbf16>
    %c3_172 = arith.constant 3 : index
    %c0_173 = arith.constant 0 : index
    %c0_174 = arith.constant 0 : index
    %179 = vector.load %arg4[%c3_172, %c0_173, %c0_174] : memref<5x128x256xbf16, #tpu.memory_space<vmem>>, vector<1x128x256xbf16>
    %180 = vector.shape_cast %179 : vector<1x128x256xbf16> to vector<128x256xbf16>
    %cst_175 = arith.constant dense<0.000000e+00> : vector<40x256xf32>
    %181 = tpu.matmul %178, %180, %cst_175 {dimension_numbers = #tpu.dot_dimension_numbers<[1], [0], [0], [1], [0, 0, 1, 1], [], []>} : vector<40x128xbf16>, vector<128x256xbf16>, vector<40x256xf32> -> vector<40x256xf32>
    %182 = arith.addf %176, %181 : vector<40x256xf32>
    %183 = vector.extract_strided_slice %79 {offsets = [16, 0], sizes = [40, 128], strides = [1, 1]} : vector<56x128xf32> to vector<40x128xf32>
    %184 = arith.truncf %183 : vector<40x128xf32> to vector<40x128xbf16>
    %c4_176 = arith.constant 4 : index
    %c0_177 = arith.constant 0 : index
    %c0_178 = arith.constant 0 : index
    %185 = vector.load %arg4[%c4_176, %c0_177, %c0_178] : memref<5x128x256xbf16, #tpu.memory_space<vmem>>, vector<1x128x256xbf16>
    %186 = vector.shape_cast %185 : vector<1x128x256xbf16> to vector<128x256xbf16>
    %cst_179 = arith.constant dense<0.000000e+00> : vector<40x256xf32>
    %187 = tpu.matmul %184, %186, %cst_179 {dimension_numbers = #tpu.dot_dimension_numbers<[1], [0], [0], [1], [0, 0, 1, 1], [], []>} : vector<40x128xbf16>, vector<128x256xbf16>, vector<40x256xf32> -> vector<40x256xf32>
    %188 = arith.addf %182, %187 : vector<40x256xf32>
    %189 = vector.extract_strided_slice %188 {offsets = [0, 0], sizes = [40, 128], strides = [1, 1]} : vector<40x256xf32> to vector<40x128xf32>
    %190 = vector.extract_strided_slice %188 {offsets = [0, 128], sizes = [40, 128], strides = [1, 1]} : vector<40x256xf32> to vector<40x128xf32>
    %191 = arith.maximumf %189, %190 : vector<40x128xf32>
    %192 = vector.extract_strided_slice %159 {offsets = [0, 0], sizes = [40, 128], strides = [1, 1]} : vector<56x128xf32> to vector<40x128xf32>
    %193 = arith.truncf %192 : vector<40x128xf32> to vector<40x128xbf16>
    %c0_180 = arith.constant 0 : index
    %c0_181 = arith.constant 0 : index
    %c0_182 = arith.constant 0 : index
    %194 = vector.load %arg4[%c0_180, %c0_181, %c0_182] : memref<5x128x256xbf16, #tpu.memory_space<vmem>>, vector<1x128x256xbf16>
    %195 = vector.shape_cast %194 : vector<1x128x256xbf16> to vector<128x256xbf16>
    %cst_183 = arith.constant dense<0.000000e+00> : vector<40x256xf32>
    %196 = tpu.matmul %193, %195, %cst_183 {dimension_numbers = #tpu.dot_dimension_numbers<[1], [0], [0], [1], [0, 0, 1, 1], [], []>} : vector<40x128xbf16>, vector<128x256xbf16>, vector<40x256xf32> -> vector<40x256xf32>
    %197 = vector.extract_strided_slice %79 {offsets = [8, 0], sizes = [40, 128], strides = [1, 1]} : vector<56x128xf32> to vector<40x128xf32>
    %198 = arith.truncf %197 : vector<40x128xf32> to vector<40x128xbf16>
    %c1_184 = arith.constant 1 : index
    %c0_185 = arith.constant 0 : index
    %c0_186 = arith.constant 0 : index
    %199 = vector.load %arg4[%c1_184, %c0_185, %c0_186] : memref<5x128x256xbf16, #tpu.memory_space<vmem>>, vector<1x128x256xbf16>
    %200 = vector.shape_cast %199 : vector<1x128x256xbf16> to vector<128x256xbf16>
    %cst_187 = arith.constant dense<0.000000e+00> : vector<40x256xf32>
    %201 = tpu.matmul %198, %200, %cst_187 {dimension_numbers = #tpu.dot_dimension_numbers<[1], [0], [0], [1], [0, 0, 1, 1], [], []>} : vector<40x128xbf16>, vector<128x256xbf16>, vector<40x256xf32> -> vector<40x256xf32>
    %202 = arith.addf %196, %201 : vector<40x256xf32>
    %203 = vector.extract_strided_slice %159 {offsets = [8, 0], sizes = [40, 128], strides = [1, 1]} : vector<56x128xf32> to vector<40x128xf32>
    %204 = arith.truncf %203 : vector<40x128xf32> to vector<40x128xbf16>
    %c2_188 = arith.constant 2 : index
    %c0_189 = arith.constant 0 : index
    %c0_190 = arith.constant 0 : index
    %205 = vector.load %arg4[%c2_188, %c0_189, %c0_190] : memref<5x128x256xbf16, #tpu.memory_space<vmem>>, vector<1x128x256xbf16>
    %206 = vector.shape_cast %205 : vector<1x128x256xbf16> to vector<128x256xbf16>
    %cst_191 = arith.constant dense<0.000000e+00> : vector<40x256xf32>
    %207 = tpu.matmul %204, %206, %cst_191 {dimension_numbers = #tpu.dot_dimension_numbers<[1], [0], [0], [1], [0, 0, 1, 1], [], []>} : vector<40x128xbf16>, vector<128x256xbf16>, vector<40x256xf32> -> vector<40x256xf32>
    %208 = arith.addf %202, %207 : vector<40x256xf32>
    %209 = vector.extract_strided_slice %79 {offsets = [16, 0], sizes = [40, 128], strides = [1, 1]} : vector<56x128xf32> to vector<40x128xf32>
    %210 = arith.truncf %209 : vector<40x128xf32> to vector<40x128xbf16>
    %c3_192 = arith.constant 3 : index
    %c0_193 = arith.constant 0 : index
    %c0_194 = arith.constant 0 : index
    %211 = vector.load %arg4[%c3_192, %c0_193, %c0_194] : memref<5x128x256xbf16, #tpu.memory_space<vmem>>, vector<1x128x256xbf16>
    %212 = vector.shape_cast %211 : vector<1x128x256xbf16> to vector<128x256xbf16>
    %cst_195 = arith.constant dense<0.000000e+00> : vector<40x256xf32>
    %213 = tpu.matmul %210, %212, %cst_195 {dimension_numbers = #tpu.dot_dimension_numbers<[1], [0], [0], [1], [0, 0, 1, 1], [], []>} : vector<40x128xbf16>, vector<128x256xbf16>, vector<40x256xf32> -> vector<40x256xf32>
    %214 = arith.addf %208, %213 : vector<40x256xf32>
    %215 = vector.extract_strided_slice %159 {offsets = [16, 0], sizes = [40, 128], strides = [1, 1]} : vector<56x128xf32> to vector<40x128xf32>
    %216 = arith.truncf %215 : vector<40x128xf32> to vector<40x128xbf16>
    %c4_196 = arith.constant 4 : index
    %c0_197 = arith.constant 0 : index
    %c0_198 = arith.constant 0 : index
    %217 = vector.load %arg4[%c4_196, %c0_197, %c0_198] : memref<5x128x256xbf16, #tpu.memory_space<vmem>>, vector<1x128x256xbf16>
    %218 = vector.shape_cast %217 : vector<1x128x256xbf16> to vector<128x256xbf16>
    %cst_199 = arith.constant dense<0.000000e+00> : vector<40x256xf32>
    %219 = tpu.matmul %216, %218, %cst_199 {dimension_numbers = #tpu.dot_dimension_numbers<[1], [0], [0], [1], [0, 0, 1, 1], [], []>} : vector<40x128xbf16>, vector<128x256xbf16>, vector<40x256xf32> -> vector<40x256xf32>
    %220 = arith.addf %214, %219 : vector<40x256xf32>
    %221 = vector.extract_strided_slice %220 {offsets = [0, 0], sizes = [40, 128], strides = [1, 1]} : vector<40x256xf32> to vector<40x128xf32>
    %222 = vector.extract_strided_slice %220 {offsets = [0, 128], sizes = [40, 128], strides = [1, 1]} : vector<40x256xf32> to vector<40x128xf32>
    %223 = arith.maximumf %221, %222 : vector<40x128xf32>
    %224 = arith.maximumf %191, %223 : vector<40x128xf32>
    %c0_200 = arith.constant 0 : index
    %c0_201 = arith.constant 0 : index
    %225 = vector.load %arg5[%c0_200, %c0_201] : memref<1x128xf32, #tpu.memory_space<vmem>>, vector<1x128xf32>
    %226 = vector.broadcast %225 : vector<1x128xf32> to vector<40x128xf32>
    %227 = arith.addf %224, %226 : vector<40x128xf32>
    %cst_202 = arith.constant 0.000000e+00 : f32
    %228 = vector.broadcast %cst_202 : f32 to vector<40x128xf32>
    %229 = arith.maximumf %227, %228 : vector<40x128xf32>
    %230 = vector.extract_strided_slice %229 {offsets = [0, 0], sizes = [8, 128], strides = [1, 1]} : vector<40x128xf32> to vector<8x128xf32>
    %231 = arith.truncf %230 : vector<8x128xf32> to vector<8x128xbf16>
    %c0_203 = arith.constant 0 : index
    %c0_204 = arith.constant 0 : index
    %c0_205 = arith.constant 0 : index
    %232 = vector.load %arg6[%c0_203, %c0_204, %c0_205] : memref<5x128x128xbf16, #tpu.memory_space<vmem>>, vector<1x128x128xbf16>
    %233 = vector.shape_cast %232 : vector<1x128x128xbf16> to vector<128x128xbf16>
    %cst_206 = arith.constant dense<0.000000e+00> : vector<8x128xf32>
    %234 = tpu.matmul %231, %233, %cst_206 {dimension_numbers = #tpu.dot_dimension_numbers<[1], [0], [0], [1], [0, 0, 1, 1], [], []>} : vector<8x128xbf16>, vector<128x128xbf16>, vector<8x128xf32> -> vector<8x128xf32>
    %235 = vector.extract_strided_slice %229 {offsets = [8, 0], sizes = [8, 128], strides = [1, 1]} : vector<40x128xf32> to vector<8x128xf32>
    %236 = arith.truncf %235 : vector<8x128xf32> to vector<8x128xbf16>
    %c1_207 = arith.constant 1 : index
    %c0_208 = arith.constant 0 : index
    %c0_209 = arith.constant 0 : index
    %237 = vector.load %arg6[%c1_207, %c0_208, %c0_209] : memref<5x128x128xbf16, #tpu.memory_space<vmem>>, vector<1x128x128xbf16>
    %238 = vector.shape_cast %237 : vector<1x128x128xbf16> to vector<128x128xbf16>
    %cst_210 = arith.constant dense<0.000000e+00> : vector<8x128xf32>
    %239 = tpu.matmul %236, %238, %cst_210 {dimension_numbers = #tpu.dot_dimension_numbers<[1], [0], [0], [1], [0, 0, 1, 1], [], []>} : vector<8x128xbf16>, vector<128x128xbf16>, vector<8x128xf32> -> vector<8x128xf32>
    %240 = arith.addf %234, %239 : vector<8x128xf32>
    %241 = vector.extract_strided_slice %229 {offsets = [16, 0], sizes = [8, 128], strides = [1, 1]} : vector<40x128xf32> to vector<8x128xf32>
    %242 = arith.truncf %241 : vector<8x128xf32> to vector<8x128xbf16>
    %c2_211 = arith.constant 2 : index
    %c0_212 = arith.constant 0 : index
    %c0_213 = arith.constant 0 : index
    %243 = vector.load %arg6[%c2_211, %c0_212, %c0_213] : memref<5x128x128xbf16, #tpu.memory_space<vmem>>, vector<1x128x128xbf16>
    %244 = vector.shape_cast %243 : vector<1x128x128xbf16> to vector<128x128xbf16>
    %cst_214 = arith.constant dense<0.000000e+00> : vector<8x128xf32>
    %245 = tpu.matmul %242, %244, %cst_214 {dimension_numbers = #tpu.dot_dimension_numbers<[1], [0], [0], [1], [0, 0, 1, 1], [], []>} : vector<8x128xbf16>, vector<128x128xbf16>, vector<8x128xf32> -> vector<8x128xf32>
    %246 = arith.addf %240, %245 : vector<8x128xf32>
    %247 = vector.extract_strided_slice %229 {offsets = [24, 0], sizes = [8, 128], strides = [1, 1]} : vector<40x128xf32> to vector<8x128xf32>
    %248 = arith.truncf %247 : vector<8x128xf32> to vector<8x128xbf16>
    %c3_215 = arith.constant 3 : index
    %c0_216 = arith.constant 0 : index
    %c0_217 = arith.constant 0 : index
    %249 = vector.load %arg6[%c3_215, %c0_216, %c0_217] : memref<5x128x128xbf16, #tpu.memory_space<vmem>>, vector<1x128x128xbf16>
    %250 = vector.shape_cast %249 : vector<1x128x128xbf16> to vector<128x128xbf16>
    %cst_218 = arith.constant dense<0.000000e+00> : vector<8x128xf32>
    %251 = tpu.matmul %248, %250, %cst_218 {dimension_numbers = #tpu.dot_dimension_numbers<[1], [0], [0], [1], [0, 0, 1, 1], [], []>} : vector<8x128xbf16>, vector<128x128xbf16>, vector<8x128xf32> -> vector<8x128xf32>
    %252 = arith.addf %246, %251 : vector<8x128xf32>
    %253 = vector.extract_strided_slice %229 {offsets = [32, 0], sizes = [8, 128], strides = [1, 1]} : vector<40x128xf32> to vector<8x128xf32>
    %254 = arith.truncf %253 : vector<8x128xf32> to vector<8x128xbf16>
    %c4_219 = arith.constant 4 : index
    %c0_220 = arith.constant 0 : index
    %c0_221 = arith.constant 0 : index
    %255 = vector.load %arg6[%c4_219, %c0_220, %c0_221] : memref<5x128x128xbf16, #tpu.memory_space<vmem>>, vector<1x128x128xbf16>
    %256 = vector.shape_cast %255 : vector<1x128x128xbf16> to vector<128x128xbf16>
    %cst_222 = arith.constant dense<0.000000e+00> : vector<8x128xf32>
    %257 = tpu.matmul %254, %256, %cst_222 {dimension_numbers = #tpu.dot_dimension_numbers<[1], [0], [0], [1], [0, 0, 1, 1], [], []>} : vector<8x128xbf16>, vector<128x128xbf16>, vector<8x128xf32> -> vector<8x128xf32>
    %258 = arith.addf %252, %257 : vector<8x128xf32>
    %c0_223 = arith.constant 0 : index
    %c0_224 = arith.constant 0 : index
    %259 = vector.load %arg7[%c0_223, %c0_224] : memref<1x128xf32, #tpu.memory_space<vmem>>, vector<1x128xf32>
    %260 = vector.broadcast %259 : vector<1x128xf32> to vector<8x128xf32>
    %261 = arith.addf %258, %260 : vector<8x128xf32>
    %cst_225 = arith.constant 0.000000e+00 : f32
    %262 = vector.broadcast %cst_225 : f32 to vector<8x128xf32>
    %263 = arith.maximumf %261, %262 : vector<8x128xf32>
    %264 = arith.truncf %263 : vector<8x128xf32> to vector<8x128xbf16>
    %c0_226 = arith.constant 0 : index
    %c0_227 = arith.constant 0 : index
    %265 = vector.load %arg8[%c0_226, %c0_227] : memref<128x128xbf16, #tpu.memory_space<vmem>>, vector<128x128xbf16>
    %cst_228 = arith.constant dense<0.000000e+00> : vector<8x128xf32>
    %266 = tpu.matmul %264, %265, %cst_228 {dimension_numbers = #tpu.dot_dimension_numbers<[1], [0], [0], [1], [0, 0, 1, 1], [], []>} : vector<8x128xbf16>, vector<128x128xbf16>, vector<8x128xf32> -> vector<8x128xf32>
    %c0_229 = arith.constant 0 : index
    %c0_230 = arith.constant 0 : index
    %267 = vector.load %arg9[%c0_229, %c0_230] : memref<1x128xf32, #tpu.memory_space<vmem>>, vector<1x128xf32>
    %268 = vector.broadcast %267 : vector<1x128xf32> to vector<8x128xf32>
    %269 = arith.addf %266, %268 : vector<8x128xf32>
    %cst_231 = arith.constant 0.000000e+00 : f32
    %270 = vector.broadcast %cst_231 : f32 to vector<8x128xf32>
    %271 = arith.maximumf %269, %270 : vector<8x128xf32>
    %272 = arith.truncf %271 : vector<8x128xf32> to vector<8x128xbf16>
    %c0_232 = arith.constant 0 : index
    %c0_233 = arith.constant 0 : index
    %273 = vector.load %arg10[%c0_232, %c0_233] : memref<128x128xbf16, #tpu.memory_space<vmem>>, vector<128x128xbf16>
    %cst_234 = arith.constant dense<0.000000e+00> : vector<8x128xf32>
    %274 = tpu.matmul %272, %273, %cst_234 {dimension_numbers = #tpu.dot_dimension_numbers<[1], [0], [0], [1], [0, 0, 1, 1], [], []>} : vector<8x128xbf16>, vector<128x128xbf16>, vector<8x128xf32> -> vector<8x128xf32>
    %c0_235 = arith.constant 0 : index
    %c0_236 = arith.constant 0 : index
    %275 = vector.load %arg11[%c0_235, %c0_236] : memref<1x128xf32, #tpu.memory_space<vmem>>, vector<1x128xf32>
    %276 = vector.broadcast %275 : vector<1x128xf32> to vector<8x128xf32>
    %277 = arith.addf %274, %276 : vector<8x128xf32>
    %c0_237 = arith.constant 0 : index
    %c0_238 = arith.constant 0 : index
    %278 = vector.load %arg12[%c0_237, %c0_238] : memref<8x128xf32, #tpu.memory_space<vmem>>, vector<8x128xf32>
    tpu.vector_store %arg12[%c0_237, %c0_238], %277 {strides = array<i32>} : memref<8x128xf32, #tpu.memory_space<vmem>>, vector<8x128xf32>,
    return
  }
  func.func @transform_0(%arg0: i32) -> (i32, i32, i32, i32) {
    %c0_i32 = arith.constant 0 : i32
    %c0_i32_0 = arith.constant 0 : i32
    %c0_i32_1 = arith.constant 0 : i32
    %c0_i32_2 = arith.constant 0 : i32
    return %c0_i32, %c0_i32_0, %arg0, %c0_i32_1 : i32, i32, i32, i32
  }
  func.func @transform_1(%arg0: i32) -> (i32, i32, i32) {
    %c0_i32 = arith.constant 0 : i32
    %c0_i32_0 = arith.constant 0 : i32
    %c0_i32_1 = arith.constant 0 : i32
    %c0_i32_2 = arith.constant 0 : i32
    return %c0_i32, %c0_i32_0, %c0_i32_1 : i32, i32, i32
  }
  func.func @transform_2(%arg0: i32) -> (i32, i32) {
    %c0_i32 = arith.constant 0 : i32
    %c0_i32_0 = arith.constant 0 : i32
    %c0_i32_1 = arith.constant 0 : i32
    return %c0_i32, %c0_i32_0 : i32, i32
  }
  func.func @transform_3(%arg0: i32) -> (i32, i32, i32) {
    %c0_i32 = arith.constant 0 : i32
    %c0_i32_0 = arith.constant 0 : i32
    %c0_i32_1 = arith.constant 0 : i32
    %c0_i32_2 = arith.constant 0 : i32
    return %c0_i32, %c0_i32_0, %c0_i32_1 : i32, i32, i32
  }
  func.func @transform_4(%arg0: i32) -> (i32, i32) {
    %c0_i32 = arith.constant 0 : i32
    %c0_i32_0 = arith.constant 0 : i32
    %c0_i32_1 = arith.constant 0 : i32
    return %c0_i32, %c0_i32_0 : i32, i32
  }
  func.func @transform_5(%arg0: i32) -> (i32, i32, i32) {
    %c0_i32 = arith.constant 0 : i32
    %c0_i32_0 = arith.constant 0 : i32
    %c0_i32_1 = arith.constant 0 : i32
    %c0_i32_2 = arith.constant 0 : i32
    return %c0_i32, %c0_i32_0, %c0_i32_1 : i32, i32, i32
  }
  func.func @transform_6(%arg0: i32) -> (i32, i32) {
    %c0_i32 = arith.constant 0 : i32
    %c0_i32_0 = arith.constant 0 : i32
    %c0_i32_1 = arith.constant 0 : i32
    return %c0_i32, %c0_i32_0 : i32, i32
  }
  func.func @transform_7(%arg0: i32) -> (i32, i32) {
    %c0_i32 = arith.constant 0 : i32
    %c0_i32_0 = arith.constant 0 : i32
    %c0_i32_1 = arith.constant 0 : i32
    return %c0_i32, %c0_i32_0 : i32, i32
  }
  func.func @transform_8(%arg0: i32) -> (i32, i32) {
    %c0_i32 = arith.constant 0 : i32
    %c0_i32_0 = arith.constant 0 : i32
    %c0_i32_1 = arith.constant 0 : i32
    return %c0_i32, %c0_i32_0 : i32, i32
  }
  func.func @transform_9(%arg0: i32) -> (i32, i32) {
    %c0_i32 = arith.constant 0 : i32
    %c0_i32_0 = arith.constant 0 : i32
    %c0_i32_1 = arith.constant 0 : i32
    return %c0_i32, %c0_i32_0 : i32, i32
  }
  func.func @transform_10(%arg0: i32) -> (i32, i32) {
    %c0_i32 = arith.constant 0 : i32
    %c0_i32_0 = arith.constant 0 : i32
    %c0_i32_1 = arith.constant 0 : i32
    return %c0_i32, %c0_i32_0 : i32, i32
  }
  func.func @transform_11(%arg0: i32) -> (i32, i32) {
    %c0_i32 = arith.constant 0 : i32
    %c0_i32_0 = arith.constant 0 : i32
    return %arg0, %c0_i32 : i32, i32
  }
}

</mosaic_0001>

<bundles_post_ra>
// kernel: _lambda_.1
= control target key start
LH: loop header
LB: loop body
LE: loop exit
PB: predicated region body
PF: predicated region fallthrough
CT: control target
= control target key end

     0   :  { %s9265_s0 = inlined_call_operand.vmem [shape: bf16[4,8,16,128], index: 0, kind: input, shape index: {}]   ;;  %s9266_s1 = inlined_call_operand.vmem [shape: bf16[5,128,256], index: 1, kind: input, shape index: {}]   ;;  %s9267_s2 = inlined_call_operand.vmem [shape: f32[1,128], index: 2, kind: input, shape index: {}]   ;;  %s9268_s3 = inlined_call_operand.vmem [shape: bf16[5,128,256], index: 3, kind: input, shape index: {}]   ;;  %s9269_s4 = inlined_call_operand.vmem [shape: f32[1,128], index: 4, kind: input, shape index: {}]   ;;  %s9270_s5 = inlined_call_operand.vmem [shape: bf16[5,128,128], index: 5, kind: input, shape index: {}]   ;;  %s9271_s6 = inlined_call_operand.vmem [shape: f32[1,128], index: 6, kind: input, shape index: {}]   ;;  %s9272_s7 = inlined_call_operand.vmem [shape: bf16[128,128], index: 7, kind: input, shape index: {}]   ;;  %s9273_s8 = inlined_call_operand.vmem [shape: f32[1,128], index: 8, kind: input, shape index: {}]   ;;  %s9274_s9 = inlined_call_operand.vmem [shape: bf16[128,128], index: 9, kind: input, shape index: {}]   ;;  %s9275_s10 = inlined_call_operand.vmem [shape: f32[1,128], index: 10, kind: input, shape index: {}]   ;;  %s9276_s11 = inlined_call_operand.hbm [shape: f32[16,128], index: 11, kind: output, shape index: {}]  }
   0x1   :  { %9365 = sst [smem:[#allocation49_spill]] %s9265_s0 }
   0x2   :  { %16 = vsyncpa [#allocation4], 0 }
   0x3   :  { %18 = vsyncpa [#allocation4 + $0x1], 0  ;;  %s6307_s17 = smov 0   ;;  %s6309_s18 = smov 0  }
   0x4   :  { %s6311_s19 = smov 0   ;;  %s6313_s20 = smov 0  }
   0x5 LB: > { %s4988_s21 = sadd.s32 4294967295, %s6241_s20   ;;  %s4989_s22 = sadd.s32 4294967294, %s6241_s20   ;;  %s6241_s20 = sphi %s6313_s20, %s9567_s20   ;;  %s6237_s19 = sphi %s6311_s19, %s9566_s19   ;;  %s6233_s18 = sphi %s6309_s18, %s9565_s18   ;;  %s6229_s17 = sphi %s6307_s17, %s9564_s17  }
   0x6   : > { %s6330_s23 = sadd.s32 1, %s6241_s20   ;;  %s31_s24 = sadd.s32 1, %s6237_s19 }
   0x7   : > { %s28_s25 = ssub.s32 %s6241_s20, %s6330_s23  ;;  %p38_p0 = scmp.ne.s32.totalorder %s6237_s19, %s6233_s18 }
   0x8   : > { %p29_p1 = scmp.eq.s32.totalorder %s28_s25, 0  ;;  %p39_p2 = scmp.eq.s32.totalorder %s6241_s20, 0 }
   0x9   : > { %p278_p3 = scmp.eq.s32.totalorder %s4988_s21, 1  ;;  %p283_p4 = scmp.ne.s32.totalorder %s6233_s18, %s6229_s17 }
   0xa   : > { %s6343_s26 = scalar_select %p29_p1, %s6237_s19, %s31_s24  }
   0xb   : > { %p40_p5 = por %p39_p2, %p38_p0  ;;  %p6345_p6 = por %p278_p3, %p38_p0 }
   0xc   : > { %p284_p7 = scmp.eq.s32.totalorder %s4989_s22, 1  ;;  %p4991_p9 = scmp.ge.s32.totalorder %s6241_s20, 2 }
   0xe   : > { %p6349_p8 = por %p284_p7, %p283_p4  ;;  %330 = sbr.rel (%p4991_p9) target bundleno = 50 (0x32), region = 56 }
  0x13   : > { %333 = sbr.rel (!%p40_p5) target bundleno = 50 (0x32), region = 60  ;;  %s335_s29 = sand.u32 (%p40_p5), 1, %s6237_s19  }
  0x14   : > { %s4993_s30 = sshll.u32 (%p40_p5), %s6241_s20, 2  ;;  %s4992_s12 = sshll.u32 (%p40_p5), %s335_s29, 7 }
  0x15   : > { %s9368_s0 = sld [smem:[#allocation49_spill]] (%p40_p5)  ;;  %s6365_s16 = scalar_lea.vmem (%p40_p5), [#allocation2], %s4992_s12 }
  0x1b   : > { %s6361_s15 = scalar_lea.vmem %s9368_s0, %s4993_s30 }
  0x1c   : > { %v356_v0 = vld [vmem:[%s6361_s15] sm:$0xf]  ;;  %v358_v1 = vld [vmem:[%s6361_s15 + $0x8] sm:$0xf]  ;;  %v360_v2 = vld [vmem:[%s6361_s15 + $0x10] sm:$0xf] }
  0x1d   : > { %357 = vst [vmem:[%s6365_s16] sm:$0xf] %v356_v0  ;;  %359 = vst [vmem:[%s6365_s16 + $0x4] sm:$0xf] %v358_v1  ;;  %v362_v3 = vld [vmem:[%s6361_s15 + $0x18] sm:$0xf] }
  0x1e   : > { %v364_v4 = vld [vmem:[%s6361_s15 + $0x20] sm:$0xf]  ;;  %361 = vst [vmem:[%s6365_s16 + $0x8] sm:$0xf] %v360_v2  ;;  %363 = vst [vmem:[%s6365_s16 + $0xc] sm:$0xf] %v362_v3 }
  0x1f   : > { %365 = vst [vmem:[%s6365_s16 + $0x10] sm:$0xf] %v364_v4  ;;  %v366_v5 = vld [vmem:[%s6361_s15 + $0x28] sm:$0xf]  ;;  %v368_v6 = vld [vmem:[%s6361_s15 + $0x30] sm:$0xf] }
  0x20   : > { %v370_v7 = vld [vmem:[%s6361_s15 + $0x38] sm:$0xf]  ;;  %367 = vst [vmem:[%s6365_s16 + $0x14] sm:$0xf] %v366_v5  ;;  %369 = vst [vmem:[%s6365_s16 + $0x18] sm:$0xf] %v368_v6 }
  0x21   : > { %371 = vst [vmem:[%s6365_s16 + $0x1c] sm:$0xf] %v370_v7  ;;  %v372_v8 = vld [vmem:[%s6361_s15 + $0x40] sm:$0xf]  ;;  %v374_v9 = vld [vmem:[%s6361_s15 + $0x48] sm:$0xf] }
  0x22   : > { %v376_v10 = vld [vmem:[%s6361_s15 + $0x50] sm:$0xf]  ;;  %373 = vst [vmem:[%s6365_s16 + $0x20] sm:$0xf] %v372_v8  ;;  %375 = vst [vmem:[%s6365_s16 + $0x24] sm:$0xf] %v374_v9 }
  0x23   : > { %377 = vst [vmem:[%s6365_s16 + $0x28] sm:$0xf] %v376_v10  ;;  %v378_v11 = vld [vmem:[%s6361_s15 + $0x58] sm:$0xf]  ;;  %v380_v12 = vld [vmem:[%s6361_s15 + $0x60] sm:$0xf] }
  0x24   : > { %v382_v13 = vld [vmem:[%s6361_s15 + $0x68] sm:$0xf]  ;;  %379 = vst [vmem:[%s6365_s16 + $0x2c] sm:$0xf] %v378_v11  ;;  %381 = vst [vmem:[%s6365_s16 + $0x30] sm:$0xf] %v380_v12 }
  0x25   : > { %383 = vst [vmem:[%s6365_s16 + $0x34] sm:$0xf] %v382_v13  ;;  %v384_v14 = vld [vmem:[%s6361_s15 + $0x70] sm:$0xf]  ;;  %v386_v15 = vld [vmem:[%s6361_s15 + $0x78] sm:$0xf] }
  0x26   : > { %v388_v16 = vld [vmem:[%s6361_s15 + $0x80] sm:$0xf]  ;;  %385 = vst [vmem:[%s6365_s16 + $0x38] sm:$0xf] %v384_v14  ;;  %387 = vst [vmem:[%s6365_s16 + $0x3c] sm:$0xf] %v386_v15 }
  0x27   : > { %389 = vst [vmem:[%s6365_s16 + $0x40] sm:$0xf] %v388_v16  ;;  %v390_v17 = vld [vmem:[%s6361_s15 + $0x88] sm:$0xf]  ;;  %v392_v18 = vld [vmem:[%s6361_s15 + $0x90] sm:$0xf] }
  0x28   : > { %v394_v19 = vld [vmem:[%s6361_s15 + $0x98] sm:$0xf]  ;;  %391 = vst [vmem:[%s6365_s16 + $0x44] sm:$0xf] %v390_v17  ;;  %393 = vst [vmem:[%s6365_s16 + $0x48] sm:$0xf] %v392_v18 }
  0x29   : > { %395 = vst [vmem:[%s6365_s16 + $0x4c] sm:$0xf] %v394_v19  ;;  %v396_v20 = vld [vmem:[%s6361_s15 + $0xa0] sm:$0xf]  ;;  %v398_v21 = vld [vmem:[%s6361_s15 + $0xa8] sm:$0xf] }
  0x2a   : > { %v400_v22 = vld [vmem:[%s6361_s15 + $0xb0] sm:$0xf]  ;;  %397 = vst [vmem:[%s6365_s16 + $0x50] sm:$0xf] %v396_v20  ;;  %399 = vst [vmem:[%s6365_s16 + $0x54] sm:$0xf] %v398_v21 }
  0x2b   : > { %401 = vst [vmem:[%s6365_s16 + $0x58] sm:$0xf] %v400_v22  ;;  %v402_v23 = vld [vmem:[%s6361_s15 + $0xb8] sm:$0xf]  ;;  %v404_v24 = vld [vmem:[%s6361_s15 + $0xc0] sm:$0xf] }
  0x2c   : > { %v406_v25 = vld [vmem:[%s6361_s15 + $0xc8] sm:$0xf]  ;;  %403 = vst [vmem:[%s6365_s16 + $0x5c] sm:$0xf] %v402_v23  ;;  %405 = vst [vmem:[%s6365_s16 + $0x60] sm:$0xf] %v404_v24 }
  0x2d   : > { %407 = vst [vmem:[%s6365_s16 + $0x64] sm:$0xf] %v406_v25  ;;  %v408_v26 = vld [vmem:[%s6361_s15 + $0xd0] sm:$0xf]  ;;  %v410_v27 = vld [vmem:[%s6361_s15 + $0xd8] sm:$0xf] }
  0x2e   : > { %v412_v28 = vld [vmem:[%s6361_s15 + $0xe0] sm:$0xf]  ;;  %409 = vst [vmem:[%s6365_s16 + $0x68] sm:$0xf] %v408_v26  ;;  %411 = vst [vmem:[%s6365_s16 + $0x6c] sm:$0xf] %v410_v27 }
  0x2f   : > { %413 = vst [vmem:[%s6365_s16 + $0x70] sm:$0xf] %v412_v28  ;;  %v414_v29 = vld [vmem:[%s6361_s15 + $0xe8] sm:$0xf]  ;;  %v416_v30 = vld [vmem:[%s6361_s15 + $0xf0] sm:$0xf] }
  0x30   : > { %v418_v31 = vld [vmem:[%s6361_s15 + $0xf8] sm:$0xf]  ;;  %415 = vst [vmem:[%s6365_s16 + $0x74] sm:$0xf] %v414_v29  ;;  %417 = vst [vmem:[%s6365_s16 + $0x78] sm:$0xf] %v416_v30 }
  0x31   : > { %419 = vst [vmem:[%s6365_s16 + $0x7c] sm:$0xf] %v418_v31 }
  0x32 PF: > { %p4994_p10 = scmp.ge.s32.totalorder %s6241_s20, 1  ;;  %p506_p11 = scmp.lt.s32.totalorder %s6241_s20, 3 }
  0x34   : > { %p507_p12 = pnand %p4994_p10, %p506_p11 }
  0x36   : > { %510 = sbr.rel (%p507_p12) target bundleno = 1609 (0x649), region = 101 }
  0x3b   : > { %v6434_v32 = vld [vmem:[%s9266_s1 + $0xf4] ss:$8 sps:$4 sm:$0xff]   ;;  %v9279_v34 = vmov 0   ;;  %v6447_v35 = vld [vmem:[%s9266_s1 + $0xf0] ss:$8 sps:$4 sm:$0xff]   ;;  %s6538_s13 = sand.u32 1, %s6233_s18  }
  0x3c   : > { %v6439_v33 = vld [vmem:[%s9266_s1 + $0x74] ss:$8 sps:$4 sm:$0xff]   ;;  %735 = vmatprep.mubr.bf16.mxu0 %v9279_v34  ;;  %908 = vmatprep.mubr.bf16.mxu1 %v9279_v34  ;;  %v6452_v36 = vld [vmem:[%s9266_s1 + $0x70] ss:$8 sps:$4 sm:$0xff]   ;;  %v6458_v37 = vld [vmem:[%s9266_s1 + $0xe4] ss:$8 sps:$4 sm:$0xff]  }
  0x3d   : > { %703 = vmatprep.subr.bf16.mxu0 %v6434_v32  ;;  %876 = vmatprep.subr.bf16.mxu1 %v6439_v33  ;;  %v6465_v38 = vld [vmem:[%s9266_s1 + $0x64] ss:$8 sps:$4 sm:$0xff]   ;;  %v6470_v39 = vld [vmem:[%s9266_s1 + $0xe0] ss:$8 sps:$4 sm:$0xff]   ;;  %v6482_v41 = vld [vmem:[%s9266_s1 + $0xd4] ss:$8 sps:$4 sm:$0xff]  }
  0x3e   : > { %704 = vmatpush1.bf16.msra.mxu0 %v6447_v35  ;;  %877 = vmatpush1.bf16.msra.mxu1 %v6452_v36  ;;  %v6476_v40 = vld [vmem:[%s9266_s1 + $0x60] ss:$8 sps:$4 sm:$0xff]   ;;  %v6487_v42 = vld [vmem:[%s9266_s1 + $0x54] ss:$8 sps:$4 sm:$0xff]   ;;  %v6492_v43 = vld [vmem:[%s9266_s1 + $0xd0] ss:$8 sps:$4 sm:$0xff]  }
  0x3f   : > { %705 = vmatprep.subr.bf16.mxu0 %v6458_v37  ;;  %878 = vmatprep.subr.bf16.mxu1 %v6465_v38  ;;  %v6497_v44 = vld [vmem:[%s9266_s1 + $0x50] ss:$8 sps:$4 sm:$0xff]   ;;  %v6504_v45 = vld [vmem:[%s9266_s1 + $0xc4] ss:$8 sps:$4 sm:$0xff]   ;;  %v6516_v47 = vld [vmem:[%s9266_s1 + $0xc0] ss:$8 sps:$4 sm:$0xff]  }
  0x40   : > { %v6511_v46 = vld [vmem:[%s9266_s1 + $0x44] ss:$8 sps:$4 sm:$0xff]   ;;  %v6523_v48 = vld [vmem:[%s9266_s1 + $0x40] ss:$8 sps:$4 sm:$0xff]   ;;  %v6528_v49 = vld [vmem:[%s9266_s1 + $0xb4] ss:$8 sps:$4 sm:$0xff]  }
  0x41   : > { %v6535_v50 = vld [vmem:[%s9266_s1 + $0x34] ss:$8 sps:$4 sm:$0xff]   ;;  %v6543_v51 = vld [vmem:[%s9266_s1 + $0xb0] ss:$8 sps:$4 sm:$0xff]   ;;  %v6555_v53 = vld [vmem:[%s9266_s1 + $0xa4] ss:$8 sps:$4 sm:$0xff]  }
  0x42   : > { %706 = vmatpush1.bf16.msra.mxu0 %v6470_v39  ;;  %879 = vmatpush1.bf16.msra.mxu1 %v6476_v40  ;;  %v6548_v52 = vld [vmem:[%s9266_s1 + $0x30] ss:$8 sps:$4 sm:$0xff]   ;;  %v6562_v54 = vld [vmem:[%s9266_s1 + $0x24] ss:$8 sps:$4 sm:$0xff]   ;;  %s4995_s12 = sshll.u32 %s6538_s13, 7  ;;  %vm6245_vm0 = vmmov 0  }
  0x43   : > { %707 = vmatprep.subr.bf16.mxu0 %v6482_v41  ;;  %880 = vmatprep.subr.bf16.mxu1 %v6487_v42  ;;  %v6568_v55 = vld [vmem:[%s9266_s1 + $0xa0] ss:$8 sps:$4 sm:$0xff]   ;;  %v6580_v57 = vld [vmem:[%s9266_s1 + $0x94] ss:$8 sps:$4 sm:$0xff]   ;;  %s6589_s14 = scalar_lea.vmem [#allocation2], %s4995_s12  ;;  %s4996_s24 = sshll.u32 %s6538_s13, 3 }
  0x44   : > { %v6575_v56 = vld [vmem:[%s9266_s1 + $0x20] ss:$8 sps:$4 sm:$0xff]   ;;  %v6587_v58 = vld [vmem:[%s9266_s1 + $0x14] ss:$8 sps:$4 sm:$0xff]   ;;  %v6594_v59 = vld [vmem:[%s9266_s1 + $0x90] ss:$8 sps:$4 sm:$0xff]  }
  0x45   : > { %v6601_v60 = vld [vmem:[%s9266_s1 + $0x10] ss:$8 sps:$4 sm:$0xff]   ;;  %v6608_v61 = vld [vmem:[%s9266_s1 + $0x84] ss:$8 sps:$4 sm:$0xff]   ;;  %v6618_v63 = vld [vmem:[%s9266_s1 + $0x80] ss:$8 sps:$4 sm:$0xff]  }
  0x46   : > { %708 = vmatpush1.bf16.msra.mxu0 %v6492_v43  ;;  %881 = vmatpush1.bf16.msra.mxu1 %v6497_v44  ;;  %v6613_v62 = vld [vmem:[%s9266_s1 + $0x4] ss:$8 sps:$4 sm:$0xff]   ;;  %v6625_v0 = vld [vmem:[%s9266_s1] ss:$8 sps:$4 sm:$0xff]   ;;  %v6630_v1 = vld [vmem:[%s9266_s1 + $0x174] ss:$8 sps:$4 sm:$0xff]  }
  0x47   : > { %709 = vmatprep.subr.bf16.mxu0 %v6504_v45  ;;  %882 = vmatprep.subr.bf16.mxu1 %v6511_v46  ;;  %v6635_v2 = vld [vmem:[%s6589_s14 + $0x20] sm:$0xff]   ;;  %v6640_v3 = vld [vmem:[%s9266_s1 + $0x1f4] ss:$8 sps:$4 sm:$0xff]   ;;  %v6646_v5 = vld [vmem:[%s9266_s1 + $0x170] ss:$8 sps:$4 sm:$0xff]   ;;  %s5492_s29 = sshll.u32 %s4988_s21, 7 }
  0x48   : > { %v5789_v4 = vld [vmem:[%s6589_s14] sm:$0xff]   ;;  %v6653_v6 = vld [vmem:[%s9266_s1 + $0x1f0] ss:$8 sps:$4 sm:$0xff]   ;;  %v6683_v11 = vld [vmem:[%s9266_s1 + $0x154] ss:$8 sps:$4 sm:$0xff]   ;;  %s551_s30 = scalar_lea.vmem [#allocation3], %s4996_s24  ;;  %s9222_s22 = scalar_lea.hbm %s9276_s11, %s5492_s29 }
  0x49   : > { %v6658_v7 = vld [vmem:[%s9266_s1 + $0x164] ss:$8 sps:$4 sm:$0xff]   ;;  %v6671_v9 = vld [vmem:[%s9266_s1 + $0x160] ss:$8 sps:$4 sm:$0xff]   ;;  %v6693_v13 = vld [vmem:[%s9266_s1 + $0x1d4] ss:$8 sps:$4 sm:$0xff]  }
  0x4a   : > { %710 = vmatpush1.bf16.msra.mxu0 %v6516_v47  ;;  %883 = vmatpush1.bf16.msra.mxu1 %v6523_v48  ;;  %v6665_v8 = vld [vmem:[%s9266_s1 + $0x1e4] ss:$8 sps:$4 sm:$0xff]   ;;  %v6676_v10 = vld [vmem:[%s9266_s1 + $0x1e0] ss:$8 sps:$4 sm:$0xff]   ;;  %v6701_v15 = vld [vmem:[%s9266_s1 + $0x150] ss:$8 sps:$4 sm:$0xff]  }
  0x4b   : > { %711 = vmatprep.subr.bf16.mxu0 %v6528_v49  ;;  %884 = vmatprep.subr.bf16.mxu1 %v6535_v50  ;;  %v6688_v12 = vld [vmem:[%s6589_s14 + $0x28] sm:$0xff]   ;;  %v6708_v16 = vld [vmem:[%s9266_s1 + $0x1d0] ss:$8 sps:$4 sm:$0xff]   ;;  %v6738_v21 = vld [vmem:[%s9266_s1 + $0x134] ss:$8 sps:$4 sm:$0xff]   ;;  %s4924_s15 = sshll.u32 %s551_s30, 4  ;;  %s9224_s15 = int_to_ptr.vmem [resolvable:$true] %s4924_s15 }
  0x4c   : > { %9369 = vst [vmem:[#allocation6_spill] sm:$0xff] %v6688_v12  ;;  %v5803_v14 = vld [vmem:[%s6589_s14 + $0x8] sm:$0xff]   ;;  %9370 = vst [vmem:[#allocation7_spill] sm:$0xff] %v6708_v16  ;;  %v6745_v22 = vld [vmem:[%s9266_s1 + $0x1b4] ss:$8 sps:$4 sm:$0xff]   ;;  %s4911_s12 = scalar_lea.sflag [#allocation4], %s6538_s13 }
  0x4d   : > { %v6713_v17 = vld [vmem:[%s9266_s1 + $0x144] ss:$8 sps:$4 sm:$0xff]   ;;  %v6726_v19 = vld [vmem:[%s9266_s1 + $0x140] ss:$8 sps:$4 sm:$0xff]   ;;  %9373 = vst [vmem:[#allocation10_spill] sm:$0xff] %v6745_v22  ;;  %v6750_v23 = vld [vmem:[%s6589_s14 + $0x30] sm:$0xff]  }
  0x4e   : > { %712 = vmatpush1.bf16.msra.mxu0 %v6543_v51  ;;  %885 = vmatpush1.bf16.msra.mxu1 %v6548_v52  ;;  %v6720_v18 = vld [vmem:[%s9266_s1 + $0x1c4] ss:$8 sps:$4 sm:$0xff]   ;;  %v6731_v20 = vld [vmem:[%s9266_s1 + $0x1c0] ss:$8 sps:$4 sm:$0xff]   ;;  %9374 = vst [vmem:[#allocation11_spill] sm:$0xff] %v6750_v23  ;;  %v5817_v24 = vld [vmem:[%s6589_s14 + $0x10] sm:$0xff]  }
  0x4f   : > { %713 = vmatprep.subr.bf16.mxu0 %v6555_v53  ;;  %886 = vmatprep.subr.bf16.mxu1 %v6562_v54  ;;  %9371 = vst [vmem:[#allocation8_spill] sm:$0xff] %v6720_v18  ;;  %9372 = vst [vmem:[#allocation9_spill] sm:$0xff] %v6731_v20  ;;  %v6756_v25 = vld [vmem:[%s9266_s1 + $0x130] ss:$8 sps:$4 sm:$0xff]   ;;  %v6770_v27 = vld [vmem:[%s9266_s1 + $0x124] ss:$8 sps:$4 sm:$0xff]  }
  0x50   : > { %v6763_v26 = vld [vmem:[%s9266_s1 + $0x1b0] ss:$8 sps:$4 sm:$0xff]   ;;  %v6775_v28 = vld [vmem:[%s9266_s1 + $0x1a4] ss:$8 sps:$4 sm:$0xff]   ;;  %v6780_v29 = vld [vmem:[%s9266_s1 + $0x120] ss:$8 sps:$4 sm:$0xff]  }
  0x51   : > { %9375 = vst [vmem:[#allocation12_spill] sm:$0xff] %v6763_v26  ;;  %9376 = vst [vmem:[#allocation13_spill] sm:$0xff] %v6775_v28  ;;  %v6786_v30 = vld [vmem:[%s9266_s1 + $0x1a0] ss:$8 sps:$4 sm:$0xff]   ;;  %v6793_v31 = vld [vmem:[%s9266_s1 + $0x114] ss:$8 sps:$4 sm:$0xff]  }
  0x52   : > { %714 = vmatpush1.bf16.msra.mxu0 %v6568_v55  ;;  %887 = vmatpush1.bf16.msra.mxu1 %v6575_v56  ;;  %9377 = vst [vmem:[#allocation14_spill] sm:$0xff] %v6786_v30  ;;  %s6181_s25 = scalar_lea.vmem %s9224_s15, 128  ;;  %s6246_s21 = smov [#allocation3]  }
  0x53   : > { %715 = vmatprep.subr.bf16.mxu0 %v6580_v57  ;;  %888 = vmatprep.subr.bf16.mxu1 %v6587_v58  ;;  %p6182_p13 = scmp.ne.s32.totalorder %s9224_s15, %s6181_s25  ;;  %s6185_s24 = sshll.u32 %s6246_s21, 4  ;;  %s6186_s24 = int_to_ptr.vmem [resolvable:$false] %s6185_s24 }
  0x54   : > { %s6187_s16 = scalar_lea.vmem %s6186_s24, 256  ;;  %p6188_p2 = scmp.lt.s32.totalorder %s9224_s15, %s6186_s24 }
  0x55   : > { %p6183_p0 = pnand %p6182_p13, %p6345_p6  ;;  %p6189_p3 = scmp.lt.s32.totalorder %s6187_s16, %s6181_s25 }
  0x56   : > { %716 = vmatpush1.bf16.msra.mxu0 %v6594_v59  ;;  %889 = vmatpush1.bf16.msra.mxu1 %v6601_v60 }
  0x57   : > { %717 = vmatprep.subr.bf16.mxu0 %v6608_v61  ;;  %890 = vmatprep.subr.bf16.mxu1 %v6613_v62  ;;  %p6184_p1 = pneg %p6183_p0  ;;  %p6190_p4 = por %p6189_p3, %p6188_p2 }
  0x59   : > { %p6191_p5 = pnand %p6190_p4, %p6184_p1 }
  0x5a   : > { %718 = vmatpush1.bf16.msra.mxu0 %v6618_v63  ;;  %891 = vmatpush1.bf16.msra.mxu1 %v6625_v0 }
  0x5b   : > { %1074 = vmatprep.subr.bf16.mxu0 %v6630_v1  ;;  %1286 = vmatprep.subr.bf16.mxu1 %v6640_v3 }
  0x5d   : > { %736 = vmatmul.mubr.bf16.vlgmr.msra.gmra.mxu0 %v6635_v2  ;;  %909 = vmatmul.mubr.bf16.vlgmr.msra.gmra.mxu1 %v5789_v4  ;;  %v6800_v4 = vld [vmem:[%s9266_s1 + $0x194] ss:$8 sps:$4 sm:$0xff]  }
  0x5e   : > { %1075 = vmatpush1.bf16.msra.mxu0 %v6646_v5  ;;  %1287 = vmatpush1.bf16.msra.mxu1 %v6653_v6  ;;  %9378 = vst [vmem:[#allocation15_spill] sm:$0xff] %v6800_v4 }
  0x5f   : > { %1076 = vmatprep.subr.bf16.mxu0 %v6658_v7  ;;  %1288 = vmatprep.subr.bf16.mxu1 %v6665_v8 }
  0x60   : > { %745 = vmatprep.mubr.bf16.mxu0 %v9279_v34  ;;  %918 = vmatprep.mubr.bf16.mxu1 %v9279_v34 }
  0x62   : > { %1077 = vmatpush1.bf16.msra.mxu0 %v6671_v9  ;;  %1289 = vmatpush1.bf16.msra.mxu1 %v6676_v10 }
  0x63   : > { %1078 = vmatprep.subr.bf16.mxu0 %v6683_v11  ;;  %1290 = vmatprep.subr.bf16.mxu1 %v6693_v13 }
  0x65   : > { %746 = vmatmul.mubr.bf16.gmra.mxu0 %v6688_v12  ;;  %919 = vmatmul.mubr.bf16.gmra.mxu1 %v5803_v14  ;;  %v6805_v14 = vld [vmem:[%s6589_s14 + $0x38] ss:$0 sps:$4 sm:$0xff]   ;;  %v6915_v12 = vld [vmem:[%s9266_s1 + $0x240] ss:$8 sps:$4 sm:$0xff]  }
  0x66   : > { %1079 = vmatpush1.bf16.msra.mxu0 %v6701_v15  ;;  %1291 = vmatpush1.bf16.msra.mxu1 %v6708_v16  ;;  %9379 = vst [vmem:[#allocation16_spill] sm:$0xff] %v6805_v14  ;;  %v6910_v16 = vld [vmem:[%s9266_s1 + $0x244] ss:$8 sps:$4 sm:$0xff]  }
  0x67   : > { %1080 = vmatprep.subr.bf16.mxu0 %v6713_v17  ;;  %1292 = vmatprep.subr.bf16.mxu1 %v6720_v18  ;;  %v6893_v18 = vld [vmem:[%s6589_s14 + $0x48] sm:$0xff]   ;;  %9386 = vst [vmem:[#allocation22_spill] sm:$0xff] %v6910_v16 }
  0x68   : > { %755 = vmatprep.mubr.bf16.mxu0 %v9279_v34  ;;  %928 = vmatprep.mubr.bf16.mxu1 %v9279_v34 }
  0x6a   : > { %1081 = vmatpush1.bf16.msra.mxu0 %v6726_v19  ;;  %1293 = vmatpush1.bf16.msra.mxu1 %v6731_v20  ;;  %v6872_v20 = vld [vmem:[%s9266_s1 + $0x264] ss:$8 sps:$4 sm:$0xff]  }
  0x6b   : > { %1082 = vmatprep.subr.bf16.mxu0 %v6738_v21  ;;  %1294 = vmatprep.subr.bf16.mxu1 %v6745_v22  ;;  %v6855_v22 = vld [vmem:[%s6589_s14 + $0x40] sm:$0xff]  }
  0x6d   : > { %756 = vmatmul.mubr.bf16.gmra.mxu0 %v6750_v23  ;;  %929 = vmatmul.mubr.bf16.gmra.mxu1 %v5817_v24  ;;  %v5831_v24 = vld [vmem:[%s6589_s14 + $0x18] ss:$0 sps:$4 sm:$0xff]   ;;  %v6836_v23 = vld [vmem:[%s9266_s1 + $0x100] ss:$8 sps:$4 sm:$0xff]  }
  0x6e   : > { %1083 = vmatpush1.bf16.msra.mxu0 %v6756_v25  ;;  %1295 = vmatpush1.bf16.msra.mxu1 %v6763_v26  ;;  %v6811_v26 = vld [vmem:[%s9266_s1 + $0x110] ss:$8 sps:$4 sm:$0xff]  }
  0x6f   : > { %1084 = vmatprep.subr.bf16.mxu0 %v6770_v27  ;;  %1296 = vmatprep.subr.bf16.mxu1 %v6775_v28  ;;  %v6818_v28 = vld [vmem:[%s9266_s1 + $0x190] ss:$8 sps:$4 sm:$0xff]  }
  0x70   : > { %765 = vmatprep.mubr.bf16.mxu0 %v9279_v34  ;;  %938 = vmatprep.mubr.bf16.mxu1 %v9279_v34  ;;  %9380 = vst [vmem:[#allocation17_spill] sm:$0xff] %v6818_v28  ;;  %v6825_v34 = vld [vmem:[%s9266_s1 + $0x104] ss:$8 sps:$4 sm:$0xff]  }
  0x72   : > { %1085 = vmatpush1.bf16.msra.mxu0 %v6780_v29  ;;  %1297 = vmatpush1.bf16.msra.mxu1 %v6786_v30  ;;  %v6830_v30 = vld [vmem:[%s9266_s1 + $0x184] ss:$8 sps:$4 sm:$0xff]  }
  0x73   : > { %1086 = vmatprep.subr.bf16.mxu0 %v6793_v31  ;;  %1298 = vmatprep.subr.bf16.mxu1 %v6800_v4  ;;  %9381 = vst [vmem:[#allocation18_spill] sm:$0xff] %v6830_v30  ;;  %v6843_v4 = vld [vmem:[%s9266_s1 + $0x180] ss:$8 sps:$4 sm:$0xff]  }
  0x74   : > { %9382 = vst [vmem:[#allocation19_spill] sm:$0xff] %v6843_v4 }
  0x75   : > { %766 = vmatmul.mubr.bf16.gmra.mxu0 %v6805_v14  ;;  %939 = vmatmul.mubr.bf16.gmra.mxu1 %v5831_v24  ;;  %v6850_v24 = vld [vmem:[%s9266_s1 + $0x274] ss:$8 sps:$4 sm:$0xff]   ;;  %v9383_v14 = vmov 0  }
  0x76   : > { %1087 = vmatpush1.bf16.msra.mxu0 %v6811_v26  ;;  %1299 = vmatpush1.bf16.msra.mxu1 %v6818_v28  ;;  %v6858_v28 = vld [vmem:[%s6589_s14 + $0x60] sm:$0xff]  }
  0x77   : > { %1088 = vmatprep.subr.bf16.mxu0 %v6825_v34  ;;  %1300 = vmatprep.subr.bf16.mxu1 %v6830_v30  ;;  %v6865_v30 = vld [vmem:[%s9266_s1 + $0x270] ss:$8 sps:$4 sm:$0xff]  }
  0x78   : > { %1106 = vmatprep.mubr.bf16.mxu0 %v9383_v14  ;;  %1318 = vmatprep.mubr.bf16.mxu1 %v9383_v14 }
  0x7a   : > { %1089 = vmatpush1.bf16.msra.mxu0 %v6836_v23  ;;  %1301 = vmatpush1.bf16.msra.mxu1 %v6843_v4  ;;  %v6881_v4 = vld [vmem:[%s9266_s1 + $0x260] ss:$8 sps:$4 sm:$0xff]  }
  0x7b   : > { %1498 = vmatprep.subr.bf16.mxu0 %v6850_v24  ;;  %1590 = vmatprep.subr.bf16.mxu1 %v6434_v32  ;;  %v6888_v32 = vld [vmem:[%s9266_s1 + $0x254] ss:$8 sps:$4 sm:$0xff]  }
  0x7c   : > { %9384 = vst [vmem:[#allocation20_spill] sm:$0xff] %v6888_v32 }
  0x7d   : > { %1107 = vmatmul.mubr.bf16.vlgmr.msra.gmra.mxu0 %v6855_v22  ;;  %1319 = vmatmul.mubr.bf16.vlgmr.msra.gmra.mxu1 %v6858_v28 }
  0x7e   : > { %1499 = vmatpush1.bf16.msra.mxu0 %v6865_v30  ;;  %1591 = vmatpush1.bf16.msra.mxu1 %v6447_v35  ;;  %v6896_v35 = vld [vmem:[%s6589_s14 + $0x68] sm:$0xff]  }
  0x7f   : > { %1500 = vmatprep.subr.bf16.mxu0 %v6872_v20  ;;  %1592 = vmatprep.subr.bf16.mxu1 %v6458_v37  ;;  %v6903_v37 = vld [vmem:[%s9266_s1 + $0x250] ss:$8 sps:$4 sm:$0xff]  }
  0x80   : > { %1116 = vmatprep.mubr.bf16.mxu0 %v9383_v14  ;;  %1328 = vmatprep.mubr.bf16.mxu1 %v9383_v14  ;;  %9385 = vst [vmem:[#allocation21_spill] sm:$0xff] %v6903_v37 }
  0x82   : > { %1501 = vmatpush1.bf16.msra.mxu0 %v6881_v4  ;;  %1593 = vmatpush1.bf16.msra.mxu1 %v6470_v39  ;;  %v6922_v39 = vld [vmem:[%s9266_s1 + $0x234] ss:$8 sps:$4 sm:$0xff]  }
  0x83   : > { %1502 = vmatprep.subr.bf16.mxu0 %v6888_v32  ;;  %1594 = vmatprep.subr.bf16.mxu1 %v6482_v41  ;;  %v6929_v41 = vld [vmem:[%s6589_s14 + $0x50] sm:$0xff]  }
  0x84   : > { %v6932_v32 = vld [vmem:[%s6589_s14 + $0x70] sm:$0xff]  }
  0x85   : > { %1117 = vmatmul.mubr.bf16.gmra.mxu0 %v6893_v18  ;;  %1329 = vmatmul.mubr.bf16.gmra.mxu1 %v6896_v35  ;;  %9387 = vst [vmem:[#allocation23_spill] sm:$0xff] %v6932_v32 }
  0x86   : > { %1503 = vmatpush1.bf16.msra.mxu0 %v6903_v37  ;;  %1595 = vmatpush1.bf16.msra.mxu1 %v6492_v43  ;;  %v6939_v37 = vld [vmem:[%s9266_s1 + $0x230] ss:$8 sps:$4 sm:$0xff]   ;;  %v6944_v43 = vld [vmem:[%s9266_s1 + $0x224] ss:$8 sps:$4 sm:$0xff]  }
  0x87   : > { %1504 = vmatprep.subr.bf16.mxu0 %v6910_v16  ;;  %1596 = vmatprep.subr.bf16.mxu1 %v6504_v45  ;;  %v6953_v45 = vld [vmem:[%s9266_s1 + $0x220] ss:$8 sps:$4 sm:$0xff]   ;;  %v6960_v16 = vld [vmem:[%s9266_s1 + $0x214] ss:$8 sps:$4 sm:$0xff]  }
  0x88   : > { %1126 = vmatprep.mubr.bf16.mxu0 %v9383_v14  ;;  %1338 = vmatprep.mubr.bf16.mxu1 %v9383_v14 }
  0x8a   : > { %1505 = vmatpush1.bf16.msra.mxu0 %v6915_v12  ;;  %1597 = vmatpush1.bf16.msra.mxu1 %v6516_v47  ;;  %v6967_v47 = vld [vmem:[%s6589_s14 + $0x58] ss:$0 sps:$4 sm:$0xff]  }
  0x8b   : > { %1506 = vmatprep.subr.bf16.mxu0 %v6922_v39  ;;  %1598 = vmatprep.subr.bf16.mxu1 %v6528_v49  ;;  %v6970_v49 = vld [vmem:[%s6589_s14 + $0x78] ss:$0 sps:$4 sm:$0xff]  }
  0x8d   : > { %1127 = vmatmul.mubr.bf16.gmra.mxu0 %v6929_v41  ;;  %1339 = vmatmul.mubr.bf16.gmra.mxu1 %v6932_v32  ;;  %v6977_v32 = vld [vmem:[%s9266_s1 + $0x210] ss:$8 sps:$4 sm:$0xff]  }
  0x8e   : > { %1507 = vmatpush1.bf16.msra.mxu0 %v6939_v37  ;;  %1599 = vmatpush1.bf16.msra.mxu1 %v6543_v51  ;;  %v6982_v51 = vld [vmem:[%s9266_s1 + $0x204] ss:$8 sps:$4 sm:$0xff]  }
  0x8f   : > { %1508 = vmatprep.subr.bf16.mxu0 %v6944_v43  ;;  %1600 = vmatprep.subr.bf16.mxu1 %v6555_v53  ;;  %v6991_v53 = vld [vmem:[%s9266_s1 + $0x200] ss:$8 sps:$4 sm:$0xff]  }
  0x90   : > { %1136 = vmatprep.mubr.bf16.mxu0 %v9383_v14  ;;  %1348 = vmatprep.mubr.bf16.mxu1 %v9383_v14 }
  0x92   : > { %1509 = vmatpush1.bf16.msra.mxu0 %v6953_v45  ;;  %1601 = vmatpush1.bf16.msra.mxu1 %v6568_v55  ;;  %v7000_v55 = vld [vmem:[%s6589_s14 + $0x4] sm:$0xff]  }
  0x93   : > { %1510 = vmatprep.subr.bf16.mxu0 %v6960_v16  ;;  %1602 = vmatprep.subr.bf16.mxu1 %v6580_v57  ;;  %v7015_v57 = vld [vmem:[%s6589_s14 + $0xc] sm:$0xff]  }
  0x95   : > { %1137 = vmatmul.mubr.bf16.gmra.mxu0 %v6967_v47  ;;  %1349 = vmatmul.mubr.bf16.gmra.mxu1 %v6970_v49 }
  0x96   : > { %1511 = vmatpush1.bf16.msra.mxu0 %v6977_v32  ;;  %1603 = vmatpush1.bf16.msra.mxu1 %v6594_v59  ;;  %v9400_v59 = vld [vmem:[#allocation14_spill] sm:$0xff] }
  0x97   : > { %1512 = vmatprep.subr.bf16.mxu0 %v6982_v51  ;;  %1604 = vmatprep.subr.bf16.mxu1 %v6608_v61  ;;  %v9402_v61 = vld [vmem:[#allocation16_spill] sm:$0xff] }
  0x98   : > { %1530 = vmatprep.mubr.bf16.mxu0 %v9383_v14  ;;  %1622 = vmatprep.mubr.bf16.mxu1 %v9383_v14 }
  0x9a   : > { %1513 = vmatpush1.bf16.msra.mxu0 %v6991_v53  ;;  %1605 = vmatpush1.bf16.msra.mxu1 %v6618_v63  ;;  %v9404_v63 = vld [vmem:[#allocation18_spill] sm:$0xff] }
  0x9b   : > { %1661 = vmatprep.subr.bf16.mxu0 %v6439_v33  ;;  %1732 = vmatprep.subr.bf16.mxu1 %v6630_v1  ;;  %v7030_v33 = vld [vmem:[%s6589_s14 + $0x14] sm:$0xff]  }
  0x9c   : > { %v9405_v1 = vld [vmem:[#allocation19_spill] sm:$0xff] }
  0x9d   : > { %1531 = vmatmul.mubr.bf16.vlgmr.msra.gmra.mxu0 %v7000_v55  ;;  %1623 = vmatmul.mubr.bf16.vlgmr.msra.gmra.mxu1 %v6855_v22 }
  0x9e   : > { %1662 = vmatpush1.bf16.msra.mxu0 %v6452_v36  ;;  %1733 = vmatpush1.bf16.msra.mxu1 %v6646_v5  ;;  %v7045_v36 = vld [vmem:[%s6589_s14 + $0x1c] ss:$0 sps:$4 sm:$0xff]   ;;  %v7131_v5 = vld [vmem:[%s9266_s1 + $0xf0] ss:$8 sps:$4 sm:$0xff]  }
  0x9f   : > { %1663 = vmatprep.subr.bf16.mxu0 %v6465_v38  ;;  %1734 = vmatprep.subr.bf16.mxu1 %v6658_v7  ;;  %v9389_v38 = vld [vmem:[#allocation6_spill] sm:$0xff]  ;;  %v7143_v7 = vld [vmem:[%s9266_s1 + $0xe4] ss:$8 sps:$4 sm:$0xff]  }
  0xa0   : > { %1540 = vmatprep.mubr.bf16.mxu0 %v9383_v14  ;;  %1632 = vmatprep.mubr.bf16.mxu1 %v9383_v14 }
  0xa2   : > { %1664 = vmatpush1.bf16.msra.mxu0 %v6476_v40  ;;  %1735 = vmatpush1.bf16.msra.mxu1 %v6671_v9  ;;  %v9390_v40 = vld [vmem:[#allocation7_spill] sm:$0xff]  ;;  %v7155_v9 = vld [vmem:[%s6589_s14 + $0x2c] sm:$0xff]  }
  0xa3   : > { %1665 = vmatprep.subr.bf16.mxu0 %v6487_v42  ;;  %1736 = vmatprep.subr.bf16.mxu1 %v6683_v11  ;;  %v9391_v42 = vld [vmem:[#allocation21_spill] sm:$0xff] }
  0xa4   : > { %v7166_v11 = vld [vmem:[%s9266_s1 + $0x60] ss:$8 sps:$4 sm:$0xff]  }
  0xa5   : > { %1541 = vmatmul.mubr.bf16.gmra.mxu0 %v7015_v57  ;;  %1633 = vmatmul.mubr.bf16.gmra.mxu1 %v6893_v18 }
  0xa6   : > { %1666 = vmatpush1.bf16.msra.mxu0 %v6497_v44  ;;  %1737 = vmatpush1.bf16.msra.mxu1 %v6701_v15  ;;  %v9392_v44 = vld [vmem:[#allocation8_spill] sm:$0xff]  ;;  %v7178_v15 = vld [vmem:[%s9266_s1 + $0x54] ss:$8 sps:$4 sm:$0xff]  }
  0xa7   : > { %1667 = vmatprep.subr.bf16.mxu0 %v6511_v46  ;;  %1738 = vmatprep.subr.bf16.mxu1 %v6713_v17  ;;  %v9393_v46 = vld [vmem:[#allocation22_spill] sm:$0xff] }
  0xa8   : > { %1550 = vmatprep.mubr.bf16.mxu0 %v9383_v14  ;;  %1642 = vmatprep.mubr.bf16.mxu1 %v9383_v14  ;;  %v7186_v17 = vld [vmem:[%s9266_s1 + $0xd0] ss:$8 sps:$4 sm:$0xff]  }
  0xaa   : > { %1668 = vmatpush1.bf16.msra.mxu0 %v6523_v48  ;;  %1739 = vmatpush1.bf16.msra.mxu1 %v6726_v19  ;;  %v9394_v48 = vld [vmem:[#allocation9_spill] sm:$0xff]  ;;  %v7192_v19 = vld [vmem:[%s9266_s1 + $0x50] ss:$8 sps:$4 sm:$0xff]  }
  0xab   : > { %1669 = vmatprep.subr.bf16.mxu0 %v6535_v50  ;;  %1740 = vmatprep.subr.bf16.mxu1 %v6738_v21  ;;  %v9395_v50 = vld [vmem:[#allocation10_spill] sm:$0xff]  ;;  %v7198_v21 = vld [vmem:[%s9266_s1 + $0xc4] ss:$8 sps:$4 sm:$0xff]  }
  0xad   : > { %1551 = vmatmul.mubr.bf16.gmra.mxu0 %v7030_v33  ;;  %1643 = vmatmul.mubr.bf16.gmra.mxu1 %v6929_v41 }
  0xae   : > { %1670 = vmatpush1.bf16.msra.mxu0 %v6548_v52  ;;  %1741 = vmatpush1.bf16.msra.mxu1 %v6756_v25  ;;  %v9396_v52 = vld [vmem:[#allocation11_spill] sm:$0xff] }
  0xaf   : > { %1671 = vmatprep.subr.bf16.mxu0 %v6562_v54  ;;  %1742 = vmatprep.subr.bf16.mxu1 %v6770_v27  ;;  %v9397_v54 = vld [vmem:[#allocation23_spill] sm:$0xff]  ;;  %v7221_v27 = vld [vmem:[%s9266_s1 + $0x40] ss:$8 sps:$4 sm:$0xff]  }
  0xb0   : > { %1560 = vmatprep.mubr.bf16.mxu0 %v9383_v14  ;;  %1652 = vmatprep.mubr.bf16.mxu1 %v9383_v14  ;;  %v7210_v25 = vld [vmem:[%s6589_s14 + $0x34] sm:$0xff]  }
  0xb2   : > { %1672 = vmatpush1.bf16.msra.mxu0 %v6575_v56  ;;  %1743 = vmatpush1.bf16.msra.mxu1 %v6780_v29  ;;  %v9398_v56 = vld [vmem:[#allocation12_spill] sm:$0xff]  ;;  %v7227_v29 = vld [vmem:[%s9266_s1 + $0xb4] ss:$8 sps:$4 sm:$0xff]  }
  0xb3   : > { %1673 = vmatprep.subr.bf16.mxu0 %v6587_v58  ;;  %1744 = vmatprep.subr.bf16.mxu1 %v6793_v31  ;;  %v9399_v58 = vld [vmem:[#allocation13_spill] sm:$0xff]  ;;  %v7233_v31 = vld [vmem:[%s9266_s1 + $0x34] ss:$8 sps:$4 sm:$0xff]  }
  0xb4   : > { %9407 = vst [vmem:[#allocation6_spill] sm:$0xff] %v7233_v31 }
  0xb5   : > { %1561 = vmatmul.mubr.bf16.gmra.mxu0 %v7045_v36  ;;  %1653 = vmatmul.mubr.bf16.gmra.mxu1 %v6967_v47 }
  0xb6   : > { %1674 = vmatpush1.bf16.msra.mxu0 %v6601_v60  ;;  %1745 = vmatpush1.bf16.msra.mxu1 %v6811_v26  ;;  %v9401_v60 = vld [vmem:[#allocation15_spill] sm:$0xff]  ;;  %v7215_v26 = vld [vmem:[%s9266_s1 + $0xc0] ss:$8 sps:$4 sm:$0xff]  }
  0xb7   : > { %1675 = vmatprep.subr.bf16.mxu0 %v6613_v62  ;;  %1746 = vmatprep.subr.bf16.mxu1 %v6825_v34  ;;  %v9388_v34 = vld [vmem:[#allocation20_spill] sm:$0xff]  ;;  %v9403_v62 = vld [vmem:[#allocation17_spill] sm:$0xff] }
  0xb8   : > { %1693 = vmatprep.mubr.bf16.mxu0 %v9383_v14  ;;  %1764 = vmatprep.mubr.bf16.mxu1 %v9383_v14  ;;  %9406 = vst [vmem:[#allocation20_spill] sm:$0xff] %v7221_v27 }
  0xba   : > { %1676 = vmatpush1.bf16.msra.mxu0 %v6625_v0  ;;  %1747 = vmatpush1.bf16.msra.mxu1 %v6836_v23  ;;  %v7110_v0 = vld [vmem:[%s6589_s14 + $0x24] sm:$0xff]  }
  0xbb   : > { %1817 = vmatprep.subr.bf16.mxu0 %v6640_v3  ;;  %1932 = vmatprep.subr.bf16.mxu1 %v6850_v24  ;;  %v7123_v3 = vld [vmem:[%s9266_s1 + $0x74] ss:$8 sps:$4 sm:$0xff]   ;;  %v7204_v23 = vld [vmem:[%s9266_s1 + $0x44] ss:$8 sps:$4 sm:$0xff]  }
  0xbd   : > { %1694 = vmatmul.mubr.bf16.vlgmr.msra.gmra.mxu0 %v6635_v2  ;;  %1765 = vmatmul.mubr.bf16.vlgmr.msra.gmra.mxu1 %v6858_v28  ;;  %v7117_v2 = vld [vmem:[%s9266_s1 + $0xf4] ss:$8 sps:$4 sm:$0xff]  }
  0xbe   : > { %1818 = vmatpush1.bf16.msra.mxu0 %v6653_v6  ;;  %1933 = vmatpush1.bf16.msra.mxu1 %v6865_v30  ;;  %v7137_v6 = vld [vmem:[%s9266_s1 + $0x70] ss:$8 sps:$4 sm:$0xff]  }
  0xbf   : > { %1819 = vmatprep.subr.bf16.mxu0 %v6665_v8  ;;  %1934 = vmatprep.subr.bf16.mxu1 %v6872_v20  ;;  %v7149_v8 = vld [vmem:[%s9266_s1 + $0x64] ss:$8 sps:$4 sm:$0xff]  }
  0xc0   : > { %1703 = vmatprep.mubr.bf16.mxu0 %v9383_v14  ;;  %1774 = vmatprep.mubr.bf16.mxu1 %v9383_v14 }
  0xc2   : > { %1820 = vmatpush1.bf16.msra.mxu0 %v6676_v10  ;;  %1935 = vmatpush1.bf16.msra.mxu1 %v6881_v4  ;;  %v7160_v10 = vld [vmem:[%s9266_s1 + $0xe0] ss:$8 sps:$4 sm:$0xff]  }
  0xc3   : > { %1821 = vmatprep.subr.bf16.mxu0 %v6693_v13  ;;  %1936 = vmatprep.subr.bf16.mxu1 %v9388_v34  ;;  %v7172_v13 = vld [vmem:[%s9266_s1 + $0xd4] ss:$8 sps:$4 sm:$0xff]  }
  0xc5   : > { %1704 = vmatmul.mubr.bf16.gmra.mxu0 %v9389_v38  ;;  %1775 = vmatmul.mubr.bf16.gmra.mxu1 %v6896_v35  ;;  %v7241_v38 = vld [vmem:[%s9266_s1 + $0xb0] ss:$8 sps:$4 sm:$0xff]  }
  0xc6   : > { %1822 = vmatpush1.bf16.msra.mxu0 %v9390_v40  ;;  %1937 = vmatpush1.bf16.msra.mxu1 %v9391_v42  ;;  %v7247_v40 = vld [vmem:[%s9266_s1 + $0x30] ss:$8 sps:$4 sm:$0xff]  }
  0xc7   : > { %1823 = vmatprep.subr.bf16.mxu0 %v9392_v44  ;;  %1938 = vmatprep.subr.bf16.mxu1 %v9393_v46  ;;  %9408 = vst [vmem:[#allocation7_spill] sm:$0xff] %v7247_v40  ;;  %v7253_v44 = vld [vmem:[%s9266_s1 + $0xa4] ss:$8 sps:$4 sm:$0xff]  }
  0xc8   : > { %1713 = vmatprep.mubr.bf16.mxu0 %v9383_v14  ;;  %1784 = vmatprep.mubr.bf16.mxu1 %v9383_v14 }
  0xca   : > { %1824 = vmatpush1.bf16.msra.mxu0 %v9394_v48  ;;  %1939 = vmatpush1.bf16.msra.mxu1 %v6915_v12  ;;  %v7259_v48 = vld [vmem:[%s9266_s1 + $0x24] ss:$8 sps:$4 sm:$0xff]  }
  0xcb   : > { %1825 = vmatprep.subr.bf16.mxu0 %v9395_v50  ;;  %1940 = vmatprep.subr.bf16.mxu1 %v6922_v39  ;;  %9409 = vst [vmem:[#allocation21_spill] sm:$0xff] %v7259_v48  ;;  %v7265_v50 = vld [vmem:[%s6589_s14 + $0x3c] ss:$0 sps:$4 sm:$0xff]  }
  0xcd   : > { %1714 = vmatmul.mubr.bf16.gmra.mxu0 %v9396_v52  ;;  %1785 = vmatmul.mubr.bf16.gmra.mxu1 %v9397_v54  ;;  %v7270_v52 = vld [vmem:[%s9266_s1 + $0xa0] ss:$8 sps:$4 sm:$0xff]  }
  0xce   : > { %1826 = vmatpush1.bf16.msra.mxu0 %v9398_v56  ;;  %1941 = vmatpush1.bf16.msra.mxu1 %v6939_v37  ;;  %v7276_v56 = vld [vmem:[%s9266_s1 + $0x20] ss:$8 sps:$4 sm:$0xff]  }
  0xcf   : > { %1827 = vmatprep.subr.bf16.mxu0 %v9399_v58  ;;  %1942 = vmatprep.subr.bf16.mxu1 %v6944_v43  ;;  %9410 = vst [vmem:[#allocation8_spill] sm:$0xff] %v7276_v56  ;;  %v7282_v58 = vld [vmem:[%s9266_s1 + $0x94] ss:$8 sps:$4 sm:$0xff]  }
  0xd0   : > { %1723 = vmatprep.mubr.bf16.mxu0 %v9383_v14  ;;  %1794 = vmatprep.mubr.bf16.mxu1 %v9383_v14 }
  0xd2   : > { %1828 = vmatpush1.bf16.msra.mxu0 %v9400_v59  ;;  %1943 = vmatpush1.bf16.msra.mxu1 %v6953_v45  ;;  %v7288_v59 = vld [vmem:[%s9266_s1 + $0x14] ss:$8 sps:$4 sm:$0xff]  }
  0xd3   : > { %1829 = vmatprep.subr.bf16.mxu0 %v9401_v60  ;;  %1944 = vmatprep.subr.bf16.mxu1 %v6960_v16  ;;  %9411 = vst [vmem:[#allocation22_spill] sm:$0xff] %v7288_v59  ;;  %v7296_v60 = vld [vmem:[%s9266_s1 + $0x90] ss:$8 sps:$4 sm:$0xff]  }
  0xd5   : > { %1724 = vmatmul.mubr.bf16.gmra.mxu0 %v9402_v61  ;;  %1795 = vmatmul.mubr.bf16.gmra.mxu1 %v6970_v49  ;;  %v7302_v61 = vld [vmem:[%s9266_s1 + $0x10] ss:$8 sps:$4 sm:$0xff]  }
  0xd6   : > { %1830 = vmatpush1.bf16.msra.mxu0 %v9403_v62  ;;  %1945 = vmatpush1.bf16.msra.mxu1 %v6977_v32  ;;  %9412 = vst [vmem:[#allocation9_spill] sm:$0xff] %v7302_v61  ;;  %v7308_v62 = vld [vmem:[%s9266_s1 + $0x84] ss:$8 sps:$4 sm:$0xff]  }
  0xd7   : > { %1831 = vmatprep.subr.bf16.mxu0 %v9404_v63  ;;  %1946 = vmatprep.subr.bf16.mxu1 %v6982_v51  ;;  %v7314_v63 = vld [vmem:[%s9266_s1 + $0x4] ss:$8 sps:$4 sm:$0xff]  }
  0xd8   : > { %1849 = vmatprep.mubr.bf16.mxu0 %v9383_v14  ;;  %1964 = vmatprep.mubr.bf16.mxu1 %v9383_v14  ;;  %9413 = vst [vmem:[#allocation10_spill] sm:$0xff] %v7314_v63 }
  0xda   : > { %1832 = vmatpush1.bf16.msra.mxu0 %v9405_v1  ;;  %1947 = vmatpush1.bf16.msra.mxu1 %v6991_v53 }
  0xdb   : > { %2052 = vmatprep.subr.bf16.mxu0 %v7117_v2  ;;  %2123 = vmatprep.subr.bf16.mxu1 %v7123_v3 }
  0xdd   : > { %1850 = vmatmul.mubr.bf16.vlgmr.msra.gmra.mxu0 %v7000_v55  ;;  %1965 = vmatmul.mubr.bf16.vlgmr.msra.gmra.mxu1 %v7110_v0 }
  0xde   : > { %2053 = vmatpush1.bf16.msra.mxu0 %v7131_v5  ;;  %2124 = vmatpush1.bf16.msra.mxu1 %v7137_v6 }
  0xdf   : > { %2054 = vmatprep.subr.bf16.mxu0 %v7143_v7  ;;  %2125 = vmatprep.subr.bf16.mxu1 %v7149_v8 }
  0xe0   : > { %1859 = vmatprep.mubr.bf16.mxu0 %v9383_v14  ;;  %1974 = vmatprep.mubr.bf16.mxu1 %v9383_v14 }
  0xe2   : > { %2055 = vmatpush1.bf16.msra.mxu0 %v7160_v10  ;;  %2126 = vmatpush1.bf16.msra.mxu1 %v7166_v11 }
  0xe3   : > { %2056 = vmatprep.subr.bf16.mxu0 %v7172_v13  ;;  %2127 = vmatprep.subr.bf16.mxu1 %v7178_v15 }
  0xe5   : > { %1860 = vmatmul.mubr.bf16.gmra.mxu0 %v7015_v57  ;;  %1975 = vmatmul.mubr.bf16.gmra.mxu1 %v7155_v9 }
  0xe6   : > { %2057 = vmatpush1.bf16.msra.mxu0 %v7186_v17  ;;  %2128 = vmatpush1.bf16.msra.mxu1 %v7192_v19 }
  0xe7   : > { %2058 = vmatprep.subr.bf16.mxu0 %v7198_v21  ;;  %2129 = vmatprep.subr.bf16.mxu1 %v7204_v23 }
  0xe8   : > { %1869 = vmatprep.mubr.bf16.mxu0 %v9383_v14  ;;  %1984 = vmatprep.mubr.bf16.mxu1 %v9383_v14 }
  0xea   : > { %2059 = vmatpush1.bf16.msra.mxu0 %v7215_v26  ;;  %2130 = vmatpush1.bf16.msra.mxu1 %v7221_v27  ;;  %v7444_v27 = vld [vmem:[%s9266_s1 + $0x1b4] ss:$8 sps:$4 sm:$0xff]  }
  0xeb   : > { %2060 = vmatprep.subr.bf16.mxu0 %v7227_v29  ;;  %2131 = vmatprep.subr.bf16.mxu1 %v7233_v31  ;;  %v7406_v31 = vld [vmem:[%s9266_s1 + $0x1d0] ss:$8 sps:$4 sm:$0xff]   ;;  %9424 = vst [vmem:[#allocation24_spill] sm:$0xff] %v7444_v27 }
  0xec   : > { %9420 = vst [vmem:[#allocation16_spill] sm:$0xff] %v7406_v31 }
  0xed   : > { %1870 = vmatmul.mubr.bf16.gmra.mxu0 %v7030_v33  ;;  %1985 = vmatmul.mubr.bf16.gmra.mxu1 %v7210_v25 }
  0xee   : > { %2061 = vmatpush1.bf16.msra.mxu0 %v7241_v38  ;;  %2132 = vmatpush1.bf16.msra.mxu1 %v7247_v40  ;;  %v7392_v40 = vld [vmem:[%s9266_s1 + $0x1d4] ss:$8 sps:$4 sm:$0xff]  }
  0xef   : > { %2062 = vmatprep.subr.bf16.mxu0 %v7253_v44  ;;  %2133 = vmatprep.subr.bf16.mxu1 %v7259_v48  ;;  %v7354_v48 = vld [vmem:[%s9266_s1 + $0x1f0] ss:$8 sps:$4 sm:$0xff]   ;;  %9419 = vst [vmem:[#allocation15_spill] sm:$0xff] %v7392_v40 }
  0xf0   : > { %1879 = vmatprep.mubr.bf16.mxu0 %v9383_v14  ;;  %1994 = vmatprep.mubr.bf16.mxu1 %v9383_v14  ;;  %9416 = vst [vmem:[#allocation12_spill] sm:$0xff] %v7354_v48 }
  0xf2   : > { %2063 = vmatpush1.bf16.msra.mxu0 %v7270_v52  ;;  %2134 = vmatpush1.bf16.msra.mxu1 %v7276_v56  ;;  %v7340_v56 = vld [vmem:[%s9266_s1 + $0x1f4] ss:$8 sps:$4 sm:$0xff]  }
  0xf3   : > { %2064 = vmatprep.subr.bf16.mxu0 %v7282_v58  ;;  %2135 = vmatprep.subr.bf16.mxu1 %v7288_v59  ;;  %v7328_v59 = vld [vmem:[%s9266_s1] ss:$8 sps:$4 sm:$0xff]   ;;  %9415 = vst [vmem:[#allocation23_spill] sm:$0xff] %v7340_v56 }
  0xf4   : > { %9414 = vst [vmem:[#allocation11_spill] sm:$0xff] %v7328_v59 }
  0xf5   : > { %1880 = vmatmul.mubr.bf16.gmra.mxu0 %v7045_v36  ;;  %1995 = vmatmul.mubr.bf16.gmra.mxu1 %v7265_v50 }
  0xf6   : > { %2065 = vmatpush1.bf16.msra.mxu0 %v7296_v60  ;;  %2136 = vmatpush1.bf16.msra.mxu1 %v7302_v61  ;;  %v7322_v61 = vld [vmem:[%s9266_s1 + $0x80] ss:$8 sps:$4 sm:$0xff]  }
  0xf7   : > { %2066 = vmatprep.subr.bf16.mxu0 %v7308_v62  ;;  %2137 = vmatprep.subr.bf16.mxu1 %v7314_v63  ;;  %v7334_v63 = vld [vmem:[%s9266_s1 + $0x174] ss:$8 sps:$4 sm:$0xff]  }
  0xf8   : > { %2084 = vmatprep.mubr.bf16.mxu0 %v9383_v14  ;;  %2155 = vmatprep.mubr.bf16.mxu1 %v9383_v14 }
  0xfa   : > { %2067 = vmatpush1.bf16.msra.mxu0 %v7322_v61  ;;  %2138 = vmatpush1.bf16.msra.mxu1 %v7328_v59  ;;  %v7348_v59 = vld [vmem:[%s9266_s1 + $0x170] ss:$8 sps:$4 sm:$0xff]  }
  0xfb   : > { %2194 = vmatprep.subr.bf16.mxu0 %v7334_v63  ;;  %2279 = vmatprep.subr.bf16.mxu1 %v7340_v56  ;;  %v7380_v56 = vld [vmem:[%s9266_s1 + $0x1e0] ss:$8 sps:$4 sm:$0xff]  }
  0xfc   : > { %9418 = vst [vmem:[#allocation14_spill] sm:$0xff] %v7380_v56 }
  0xfd   : > { %2085 = vmatmul.mubr.bf16.vlgmr.msra.gmra.mxu0 %v6858_v28  ;;  %2156 = vmatmul.mubr.bf16.vlgmr.msra.gmra.mxu1 %v6855_v22  ;;  %v7360_v28 = vld [vmem:[%s9266_s1 + $0x164] ss:$8 sps:$4 sm:$0xff]  }
  0xfe   : > { %2195 = vmatpush1.bf16.msra.mxu0 %v7348_v59  ;;  %2280 = vmatpush1.bf16.msra.mxu1 %v7354_v48  ;;  %v7366_v22 = vld [vmem:[%s9266_s1 + $0x1e4] ss:$8 sps:$4 sm:$0xff]   ;;  %v7374_v48 = vld [vmem:[%s9266_s1 + $0x160] ss:$8 sps:$4 sm:$0xff]  }
  0xff   : > { %2196 = vmatprep.subr.bf16.mxu0 %v7360_v28  ;;  %9417 = vst [vmem:[#allocation13_spill] sm:$0xff] %v7366_v22  ;;  %2281 = vmatprep.subr.bf16.mxu1 %v7366_v22  ;;  %v7386_v22 = vld [vmem:[%s9266_s1 + $0x154] ss:$8 sps:$4 sm:$0xff]  }
 0x100   : > { %2094 = vmatprep.mubr.bf16.mxu0 %v9383_v14  ;;  %2165 = vmatprep.mubr.bf16.mxu1 %v9383_v14 }
 0x102   : > { %2197 = vmatpush1.bf16.msra.mxu0 %v7374_v48  ;;  %2282 = vmatpush1.bf16.msra.mxu1 %v7380_v56  ;;  %v7400_v56 = vld [vmem:[%s9266_s1 + $0x150] ss:$8 sps:$4 sm:$0xff]  }
 0x103   : > { %2198 = vmatprep.subr.bf16.mxu0 %v7386_v22  ;;  %2283 = vmatprep.subr.bf16.mxu1 %v7392_v40  ;;  %v7432_v40 = vld [vmem:[%s9266_s1 + $0x1c0] ss:$8 sps:$4 sm:$0xff]  }
 0x104   : > { %9422 = vst [vmem:[#allocation18_spill] sm:$0xff] %v7432_v40 }
 0x105   : > { %2095 = vmatmul.mubr.bf16.gmra.mxu0 %v6896_v35  ;;  %2166 = vmatmul.mubr.bf16.gmra.mxu1 %v6893_v18  ;;  %v7412_v35 = vld [vmem:[%s9266_s1 + $0x144] ss:$8 sps:$4 sm:$0xff]  }
 0x106   : > { %2199 = vmatpush1.bf16.msra.mxu0 %v7400_v56  ;;  %2284 = vmatpush1.bf16.msra.mxu1 %v7406_v31  ;;  %v7418_v18 = vld [vmem:[%s9266_s1 + $0x1c4] ss:$8 sps:$4 sm:$0xff]   ;;  %v7426_v31 = vld [vmem:[%s9266_s1 + $0x140] ss:$8 sps:$4 sm:$0xff]  }
 0x107   : > { %2200 = vmatprep.subr.bf16.mxu0 %v7412_v35  ;;  %9421 = vst [vmem:[#allocation17_spill] sm:$0xff] %v7418_v18  ;;  %2285 = vmatprep.subr.bf16.mxu1 %v7418_v18  ;;  %v7438_v18 = vld [vmem:[%s9266_s1 + $0x134] ss:$8 sps:$4 sm:$0xff]  }
 0x108   : > { %2104 = vmatprep.mubr.bf16.mxu0 %v9383_v14  ;;  %2175 = vmatprep.mubr.bf16.mxu1 %v9383_v14  ;;  %9423 = vst [vmem:[#allocation19_spill] sm:$0xff] %v7438_v18 }
 0x10a   : > { %2201 = vmatpush1.bf16.msra.mxu0 %v7426_v31  ;;  %2286 = vmatpush1.bf16.msra.mxu1 %v7432_v40  ;;  %v7452_v40 = vld [vmem:[%s9266_s1 + $0x130] ss:$8 sps:$4 sm:$0xff]  }
 0x10b   : > { %2202 = vmatprep.subr.bf16.mxu0 %v7438_v18  ;;  %2287 = vmatprep.subr.bf16.mxu1 %v7444_v27  ;;  %v7458_v18 = vld [vmem:[%s9266_s1 + $0x1b0] ss:$8 sps:$4 sm:$0xff]   ;;  %v7484_v27 = vld [vmem:[%s9266_s1 + $0x1a0] ss:$8 sps:$4 sm:$0xff]  }
 0x10c   : > { %9425 = vst [vmem:[#allocation25_spill] sm:$0xff] %v7458_v18  ;;  %9428 = vst [vmem:[#allocation28_spill] sm:$0xff] %v7484_v27 }
 0x10d   : > { %2105 = vmatmul.mubr.bf16.gmra.mxu0 %v9397_v54  ;;  %2176 = vmatmul.mubr.bf16.gmra.mxu1 %v6929_v41  ;;  %v7464_v54 = vld [vmem:[%s9266_s1 + $0x124] ss:$8 sps:$4 sm:$0xff]  }
 0x10e   : > { %2203 = vmatpush1.bf16.msra.mxu0 %v7452_v40  ;;  %2288 = vmatpush1.bf16.msra.mxu1 %v7458_v18  ;;  %9426 = vst [vmem:[#allocation26_spill] sm:$0xff] %v7464_v54  ;;  %v7470_v41 = vld [vmem:[%s9266_s1 + $0x1a4] ss:$8 sps:$4 sm:$0xff]   ;;  %v7478_v18 = vld [vmem:[%s9266_s1 + $0x120] ss:$8 sps:$4 sm:$0xff]  }
 0x10f   : > { %2204 = vmatprep.subr.bf16.mxu0 %v7464_v54  ;;  %9427 = vst [vmem:[#allocation27_spill] sm:$0xff] %v7470_v41  ;;  %2289 = vmatprep.subr.bf16.mxu1 %v7470_v41  ;;  %v7490_v41 = vld [vmem:[%s9266_s1 + $0x114] ss:$8 sps:$4 sm:$0xff]  }
 0x110   : > { %2114 = vmatprep.mubr.bf16.mxu0 %v9383_v14  ;;  %2185 = vmatprep.mubr.bf16.mxu1 %v9383_v14  ;;  %9429 = vst [vmem:[#allocation29_spill] sm:$0xff] %v7490_v41  ;;  %v7496_v54 = vld [vmem:[%s9266_s1 + $0x194] ss:$8 sps:$4 sm:$0xff]  }
 0x111   : > { %9430 = vst [vmem:[#allocation30_spill] sm:$0xff] %v7496_v54 }
 0x112   : > { %2205 = vmatpush1.bf16.msra.mxu0 %v7478_v18  ;;  %2290 = vmatpush1.bf16.msra.mxu1 %v7484_v27  ;;  %v7504_v27 = vld [vmem:[%s9266_s1 + $0x110] ss:$8 sps:$4 sm:$0xff]  }
 0x113   : > { %2206 = vmatprep.subr.bf16.mxu0 %v7490_v41  ;;  %2291 = vmatprep.subr.bf16.mxu1 %v7496_v54  ;;  %9431 = vst [vmem:[#allocation31_spill] sm:$0xff] %v7504_v27  ;;  %v7510_v41 = vld [vmem:[%s9266_s1 + $0x190] ss:$8 sps:$4 sm:$0xff]  }
 0x114   : > { %9432 = vst [vmem:[#allocation32_spill] sm:$0xff] %v7510_v41 }
 0x115   : > { %2115 = vmatmul.mubr.bf16.gmra.mxu0 %v6970_v49  ;;  %2186 = vmatmul.mubr.bf16.gmra.mxu1 %v6967_v47  ;;  %v7516_v49 = vld [vmem:[%s9266_s1 + $0x104] ss:$8 sps:$4 sm:$0xff]  }
 0x116   : > { %2207 = vmatpush1.bf16.msra.mxu0 %v7504_v27  ;;  %2292 = vmatpush1.bf16.msra.mxu1 %v7510_v41  ;;  %9433 = vst [vmem:[#allocation33_spill] sm:$0xff] %v7516_v49  ;;  %v7522_v47 = vld [vmem:[%s9266_s1 + $0x184] ss:$8 sps:$4 sm:$0xff]   ;;  %v7530_v41 = vld [vmem:[%s9266_s1 + $0x100] ss:$8 sps:$4 sm:$0xff]  }
 0x117   : > { %2208 = vmatprep.subr.bf16.mxu0 %v7516_v49  ;;  %9434 = vst [vmem:[#allocation34_spill] sm:$0xff] %v7522_v47  ;;  %2293 = vmatprep.subr.bf16.mxu1 %v7522_v47  ;;  %9435 = vst [vmem:[#allocation35_spill] sm:$0xff] %v7530_v41 }
 0x118   : > { %2226 = vmatprep.mubr.bf16.mxu0 %v9383_v14  ;;  %2311 = vmatprep.mubr.bf16.mxu1 %v9383_v14 }
 0x11a   : > { %2209 = vmatpush1.bf16.msra.mxu0 %v7530_v41  ;;  %2294 = vmatpush1.bf16.msra.mxu1 %v9405_v1 }
 0x11b   : > { %2394 = vmatprep.subr.bf16.mxu0 %v6850_v24  ;;  %2486 = vmatprep.subr.bf16.mxu1 %v7117_v2 }
 0x11d   : > { %v737_v54 = vpop.f32.mrf.mxu0  ;;  %v910_v49 = vpop.f32.mrf.mxu1  ;;  %2227 = vmatmul.mubr.bf16.vlgmr.msra.gmra.mxu0 %v7000_v55  ;;  %2312 = vmatmul.mubr.bf16.vlgmr.msra.gmra.mxu1 %v7110_v0 }
 0x11e   : > { %v7538_v47 = vadd.f32 %v910_v49, %v737_v54  ;;  %2395 = vmatpush1.bf16.msra.mxu0 %v6865_v30  ;;  %2487 = vmatpush1.bf16.msra.mxu1 %v7131_v5 }
 0x11f   : > { %v739_v27 = vpop.f32.mrf.mxu0  ;;  %v912_v41 = vpop.f32.mrf.mxu1  ;;  %2396 = vmatprep.subr.bf16.mxu0 %v6872_v20  ;;  %2488 = vmatprep.subr.bf16.mxu1 %v7143_v7 }
 0x120   : > { %v7544_v24 = vadd.f32 %v912_v41, %v739_v27  ;;  %2236 = vmatprep.mubr.bf16.mxu0 %v9383_v14  ;;  %2321 = vmatprep.mubr.bf16.mxu1 %v9383_v14 }
 0x121   : > { %v741_v1 = vpop.f32.mrf.mxu0  ;;  %v914_v2 = vpop.f32.mrf.mxu1 }
 0x122   : > { %v7548_v54 = vadd.f32 %v914_v2, %v741_v1  ;;  %2397 = vmatpush1.bf16.msra.mxu0 %v6881_v4  ;;  %2489 = vmatpush1.bf16.msra.mxu1 %v7160_v10 }
 0x123   : > { %v743_v30 = vpop.f32.mrf.mxu0  ;;  %v916_v5 = vpop.f32.mrf.mxu1  ;;  %2398 = vmatprep.subr.bf16.mxu0 %v9388_v34  ;;  %2490 = vmatprep.subr.bf16.mxu1 %v7172_v13 }
 0x124   : > { %v7554_v20 = vadd.f32 %v916_v5, %v743_v30 }
 0x125   : > { %v747_v7 = vpop.f32.mrf.mxu0  ;;  %v920_v27 = vpop.f32.mrf.mxu1  ;;  %2237 = vmatmul.mubr.bf16.gmra.mxu0 %v7015_v57  ;;  %2322 = vmatmul.mubr.bf16.gmra.mxu1 %v7155_v9 }
 0x126   : > { %v7558_v41 = vadd.f32 %v920_v27, %v747_v7  ;;  %2399 = vmatpush1.bf16.msra.mxu0 %v9391_v42  ;;  %2491 = vmatpush1.bf16.msra.mxu1 %v7186_v17 }
 0x127   : > { %v749_v4 = vpop.f32.mrf.mxu0  ;;  %v922_v10 = vpop.f32.mrf.mxu1  ;;  %2400 = vmatprep.subr.bf16.mxu0 %v9393_v46  ;;  %2492 = vmatprep.subr.bf16.mxu1 %v7198_v21 }
 0x128   : > { %v7564_v34 = vadd.f32 %v922_v10, %v749_v4  ;;  %2246 = vmatprep.mubr.bf16.mxu0 %v9383_v14  ;;  %2331 = vmatprep.mubr.bf16.mxu1 %v9383_v14 }
 0x129   : > { %v751_v13 = vpop.f32.mrf.mxu0  ;;  %v924_v49 = vpop.f32.mrf.mxu1 }
 0x12a   : > { %v7568_v1 = vadd.f32 %v924_v49, %v751_v13  ;;  %2401 = vmatpush1.bf16.msra.mxu0 %v6915_v12  ;;  %2493 = vmatpush1.bf16.msra.mxu1 %v7215_v26  ;;  %v7609_v13 = vld [vmem:[%s6589_s14 + $0x44] sm:$0xff]  }
 0x12b   : > { %v753_v42 = vpop.f32.mrf.mxu0  ;;  %v926_v17 = vpop.f32.mrf.mxu1  ;;  %2402 = vmatprep.subr.bf16.mxu0 %v6922_v39  ;;  %2494 = vmatprep.subr.bf16.mxu1 %v7227_v29 }
 0x12c   : > { %v7574_v46 = vadd.f32 %v926_v17, %v753_v42  ;;  %v7628_v42 = vld [vmem:[%s6589_s14 + $0x4c] sm:$0xff]  }
 0x12d   : > { %v757_v21 = vpop.f32.mrf.mxu0  ;;  %v930_v2 = vpop.f32.mrf.mxu1  ;;  %2247 = vmatmul.mubr.bf16.gmra.mxu0 %v7030_v33  ;;  %2332 = vmatmul.mubr.bf16.gmra.mxu1 %v7210_v25 }
 0x12e   : > { %v7578_v30 = vadd.f32 %v930_v2, %v757_v21  ;;  %2403 = vmatpush1.bf16.msra.mxu0 %v6939_v37  ;;  %2495 = vmatpush1.bf16.msra.mxu1 %v7241_v38 }
 0x12f   : > { %v759_v12 = vpop.f32.mrf.mxu0  ;;  %v932_v26 = vpop.f32.mrf.mxu1  ;;  %2404 = vmatprep.subr.bf16.mxu0 %v6944_v43  ;;  %2496 = vmatprep.subr.bf16.mxu1 %v7253_v44 }
 0x130   : > { %v7584_v39 = vadd.f32 %v932_v26, %v759_v12  ;;  %2256 = vmatprep.mubr.bf16.mxu0 %v9383_v14  ;;  %2341 = vmatprep.mubr.bf16.mxu1 %v9383_v14  ;;  %v7655_v12 = vld [vmem:[%s6589_s14 + $0x54] sm:$0xff]   ;;  %v9436_v26 = vld [vmem:[#allocation20_spill] sm:$0xff] }
 0x131   : > { %v761_v29 = vpop.f32.mrf.mxu0  ;;  %v934_v5 = vpop.f32.mrf.mxu1 }
 0x132   : > { %v7588_v7 = vadd.f32 %v934_v5, %v761_v29  ;;  %2405 = vmatpush1.bf16.msra.mxu0 %v6953_v45  ;;  %2497 = vmatpush1.bf16.msra.mxu1 %v7270_v52  ;;  %v9437_v29 = vld [vmem:[#allocation6_spill] sm:$0xff] }
 0x133   : > { %v763_v37 = vpop.f32.mrf.mxu0  ;;  %v936_v38 = vpop.f32.mrf.mxu1  ;;  %2406 = vmatprep.subr.bf16.mxu0 %v6960_v16  ;;  %2498 = vmatprep.subr.bf16.mxu1 %v7282_v58 }
 0x134   : > { %v7594_v43 = vadd.f32 %v936_v38, %v763_v37 }
 0x135   : > { %v767_v44 = vpop.f32.mrf.mxu0  ;;  %v940_v27 = vpop.f32.mrf.mxu1  ;;  %2257 = vmatmul.mubr.bf16.gmra.mxu0 %v7045_v36  ;;  %2342 = vmatmul.mubr.bf16.gmra.mxu1 %v7265_v50 }
 0x136   : > { %v7598_v4 = vadd.f32 %v940_v27, %v767_v44  ;;  %2407 = vmatpush1.bf16.msra.mxu0 %v6977_v32  ;;  %2499 = vmatpush1.bf16.msra.mxu1 %v7296_v60  ;;  %v9439_v27 = vld [vmem:[#allocation7_spill] sm:$0xff] }
 0x137   : > { %v769_v45 = vpop.f32.mrf.mxu0  ;;  %v942_v52 = vpop.f32.mrf.mxu1  ;;  %2408 = vmatprep.subr.bf16.mxu0 %v6982_v51  ;;  %2500 = vmatprep.subr.bf16.mxu1 %v7308_v62 }
 0x138   : > { %v7604_v16 = vadd.f32 %v942_v52, %v769_v45  ;;  %2426 = vmatprep.mubr.bf16.mxu0 %v9383_v14  ;;  %2518 = vmatprep.mubr.bf16.mxu1 %v9383_v14 }
 0x139   : > { %v771_v58 = vpop.f32.mrf.mxu0  ;;  %v944_v10 = vpop.f32.mrf.mxu1 }
 0x13a   : > { %2409 = vmatpush1.bf16.msra.mxu0 %v6991_v53  ;;  %2501 = vmatpush1.bf16.msra.mxu1 %v7322_v61  ;;  %v9440_v58 = vld [vmem:[#allocation21_spill] sm:$0xff] }
 0x13b   : > { %v772_v32 = vpop.f32.mrf.mxu0  ;;  %v945_v60 = vpop.f32.mrf.mxu1  ;;  %2557 = vmatprep.subr.bf16.mxu0 %v7123_v3  ;;  %2628 = vmatprep.subr.bf16.mxu1 %v7334_v63 }
 0x13c   : > { %v7682_v60 = vld [vmem:[%s6589_s14 + $0x5c] ss:$0 sps:$4 sm:$0xff]  }
 0x13d   : > { %v1108_v51 = vpop.f32.mrf.mxu0  ;;  %v1320_v62 = vpop.f32.mrf.mxu1  ;;  %2427 = vmatmul.mubr.bf16.vlgmr.msra.gmra.mxu0 %v7609_v13  ;;  %2519 = vmatmul.mubr.bf16.vlgmr.msra.gmra.mxu1 %v7000_v55 }
 0x13e   : > { %v1145_v49 = vadd.f32 %v1108_v51, %v7538_v47  ;;  %2558 = vmatpush1.bf16.msra.mxu0 %v7137_v6  ;;  %2629 = vmatpush1.bf16.msra.mxu1 %v7348_v59 }
 0x13f   : > { %v1110_v53 = vpop.f32.mrf.mxu0  ;;  %v1322_v61 = vpop.f32.mrf.mxu1  ;;  %2559 = vmatprep.subr.bf16.mxu0 %v7149_v8  ;;  %2630 = vmatprep.subr.bf16.mxu1 %v7360_v28 }
 0x140   : > { %v7622_v3 = vadd.f32 %v1320_v62, %v1145_v49  ;;  %v1146_v63 = vadd.f32 %v1110_v53, %v7544_v24  ;;  %2436 = vmatprep.mubr.bf16.mxu0 %v9383_v14  ;;  %2528 = vmatprep.mubr.bf16.mxu1 %v9383_v14  ;;  %v9442_v62 = vld [vmem:[#allocation8_spill] sm:$0xff] }
 0x141   : > { %v1112_v55 = vpop.f32.mrf.mxu0  ;;  %v1324_v47 = vpop.f32.mrf.mxu1 }
 0x142   : > { %v7630_v6 = vadd.f32 %v1322_v61, %v1146_v63  ;;  %v1147_v59 = vadd.f32 %v1112_v55, %v7548_v54  ;;  %2560 = vmatpush1.bf16.msra.mxu0 %v7166_v11  ;;  %2631 = vmatpush1.bf16.msra.mxu1 %v7374_v48  ;;  %v9443_v61 = vld [vmem:[#allocation22_spill] sm:$0xff] }
 0x143   : > { %v1114_v8 = vpop.f32.mrf.mxu0  ;;  %v1326_v28 = vpop.f32.mrf.mxu1  ;;  %2561 = vmatprep.subr.bf16.mxu0 %v7178_v15  ;;  %2632 = vmatprep.subr.bf16.mxu1 %v7386_v22 }
 0x144   : > { %v7637_v24 = vadd.f32 %v1324_v47, %v1147_v59  ;;  %v1148_v17 = vadd.f32 %v1114_v8, %v7554_v20  ;;  %v9445_v8 = vld [vmem:[#allocation9_spill] sm:$0xff] }
 0x145   : > { %v1118_v21 = vpop.f32.mrf.mxu0  ;;  %v1330_v2 = vpop.f32.mrf.mxu1  ;;  %2437 = vmatmul.mubr.bf16.gmra.mxu0 %v7628_v42  ;;  %2529 = vmatmul.mubr.bf16.gmra.mxu1 %v7015_v57 }
 0x146   : > { %v7642_v11 = vadd.f32 %v1326_v28, %v1148_v17  ;;  %v1149_v48 = vadd.f32 %v1118_v21, %v7558_v41  ;;  %2562 = vmatpush1.bf16.msra.mxu0 %v7192_v19  ;;  %2633 = vmatpush1.bf16.msra.mxu1 %v7400_v56  ;;  %v9446_v28 = vld [vmem:[#allocation31_spill] sm:$0xff] }
 0x147   : > { %v1120_v15 = vpop.f32.mrf.mxu0  ;;  %v1332_v22 = vpop.f32.mrf.mxu1  ;;  %2563 = vmatprep.subr.bf16.mxu0 %v7204_v23  ;;  %2634 = vmatprep.subr.bf16.mxu1 %v7412_v35 }
 0x148   : > { %v7649_v54 = vadd.f32 %v1330_v2, %v1149_v48  ;;  %v1150_v20 = vadd.f32 %v1120_v15, %v7564_v34  ;;  %2446 = vmatprep.mubr.bf16.mxu0 %v9383_v14  ;;  %2538 = vmatprep.mubr.bf16.mxu1 %v9383_v14  ;;  %v9438_v34 = vld [vmem:[#allocation19_spill] sm:$0xff]  ;;  %v9447_v2 = vld [vmem:[#allocation10_spill] sm:$0xff]  ;;  %v9448_v48 = vld [vmem:[#allocation33_spill] sm:$0xff] }
 0x149   : > { %v1122_v57 = vpop.f32.mrf.mxu0  ;;  %v1334_v41 = vpop.f32.mrf.mxu1 }
 0x14a   : > { %v7657_v19 = vadd.f32 %v1332_v22, %v1150_v20  ;;  %v1151_v56 = vadd.f32 %v1122_v57, %v7568_v1  ;;  %2564 = vmatpush1.bf16.msra.mxu0 %v9436_v26  ;;  %2635 = vmatpush1.bf16.msra.mxu1 %v7426_v31  ;;  %v9449_v20 = vld [vmem:[#allocation11_spill] sm:$0xff] }
 0x14b   : > { %v1124_v23 = vpop.f32.mrf.mxu0  ;;  %v1336_v35 = vpop.f32.mrf.mxu1  ;;  %2565 = vmatprep.subr.bf16.mxu0 %v9437_v29  ;;  %2636 = vmatprep.subr.bf16.mxu1 %v9438_v34  ;;  %v9450_v57 = vld [vmem:[#allocation35_spill] sm:$0xff]  ;;  %v6132_v29 = vld [vmem:[%s6589_s14 + $0x60] sm:$0xff]  }
 0x14c   : > { %v7664_v5 = vadd.f32 %v1334_v41, %v1151_v56  ;;  %v1152_v37 = vadd.f32 %v1124_v23, %v7574_v46  ;;  %v9441_v46 = vld [vmem:[#allocation26_spill] sm:$0xff]  ;;  %v9451_v26 = vld [vmem:[#allocation23_spill] sm:$0xff] }
 0x14d   : > { %v1128_v38 = vpop.f32.mrf.mxu0  ;;  %v1340_v44 = vpop.f32.mrf.mxu1  ;;  %2447 = vmatmul.mubr.bf16.gmra.mxu0 %v7655_v12  ;;  %2539 = vmatmul.mubr.bf16.gmra.mxu1 %v7030_v33 }
 0x14e   : > { %v7669_v1 = vadd.f32 %v1336_v35, %v1152_v37  ;;  %v1153_v31 = vadd.f32 %v1128_v38, %v7578_v30  ;;  %2566 = vmatpush1.bf16.msra.mxu0 %v9439_v27  ;;  %2637 = vmatpush1.bf16.msra.mxu1 %v7452_v40  ;;  %v9452_v37 = vld [vmem:[#allocation12_spill] sm:$0xff]  ;;  %v6133_v38 = vld [vmem:[%s9266_s1 + $0x270] ss:$8 sps:$4 sm:$0xff]   ;;  %v9453_v27 = vld [vmem:[#allocation13_spill] sm:$0xff] }
 0x14f   : > { %v1130_v45 = vpop.f32.mrf.mxu0  ;;  %v1342_v52 = vpop.f32.mrf.mxu1  ;;  %2567 = vmatprep.subr.bf16.mxu0 %v9440_v58  ;;  %2638 = vmatprep.subr.bf16.mxu1 %v9441_v46 }
 0x150   : > { %v7676_v10 = vadd.f32 %v1340_v44, %v1153_v31  ;;  %v1154_v32 = vadd.f32 %v1130_v45, %v7584_v39  ;;  %2456 = vmatprep.mubr.bf16.mxu0 %v9383_v14  ;;  %2548 = vmatprep.mubr.bf16.mxu1 %v9383_v14  ;;  %v9444_v39 = vld [vmem:[#allocation29_spill] sm:$0xff] }
 0x151   : > { %v1132_v33 = vpop.f32.mrf.mxu0  ;;  %v1344_v30 = vpop.f32.mrf.mxu1  ;;  %v6134_v45 = vld [vmem:[%s9266_s1 + $0x264] ss:$8 sps:$4 sm:$0xff]  }
 0x152   : > { %v7684_v51 = vadd.f32 %v1342_v52, %v1154_v32  ;;  %v1155_v40 = vadd.f32 %v1132_v33, %v7588_v7  ;;  %2568 = vmatpush1.bf16.msra.mxu0 %v9442_v62  ;;  %2639 = vmatpush1.bf16.msra.mxu1 %v7478_v18  ;;  %v9454_v32 = vld [vmem:[#allocation14_spill] sm:$0xff] }
 0x153   : > { %v1134_v49 = vpop.f32.mrf.mxu0  ;;  %v1346_v53 = vpop.f32.mrf.mxu1  ;;  %2569 = vmatprep.subr.bf16.mxu0 %v9443_v61  ;;  %2640 = vmatprep.subr.bf16.mxu1 %v9444_v39  ;;  %v6136_v62 = vld [vmem:[%s9266_s1 + $0x254] ss:$8 sps:$4 sm:$0xff]   ;;  %v6137_v61 = vld [vmem:[%s6589_s14 + $0x68] sm:$0xff]  }
 0x154   : > { %v7691_v63 = vadd.f32 %v1344_v30, %v1155_v40  ;;  %v1156_v55 = vadd.f32 %v1134_v49, %v7594_v43  ;;  %v9455_v40 = vld [vmem:[#allocation15_spill] sm:$0xff] }
 0x155   : > { %v1138_v47 = vpop.f32.mrf.mxu0  ;;  %v1350_v59 = vpop.f32.mrf.mxu1  ;;  %2457 = vmatmul.mubr.bf16.gmra.mxu0 %v7682_v60  ;;  %2549 = vmatmul.mubr.bf16.gmra.mxu1 %v7045_v36 }
 0x156   : > { %v7696_v7 = vadd.f32 %v1346_v53, %v1156_v55  ;;  %v1157_v18 = vadd.f32 %v1138_v47, %v7598_v4  ;;  %2570 = vmatpush1.bf16.msra.mxu0 %v9445_v8  ;;  %2641 = vmatpush1.bf16.msra.mxu1 %v9446_v28  ;;  %v9456_v47 = vld [vmem:[#allocation16_spill] sm:$0xff]  ;;  %v9457_v8 = vld [vmem:[#allocation17_spill] sm:$0xff] }
 0x157   : > { %v1140_v17 = vpop.f32.mrf.mxu0  ;;  %v1352_v21 = vpop.f32.mrf.mxu1  ;;  %2571 = vmatprep.subr.bf16.mxu0 %v9447_v2  ;;  %2642 = vmatprep.subr.bf16.mxu1 %v9448_v48  ;;  %v9458_v48 = vld [vmem:[#allocation18_spill] sm:$0xff] }
 0x158   : > { %v7703_v43 = vadd.f32 %v1350_v59, %v1157_v18  ;;  %v1158_v15 = vadd.f32 %v1140_v17, %v7604_v16  ;;  %2589 = vmatprep.mubr.bf16.mxu0 %v9383_v14  ;;  %2660 = vmatprep.mubr.bf16.mxu1 %v9383_v14  ;;  %v6131_v16 = vld [vmem:[%s9266_s1 + $0x274] ss:$8 sps:$4 sm:$0xff]  }
 0x159   : > { %v1142_v36 = vpop.f32.mrf.mxu0  ;;  %v1354_v4 = vpop.f32.mrf.mxu1 }
 0x15a   : > { %v7708_v22 = vadd.f32 %v1352_v21, %v1158_v15  ;;  %2572 = vmatpush1.bf16.msra.mxu0 %v9449_v20  ;;  %2643 = vmatpush1.bf16.msra.mxu1 %v9450_v57  ;;  %v9459_v4 = vld [vmem:[#allocation24_spill] sm:$0xff]  ;;  %v6141_v20 = vld [vmem:[%s9266_s1 + $0x234] ss:$8 sps:$4 sm:$0xff]  }
 0x15b   : > { %v1143_v41 = vpop.f32.mrf.mxu0  ;;  %v1355_v56 = vpop.f32.mrf.mxu1  ;;  %2713 = vmatprep.subr.bf16.mxu0 %v9451_v26  ;;  %2828 = vmatprep.subr.bf16.mxu1 %v6131_v16  ;;  %v5915_v21 = vld [vmem:[%s9268_s3 + $0x4] ss:$8 sps:$4 sm:$0xff]  }
 0x15c   : > { %v6142_v56 = vld [vmem:[%s6589_s14 + $0x70] sm:$0xff]  }
 0x15d   : > { %v1532_v23 = vpop.f32.mrf.mxu0  ;;  %v7716_v35 = vpop.f32.mrf.mxu1  ;;  %2590 = vmatmul.mubr.bf16.vlgmr.msra.gmra.mxu0 %v6132_v29  ;;  %2661 = vmatmul.mubr.bf16.vlgmr.msra.gmra.mxu1 %v7110_v0 }
 0x15e   : > { %v7721_v34 = vadd.f32 %v1532_v23, %v7622_v3  ;;  %2714 = vmatpush1.bf16.msra.mxu0 %v9452_v37  ;;  %2829 = vmatpush1.bf16.msra.mxu1 %v6133_v38  ;;  %v9460_v23 = vld [vmem:[#allocation25_spill] sm:$0xff]  ;;  %v9461_v38 = vld [vmem:[#allocation27_spill] sm:$0xff] }
 0x15f   : > { %v1534_v44 = vpop.f32.mrf.mxu0  ;;  %v7727_v31 = vpop.f32.mrf.mxu1  ;;  %2715 = vmatprep.subr.bf16.mxu0 %v9453_v27  ;;  %2830 = vmatprep.subr.bf16.mxu1 %v6134_v45 }
 0x160   : > { %v7734_v0 = vadd.f32 %v1534_v44, %v7630_v6  ;;  %2599 = vmatprep.mubr.bf16.mxu0 %v9383_v14  ;;  %2670 = vmatprep.mubr.bf16.mxu1 %v9383_v14  ;;  %v6135_v6 = vld [vmem:[%s9266_s1 + $0x260] ss:$8 sps:$4 sm:$0xff]  }
 0x161   : > { %v1536_v3 = vpop.f32.mrf.mxu0  ;;  %v7738_v52 = vpop.f32.mrf.mxu1 }
 0x162   : > { %v7743_v46 = vadd.f32 %v1536_v3, %v7637_v24  ;;  %2716 = vmatpush1.bf16.msra.mxu0 %v9454_v32  ;;  %2831 = vmatpush1.bf16.msra.mxu1 %v6135_v6  ;;  %v9462_v32 = vld [vmem:[#allocation28_spill] sm:$0xff] }
 0x163   : > { %v1538_v33 = vpop.f32.mrf.mxu0  ;;  %v7749_v30 = vpop.f32.mrf.mxu1  ;;  %2717 = vmatprep.subr.bf16.mxu0 %v9455_v40  ;;  %2832 = vmatprep.subr.bf16.mxu1 %v6136_v62  ;;  %v9463_v40 = vld [vmem:[#allocation30_spill] sm:$0xff] }
 0x164   : > { %v7756_v24 = vadd.f32 %v1538_v33, %v7642_v11  ;;  %v6138_v11 = vld [vmem:[%s9266_s1 + $0x250] ss:$8 sps:$4 sm:$0xff]   ;;  %v6146_v62 = vld [vmem:[%s9266_s1 + $0x214] ss:$8 sps:$4 sm:$0xff]  }
 0x165   : > { %v1542_v49 = vpop.f32.mrf.mxu0  ;;  %v7758_v53 = vpop.f32.mrf.mxu1  ;;  %2600 = vmatmul.mubr.bf16.gmra.mxu0 %v6137_v61  ;;  %2671 = vmatmul.mubr.bf16.gmra.mxu1 %v7155_v9  ;;  %v6139_v9 = vld [vmem:[%s9266_s1 + $0x244] ss:$8 sps:$4 sm:$0xff]  }
 0x166   : > { %v7765_v55 = vadd.f32 %v1542_v49, %v7649_v54  ;;  %2718 = vmatpush1.bf16.msra.mxu0 %v9456_v47  ;;  %2833 = vmatpush1.bf16.msra.mxu1 %v6138_v11  ;;  %v6147_v47 = vld [vmem:[%s6589_s14 + $0x78] ss:$0 sps:$4 sm:$0xff]  }
 0x167   : > { %v1544_v59 = vpop.f32.mrf.mxu0  ;;  %v7771_v18 = vpop.f32.mrf.mxu1  ;;  %2719 = vmatprep.subr.bf16.mxu0 %v9457_v8  ;;  %2834 = vmatprep.subr.bf16.mxu1 %v6139_v9  ;;  %v9464_v8 = vld [vmem:[#allocation32_spill] sm:$0xff] }
 0x168   : > { %v7778_v54 = vadd.f32 %v1544_v59, %v7657_v19  ;;  %2609 = vmatprep.mubr.bf16.mxu0 %v9383_v14  ;;  %2680 = vmatprep.mubr.bf16.mxu1 %v9383_v14  ;;  %v6140_v19 = vld [vmem:[%s9266_s1 + $0x240] ss:$8 sps:$4 sm:$0xff]  }
 0x169   : > { %v1546_v28 = vpop.f32.mrf.mxu0  ;;  %v7782_v17 = vpop.f32.mrf.mxu1 }
 0x16a   : > { %v7787_v2 = vadd.f32 %v1546_v28, %v7664_v5  ;;  %2720 = vmatpush1.bf16.msra.mxu0 %v9458_v48  ;;  %2835 = vmatpush1.bf16.msra.mxu1 %v6140_v19  ;;  %v9465_v48 = vld [vmem:[#allocation34_spill] sm:$0xff] }
 0x16b   : > { %v1548_v15 = vpop.f32.mrf.mxu0  ;;  %v7793_v36 = vpop.f32.mrf.mxu1  ;;  %2721 = vmatprep.subr.bf16.mxu0 %v9459_v4  ;;  %2836 = vmatprep.subr.bf16.mxu1 %v6141_v20  ;;  %v5888_v20 = vld [vmem:[%s6589_s14 + $0x64] sm:$0xff]  }
 0x16c   : > { %v7800_v5 = vadd.f32 %v1548_v15, %v7669_v1  ;;  %v6143_v1 = vld [vmem:[%s9266_s1 + $0x230] ss:$8 sps:$4 sm:$0xff]  }
 0x16d   : > { %v1552_v57 = vpop.f32.mrf.mxu0  ;;  %v7802_v41 = vpop.f32.mrf.mxu1  ;;  %2610 = vmatmul.mubr.bf16.gmra.mxu0 %v6142_v56  ;;  %2681 = vmatmul.mubr.bf16.gmra.mxu1 %v7210_v25  ;;  %v6144_v25 = vld [vmem:[%s9266_s1 + $0x224] ss:$8 sps:$4 sm:$0xff]   ;;  %v6150_v56 = vld [vmem:[%s9266_s1 + $0x180] ss:$8 sps:$4 sm:$0xff]  }
 0x16e   : > { %v7809_v16 = vadd.f32 %v1552_v57, %v7676_v10  ;;  %2722 = vmatpush1.bf16.msra.mxu0 %v9460_v23  ;;  %2837 = vmatpush1.bf16.msra.mxu1 %v6143_v1 }
 0x16f   : > { %v1554_v29 = vpop.f32.mrf.mxu0  ;;  %v7815_v37 = vpop.f32.mrf.mxu1  ;;  %2723 = vmatprep.subr.bf16.mxu0 %v9461_v38  ;;  %2838 = vmatprep.subr.bf16.mxu1 %v6144_v25  ;;  %v5896_v38 = vld [vmem:[%s9268_s3 + $0x64] ss:$8 sps:$4 sm:$0xff]  }
 0x170   : > { %v7822_v10 = vadd.f32 %v1554_v29, %v7684_v51  ;;  %2619 = vmatprep.mubr.bf16.mxu0 %v9383_v14  ;;  %2690 = vmatprep.mubr.bf16.mxu1 %v9383_v14  ;;  %v6145_v51 = vld [vmem:[%s9266_s1 + $0x220] ss:$8 sps:$4 sm:$0xff]   ;;  %v5891_v29 = vld [vmem:[%s9268_s3 + $0x70] ss:$8 sps:$4 sm:$0xff]  }
 0x171   : > { %v1556_v44 = vpop.f32.mrf.mxu0  ;;  %v7826_v27 = vpop.f32.mrf.mxu1 }
 0x172   : > { %v7831_v3 = vadd.f32 %v1556_v44, %v7691_v63  ;;  %2724 = vmatpush1.bf16.msra.mxu0 %v9462_v32  ;;  %2839 = vmatpush1.bf16.msra.mxu1 %v6145_v51 }
 0x173   : > { %v1558_v6 = vpop.f32.mrf.mxu0  ;;  %v7837_v33 = vpop.f32.mrf.mxu1  ;;  %2725 = vmatprep.subr.bf16.mxu0 %v9463_v40  ;;  %2840 = vmatprep.subr.bf16.mxu1 %v6146_v62  ;;  %v5900_v40 = vld [vmem:[%s9268_s3 + $0x54] ss:$8 sps:$4 sm:$0xff]  }
 0x174   : > { %v7844_v63 = vadd.f32 %v1558_v6, %v7696_v7  ;;  %v6148_v7 = vld [vmem:[%s9266_s1 + $0x210] ss:$8 sps:$4 sm:$0xff]   ;;  %v5894_v6 = vld [vmem:[%s9268_s3 + $0x60] ss:$8 sps:$4 sm:$0xff]  }
 0x175   : > { %v1562_v49 = vpop.f32.mrf.mxu0  ;;  %v7846_v61 = vpop.f32.mrf.mxu1  ;;  %2620 = vmatmul.mubr.bf16.gmra.mxu0 %v6147_v47  ;;  %2691 = vmatmul.mubr.bf16.gmra.mxu1 %v7265_v50  ;;  %v6149_v50 = vld [vmem:[%s9266_s1 + $0x204] ss:$8 sps:$4 sm:$0xff]  }
 0x176   : > { %v7853_v59 = vadd.f32 %v1562_v49, %v7703_v43  ;;  %2726 = vmatpush1.bf16.msra.mxu0 %v9464_v8  ;;  %2841 = vmatpush1.bf16.msra.mxu1 %v6148_v7  ;;  %v5893_v43 = vld [vmem:[%s9268_s3 + $0x74] ss:$8 sps:$4 sm:$0xff]   ;;  %v5889_v49 = vld [vmem:[%s6589_s14 + $0x6c] sm:$0xff]  }
 0x177   : > { %v1564_v9 = vpop.f32.mrf.mxu0  ;;  %v7859_v28 = vpop.f32.mrf.mxu1  ;;  %2727 = vmatprep.subr.bf16.mxu0 %v9465_v48  ;;  %2842 = vmatprep.subr.bf16.mxu1 %v6149_v50  ;;  %v5898_v7 = vld [vmem:[%s9268_s3 + $0x50] ss:$8 sps:$4 sm:$0xff]  }
 0x178   : > { %v7869_v19 = vadd.f32 %v1564_v9, %v7708_v22  ;;  %2745 = vmatprep.mubr.bf16.mxu0 %v9383_v14  ;;  %2860 = vmatprep.mubr.bf16.mxu1 %v9383_v14  ;;  %v6151_v22 = vld [vmem:[%s9266_s1 + $0x200] ss:$8 sps:$4 sm:$0xff]   ;;  %v5903_v9 = vld [vmem:[%s9268_s3 + $0x44] ss:$8 sps:$4 sm:$0xff]  }
 0x179   : > { %v1566_v15 = vpop.f32.mrf.mxu0  ;;  %v1658_v4 = vpop.f32.mrf.mxu1 }
 0x17a   : > { %2728 = vmatpush1.bf16.msra.mxu0 %v6150_v56  ;;  %2843 = vmatpush1.bf16.msra.mxu1 %v6151_v22  ;;  %v5901_v4 = vld [vmem:[%s9268_s3 + $0x40] ss:$8 sps:$4 sm:$0xff]   ;;  %v5890_v22 = vld [vmem:[%s6589_s14 + $0x74] sm:$0xff]  }
 0x17b   : > { %v1567_v23 = vpop.f32.mrf.mxu0  ;;  %v1659_v1 = vpop.f32.mrf.mxu1  ;;  %3201 = vmatprep.subr.bf16.mxu1 %v5893_v43 }
 0x17d   : > { %v7888_v25 = vpop.f32.mrf.mxu0  ;;  %v7890_v44 = vpop.f32.mrf.mxu1  ;;  %2746 = vmatmul.mubr.bf16.vlgmr.msra.gmra.mxu0 %v7609_v13  ;;  %2861 = vmatmul.mubr.bf16.vlgmr.msra.gmra.mxu1 %v5888_v20  ;;  %v5906_v20 = vld [vmem:[%s9268_s3 + $0x34] ss:$8 sps:$4 sm:$0xff]  }
 0x17e   : > { %2755 = vmatprep.mubr.bf16.mxu0 %v9383_v14  ;;  %2870 = vmatprep.mubr.bf16.mxu1 %v9383_v14 }
 0x17f   : > { %v7895_v32 = vpop.f32.mrf.mxu0  ;;  %v7897_v51 = vpop.f32.mrf.mxu1  ;;  %3202 = vmatpush1.bf16.msra.mxu1 %v5891_v29  ;;  %v5904_v29 = vld [vmem:[%s9268_s3 + $0x30] ss:$8 sps:$4 sm:$0xff]  }
 0x180   : > { %3203 = vmatprep.subr.bf16.mxu1 %v5896_v38  ;;  %v5909_v38 = vld [vmem:[%s9268_s3 + $0x24] ss:$8 sps:$4 sm:$0xff]  }
 0x181   : > { %v7905_v13 = vpop.f32.mrf.mxu0  ;;  %v7907_v62 = vpop.f32.mrf.mxu1 }
 0x183   : > { %v7910_v47 = vpop.f32.mrf.mxu0  ;;  %v7912_v8 = vpop.f32.mrf.mxu1  ;;  %3204 = vmatpush1.bf16.msra.mxu1 %v5894_v6 }
 0x184   : > { %3205 = vmatprep.subr.bf16.mxu1 %v5900_v40 }
 0x185   : > { %v7920_v48 = vpop.f32.mrf.mxu0  ;;  %v7922_v50 = vpop.f32.mrf.mxu1  ;;  %2756 = vmatmul.mubr.bf16.gmra.mxu0 %v7628_v42  ;;  %2871 = vmatmul.mubr.bf16.gmra.mxu1 %v5889_v49 }
 0x186   : > { %2765 = vmatprep.mubr.bf16.mxu0 %v9383_v14  ;;  %2880 = vmatprep.mubr.bf16.mxu1 %v9383_v14 }
 0x187   : > { %v7927_v43 = vpop.f32.mrf.mxu0  ;;  %v7929_v15 = vpop.f32.mrf.mxu1  ;;  %3206 = vmatpush1.bf16.msra.mxu1 %v5898_v7 }
 0x188   : > { %3207 = vmatprep.subr.bf16.mxu1 %v5903_v9  ;;  %v5907_v9 = vld [vmem:[%s9268_s3 + $0x20] ss:$8 sps:$4 sm:$0xff]  }
 0x189   : > { %v7937_v42 = vpop.f32.mrf.mxu0  ;;  %v7939_v56 = vpop.f32.mrf.mxu1 }
 0x18b   : > { %v7942_v23 = vpop.f32.mrf.mxu0  ;;  %v7944_v1 = vpop.f32.mrf.mxu1  ;;  %3208 = vmatpush1.bf16.msra.mxu1 %v5901_v4  ;;  %v5912_v4 = vld [vmem:[%s9268_s3 + $0x14] ss:$8 sps:$4 sm:$0xff]  }
 0x18c   : > { %3209 = vmatprep.subr.bf16.mxu1 %v5906_v20 }
 0x18d   : > { %v7952_v6 = vpop.f32.mrf.mxu0  ;;  %v7954_v40 = vpop.f32.mrf.mxu1  ;;  %2766 = vmatmul.mubr.bf16.gmra.mxu0 %v7655_v12  ;;  %2881 = vmatmul.mubr.bf16.gmra.mxu1 %v5890_v22  ;;  %v5897_v22 = vld [vmem:[%s6589_s14 + $0x7c] ss:$0 sps:$4 sm:$0xff]  }
 0x18e   : > { %2775 = vmatprep.mubr.bf16.mxu0 %v9383_v14  ;;  %2890 = vmatprep.mubr.bf16.mxu1 %v9383_v14 }
 0x18f   : > { %v7959_v49 = vpop.f32.mrf.mxu0  ;;  %v7961_v7 = vpop.f32.mrf.mxu1  ;;  %3210 = vmatpush1.bf16.msra.mxu1 %v5904_v29  ;;  %v5910_v29 = vld [vmem:[%s9268_s3 + $0x10] ss:$8 sps:$4 sm:$0xff]  }
 0x190   : > { %3211 = vmatprep.subr.bf16.mxu1 %v5909_v38 }
 0x191   : > { %v1719_v12 = vpop.f32.mrf.mxu0  ;;  %v1790_v20 = vpop.f32.mrf.mxu1 }
 0x192   : > { %v1720_v57 = vadd.f32 %v1719_v12, %v7826_v27  ;;  %v1698_v12 = vadd.f32 %v7895_v32, %v7727_v31 }
 0x193   : > { %v1721_v11 = vpop.f32.mrf.mxu0  ;;  %v1792_v45 = vpop.f32.mrf.mxu1  ;;  %3212 = vmatpush1.bf16.msra.mxu1 %v5907_v9 }
 0x194   : > { %v7974_v26 = vadd.f32 %v1790_v20, %v1720_v57  ;;  %v1722_v38 = vadd.f32 %v1721_v11, %v7837_v33  ;;  %3213 = vmatprep.subr.bf16.mxu1 %v5912_v4  ;;  %v5913_v11 = vld [vmem:[%s9268_s3] ss:$8 sps:$4 sm:$0xff]   ;;  %v1696_v4 = vadd.f32 %v7888_v25, %v7716_v35  ;;  %v1700_v35 = vadd.f32 %v7905_v13, %v7738_v52 }
 0x195   : > { %v1725_v39 = vpop.f32.mrf.mxu0  ;;  %v1796_v58 = vpop.f32.mrf.mxu1  ;;  %2776 = vmatmul.mubr.bf16.gmra.mxu0 %v7682_v60  ;;  %2891 = vmatmul.mubr.bf16.gmra.mxu1 %v5897_v22 }
 0x196   : > { %v7981_v27 = vadd.f32 %v1792_v45, %v1722_v38  ;;  %v1726_v9 = vadd.f32 %v1725_v39, %v7846_v61  ;;  %3233 = vmatprep.mubr.bf16.mxu1 %v9383_v14  ;;  %3092 = vmatprep.mubr.bf16.mxu0 %v9383_v14  ;;  %v1803_v38 = vadd.f32 %v7890_v44, %v1696_v4 }
 0x197   : > { %v1727_v57 = vpop.f32.mrf.mxu0  ;;  %v1798_v33 = vpop.f32.mrf.mxu1  ;;  %3214 = vmatpush1.bf16.msra.mxu1 %v5910_v29  ;;  %v1805_v32 = vadd.f32 %v7907_v62, %v1700_v35  ;;  %v1708_v44 = vadd.f32 %v7927_v43, %v7771_v18  ;;  %v1710_v62 = vadd.f32 %v7937_v42, %v7782_v17  ;;  %v1712_v18 = vadd.f32 %v7942_v23, %v7793_v36 }
 0x198   : > { %v7991_v60 = vadd.f32 %v1796_v58, %v1726_v9  ;;  %v1728_v45 = vadd.f32 %v1727_v57, %v7859_v28  ;;  %3215 = vmatprep.subr.bf16.mxu1 %v5915_v21  ;;  %v1804_v28 = vadd.f32 %v7897_v51, %v1698_v12  ;;  %v1702_v21 = vadd.f32 %v7910_v47, %v7749_v30 }
 0x199   : > { %v1729_v39 = vpop.f32.mrf.mxu0  ;;  %v1800_v61 = vpop.f32.mrf.mxu1  ;;  %v1810_v23 = vadd.f32 %v7944_v1, %v1712_v18 }
 0x19a   : > { %v7996_v20 = vadd.f32 %v1798_v33, %v1728_v45  ;;  %v1706_v33 = vadd.f32 %v7920_v48, %v7758_v53  ;;  %v1806_v4 = vadd.f32 %v7912_v8, %v1702_v21  ;;  %v1808_v48 = vadd.f32 %v7929_v15, %v1708_v44 }
 0x19b   : > { %v1730_v22 = vpop.f32.mrf.mxu0  ;;  %v1801_v29 = vpop.f32.mrf.mxu1  ;;  %3216 = vmatpush1.bf16.msra.mxu1 %v5913_v11  ;;  %v9466_v8 = vmax.f32 %v7721_v34, %v7734_v0  ;;  %v1809_v15 = vadd.f32 %v7939_v56, %v1710_v62  ;;  %v1716_v34 = vadd.f32 %v7952_v6, %v7802_v41  ;;  %v1718_v56 = vadd.f32 %v7959_v49, %v7815_v37 }
 0x19c   : > { %v1807_v61 = vadd.f32 %v7922_v50, %v1706_v33  ;;  %v8022_v50 = vld [vmem:[%s9267_s2] ss:$0 sm:$0xff] }
 0x19d   : > { %v1851_v58 = vpop.f32.mrf.mxu0  ;;  %v1966_v25 = vpop.f32.mrf.mxu1  ;;  %v1811_v6 = vadd.f32 %v7954_v40, %v1716_v34  ;;  %v1812_v37 = vadd.f32 %v7961_v7, %v1718_v56  ;;  %v8044_v40 = vld [vmem:[%s9268_s3 + $0xf4] ss:$8 sps:$4 sm:$0xff]   ;;  %v8073_v34 = vld [vmem:[%s9268_s3 + $0xe0] ss:$8 sps:$4 sm:$0xff]  }
 0x19e   : > { %v1888_v9 = vadd.f32 %v1851_v58, %v1803_v38  ;;  %3060 = vmatprep.subr.bf16.mxu0 %v8044_v40  ;;  %9473 = vst [vmem:[#allocation7_spill] sm:$0xff] %v8073_v34 }
 0x19f   : > { %v1853_v57 = vpop.f32.mrf.mxu0  ;;  %v1968_v31 = vpop.f32.mrf.mxu1 }
 0x1a0   : > { %v1889_v11 = vadd.f32 %v1853_v57, %v1804_v28  ;;  %v2003_v51 = vadd.f32 %v1966_v25, %v1888_v9  ;;  %v9467_v9 = vmax.f32 %v7743_v46, %v7756_v24  ;;  %v9468_v46 = vmax.f32 %v7765_v55, %v7778_v54  ;;  %v8049_v54 = vld [vmem:[%s9268_s3 + $0xf0] ss:$8 sps:$4 sm:$0xff]  }
 0x1a1   : > { %v1855_v52 = vpop.f32.mrf.mxu0  ;;  %v1970_v13 = vpop.f32.mrf.mxu1  ;;  %9469 = vst [vmem:[#allocation20_spill] sm:$0xff] %v8049_v54  ;;  %3061 = vmatpush1.bf16.msra.mxu0 %v8049_v54 }
 0x1a2   : > { %v2004_v45 = vadd.f32 %v1968_v31, %v1889_v11  ;;  %v1890_v39 = vadd.f32 %v1855_v52, %v1805_v32 }
 0x1a3   : > { %v1857_v30 = vpop.f32.mrf.mxu0  ;;  %v1972_v47 = vpop.f32.mrf.mxu1 }
 0x1a4   : > { %v2017_v12 = vmax.f32 %v2003_v51, %v2004_v45  ;;  %v1891_v53 = vadd.f32 %v1857_v30, %v1806_v4  ;;  %v2005_v38 = vadd.f32 %v1970_v13, %v1890_v39 }
 0x1a5   : > { %v1861_v43 = vpop.f32.mrf.mxu0  ;;  %v1976_v22 = vpop.f32.mrf.mxu1 }
 0x1a6   : > { %v2024_v29 = vmax.f32 %v9466_v8, %v2017_v12  ;;  %v2006_v17 = vadd.f32 %v1972_v47, %v1891_v53  ;;  %v1892_v42 = vadd.f32 %v1861_v43, %v1807_v61  ;;  %v9470_v43 = vmax.f32 %v7787_v2, %v7800_v5  ;;  %v8065_v5 = vld [vmem:[%s9268_s3 + $0xe4] ss:$8 sps:$4 sm:$0xff]  }
 0x1a7   : > { %v1863_v35 = vpop.f32.mrf.mxu0  ;;  %v1978_v58 = vpop.f32.mrf.mxu1  ;;  %9472 = vst [vmem:[#allocation19_spill] sm:$0xff] %v8065_v5  ;;  %3062 = vmatprep.subr.bf16.mxu0 %v8065_v5 }
 0x1a8   : > { %v2018_v25 = vmax.f32 %v2005_v38, %v2006_v17  ;;  %v1893_v36 = vadd.f32 %v1863_v35, %v1808_v48  ;;  %v2038_v0 = vadd.f32 %v8022_v50, %v2024_v29  ;;  %v2007_v31 = vadd.f32 %v1976_v22, %v1892_v42  ;;  %3063 = vmatpush1.bf16.msra.mxu0 %v8073_v34 }
 0x1a9   : > { %v1865_v28 = vpop.f32.mrf.mxu0  ;;  %v1980_v21 = vpop.f32.mrf.mxu1 }
 0x1aa   : > { %v2025_v57 = vmax.f32 %v9467_v9, %v2018_v25  ;;  %v2008_v32 = vadd.f32 %v1978_v58, %v1893_v36  ;;  %v1894_v33 = vadd.f32 %v1865_v28, %v1809_v15  ;;  %v2045_v13 = vmax.f32 %v2038_v0, 0.0 }
 0x1ab   : > { %v1867_v11 = vpop.f32.mrf.mxu0  ;;  %v1982_v44 = vpop.f32.mrf.mxu1  ;;  %v9474_v9 = vmax.f32 %v7809_v16, %v7822_v10  ;;  %v5930_v16 = vld [vmem:[%s9268_s3 + $0x1e4] ss:$8 sps:$4 sm:$0xff]  }
 0x1ac   : > { %v2039_v1 = vadd.f32 %v8022_v50, %v2025_v57  ;;  %v2019_v52 = vmax.f32 %v2007_v31, %v2008_v32  ;;  %v1895_v41 = vadd.f32 %v1867_v11, %v1810_v23  ;;  %v2009_v39 = vadd.f32 %v1980_v21, %v1894_v33 }
 0x1ad   : > { %v1871_v4 = vpop.f32.mrf.mxu0  ;;  %v1986_v51 = vpop.f32.mrf.mxu1 }
 0x1ae   : > { %v2046_v45 = vmax.f32 %v2039_v1, 0.0  ;;  %v2026_v24 = vmax.f32 %v9468_v46, %v2019_v52  ;;  %v2010_v30 = vadd.f32 %v1982_v44, %v1895_v41  ;;  %v1896_v49 = vadd.f32 %v1871_v4, %v1811_v6  ;;  %v8099_v41 = vld [vmem:[%s9268_s3 + $0xd0] ss:$8 sps:$4 sm:$0xff]  }
 0x1af   : > { %v1873_v47 = vpop.f32.mrf.mxu0  ;;  %v1988_v61 = vpop.f32.mrf.mxu1  ;;  %9477 = vst [vmem:[#allocation8_spill] sm:$0xff] %v8099_v41  ;;  %v9478_v6 = vmax.f32 %v7831_v3, %v7844_v63  ;;  %v8115_v3 = vld [vmem:[%s9268_s3 + $0xc4] ss:$8 sps:$4 sm:$0xff]   ;;  %v5936_v63 = vld [vmem:[%s9268_s3 + $0x1d4] ss:$8 sps:$4 sm:$0xff]  }
 0x1b0   : > { %v2941_v62 = vpack.c.bf16 %v2046_v45, %v2045_v13  ;;  %v2040_v12 = vadd.f32 %v8022_v50, %v2026_v24  ;;  %v2020_v53 = vmax.f32 %v2009_v39, %v2010_v30  ;;  %v1897_v48 = vadd.f32 %v1873_v47, %v1812_v37  ;;  %9479 = vst [vmem:[#allocation22_spill] sm:$0xff] %v8115_v3  ;;  %v5934_v47 = vld [vmem:[%s9268_s3 + $0x1d0] ss:$8 sps:$4 sm:$0xff]  }
 0x1b1   : > { %v1875_v18 = vpop.f32.mrf.mxu0  ;;  %v1990_v55 = vpop.f32.mrf.mxu1  ;;  %v2011_v29 = vadd.f32 %v1986_v51, %v1896_v49  ;;  %v8123_v49 = vld [vmem:[%s9268_s3 + $0xc0] ss:$8 sps:$4 sm:$0xff]  }
 0x1b2   : > { %v2047_v7 = vmax.f32 %v2040_v12, 0.0  ;;  %v2027_v22 = vmax.f32 %v9470_v43, %v2020_v53  ;;  %v1898_v8 = vadd.f32 %v1875_v18, %v7974_v26  ;;  %3234 = vmatmul.mubr.bf16.vlgmr.msra.gmra.mxu1 %v2941_v62  ;;  %v2012_v38 = vadd.f32 %v1988_v61, %v1897_v48  ;;  %v5924_v26 = vld [vmem:[%s9268_s3 + $0x1f4] ss:$8 sps:$4 sm:$0xff]   ;;  %9480 = vst [vmem:[#allocation29_spill] sm:$0xff] %v8123_v49 }
 0x1b3   : > { %v1877_v17 = vpop.f32.mrf.mxu0  ;;  %v1992_v42 = vpop.f32.mrf.mxu1  ;;  %3243 = vmatprep.mubr.bf16.mxu1 %v9383_v14  ;;  %3533 = vmatprep.subr.bf16.mxu1 %v5924_v26  ;;  %v9483_v12 = vmax.f32 %v7853_v59, %v7869_v19  ;;  %v5942_v59 = vld [vmem:[%s9268_s3 + $0x1c4] ss:$8 sps:$4 sm:$0xff]   ;;  %v5948_v26 = vld [vmem:[%s9268_s3 + $0x1b4] ss:$8 sps:$4 sm:$0xff]  }
 0x1b4   : > { %v8058_v35 = vpack.c.bf16 %v2047_v7, %v2046_v45  ;;  %v2041_v58 = vadd.f32 %v8022_v50, %v2027_v22  ;;  %v2013_v15 = vadd.f32 %v1990_v55, %v1898_v8  ;;  %v1899_v2 = vadd.f32 %v1877_v17, %v7981_v27  ;;  %v5922_v27 = vld [vmem:[%s9268_s3 + $0x1f0] ss:$8 sps:$4 sm:$0xff]   ;;  %v8146_v22 = vld [vmem:[%s9268_s3 + $0xb4] ss:$8 sps:$4 sm:$0xff]  }
 0x1b5   : > { %v2021_v25 = vmax.f32 %v2011_v29, %v2012_v38  ;;  %v1881_v36 = vpop.f32.mrf.mxu0  ;;  %v1996_v23 = vpop.f32.mrf.mxu1  ;;  %3534 = vmatpush1.bf16.msra.mxu1 %v5922_v27  ;;  %9485 = vst [vmem:[#allocation33_spill] sm:$0xff] %v8146_v22  ;;  %v8154_v29 = vld [vmem:[%s9268_s3 + $0xb0] ss:$8 sps:$4 sm:$0xff]   ;;  %v5940_v38 = vld [vmem:[%s9268_s3 + $0x1c0] ss:$8 sps:$4 sm:$0xff]  }
 0x1b6   : > { %9471 = vst [vmem:[#allocation6_spill] sm:$0xff] %v8058_v35  ;;  %v2048_v0 = vmax.f32 %v2041_v58, 0.0  ;;  %v2014_v28 = vadd.f32 %v1992_v42, %v1899_v2  ;;  %v1900_v21 = vadd.f32 %v1881_v36, %v7991_v60  ;;  %v8090_v60 = vld [vmem:[%s9268_s3 + $0xd4] ss:$8 sps:$4 sm:$0xff]   ;;  %3535 = vmatprep.subr.bf16.mxu1 %v5930_v16  ;;  %9486 = vst [vmem:[#allocation11_spill] sm:$0xff] %v8154_v29 }
 0x1b7   : > { %v2028_v57 = vmax.f32 %v9474_v9, %v2021_v25  ;;  %v1883_v31 = vpop.f32.mrf.mxu0  ;;  %v1998_v32 = vpop.f32.mrf.mxu1  ;;  %9476 = vst [vmem:[#allocation26_spill] sm:$0xff] %v8090_v60  ;;  %3064 = vmatprep.subr.bf16.mxu0 %v8090_v60  ;;  %v8174_v2 = vld [vmem:[%s9268_s3 + $0xa4] ss:$8 sps:$4 sm:$0xff]   ;;  %v5946_v27 = vld [vmem:[%s9268_s3 + $0x1b0] ss:$8 sps:$4 sm:$0xff]  }
 0x1b8   : > { %v2022_v33 = vmax.f32 %v2013_v15, %v2014_v28  ;;  %v2015_v56 = vadd.f32 %v1996_v23, %v1900_v21  ;;  %v1901_v11 = vadd.f32 %v1883_v31, %v7996_v20  ;;  %v8085_v44 = vpack.c.bf16 %v2048_v0, %v2047_v7  ;;  %v5928_v20 = vld [vmem:[%s9268_s3 + $0x1e0] ss:$8 sps:$4 sm:$0xff]   ;;  %3065 = vmatpush1.bf16.msra.mxu0 %v8099_v41  ;;  %v5954_v31 = vld [vmem:[%s9268_s3 + $0x1a4] ss:$8 sps:$4 sm:$0xff]  }
 0x1b9   : > { %v2042_v10 = vadd.f32 %v8022_v50, %v2028_v57  ;;  %v1885_v1 = vpop.f32.mrf.mxu0  ;;  %v2000_v52 = vpop.f32.mrf.mxu1  ;;  %3536 = vmatpush1.bf16.msra.mxu1 %v5928_v20  ;;  %3066 = vmatprep.subr.bf16.mxu0 %v8115_v3  ;;  %9488 = vst [vmem:[#allocation23_spill] sm:$0xff] %v8174_v2  ;;  %v8182_v23 = vld [vmem:[%s9268_s3 + $0xa0] ss:$8 sps:$4 sm:$0xff]   ;;  %v8196_v57 = vld [vmem:[%s9268_s3 + $0x94] ss:$8 sps:$4 sm:$0xff]  }
 0x1ba   : > { %9475 = vst [vmem:[#allocation21_spill] sm:$0xff] %v8085_v44  ;;  %v2029_v13 = vmax.f32 %v9478_v6, %v2022_v33  ;;  %v2016_v4 = vadd.f32 %v1998_v32, %v1901_v11  ;;  %3244 = vmatmul.mubr.bf16.gmra.mxu1 %v8085_v44  ;;  %3537 = vmatprep.subr.bf16.mxu1 %v5936_v63  ;;  %9489 = vst [vmem:[#allocation12_spill] sm:$0xff] %v8182_v23  ;;  %v5952_v11 = vld [vmem:[%s9268_s3 + $0x1a0] ss:$8 sps:$4 sm:$0xff]   ;;  %v8220_v52 = vld [vmem:[%s9268_s3 + $0x84] ss:$8 sps:$4 sm:$0xff]  }
 0x1bb   : > { %v2049_v51 = vmax.f32 %v2042_v10, 0.0  ;;  %v1886_v45 = vpop.f32.mrf.mxu0  ;;  %v2001_v46 = vpop.f32.mrf.mxu1  ;;  %3253 = vmatprep.mubr.bf16.mxu1 %v9383_v14  ;;  %9490 = vst [vmem:[#allocation13_spill] sm:$0xff] %v8196_v57  ;;  %9492 = vst [vmem:[#allocation15_spill] sm:$0xff] %v8220_v52  ;;  %v8225_v20 = vld [vmem:[%s9268_s3 + $0x194] ss:$8 sps:$4 sm:$0xff]  }
 0x1bc   : > { %v2043_v24 = vadd.f32 %v8022_v50, %v2029_v13  ;;  %v2023_v39 = vmax.f32 %v2015_v56, %v2016_v4  ;;  %3067 = vmatpush1.bf16.msra.mxu0 %v8123_v49  ;;  %v8204_v56 = vld [vmem:[%s9268_s3 + $0x90] ss:$8 sps:$4 sm:$0xff]   ;;  %9493 = vst [vmem:[#allocation16_spill] sm:$0xff] %v8225_v20  ;;  %v8230_v4 = vld [vmem:[%s9268_s3 + $0x80] ss:$8 sps:$4 sm:$0xff]  }
 0x1bd   : > { %v2086_v30 = vpop.f32.mrf.mxu0  ;;  %v2157_v37 = vpop.f32.mrf.mxu1  ;;  %v8128_v61 = vpack.c.bf16 %v2049_v51, %v2048_v0  ;;  %v2943_v43 = vpack.c.bf16 %v2049_v51, %v2049_v51  ;;  %3538 = vmatpush1.bf16.msra.mxu1 %v5934_v47  ;;  %3068 = vmatprep.subr.bf16.mxu0 %v8146_v22  ;;  %9491 = vst [vmem:[#allocation14_spill] sm:$0xff] %v8204_v56  ;;  %9494 = vst [vmem:[#allocation17_spill] sm:$0xff] %v8230_v4  ;;  %v8244_v63 = vld [vmem:[%s9268_s3 + $0x174] ss:$8 sps:$4 sm:$0xff]  }
 0x1be   : > { %v8130_v62 = vmax.f32 %v2043_v24, 0.0  ;;  %v8135_v53 = vmax.f32 %v9483_v12, %v2023_v39  ;;  %v8137_v48 = vadd.f32 %v2157_v37, %v2086_v30  ;;  %3539 = vmatprep.subr.bf16.mxu1 %v5942_v59  ;;  %9496 = vst [vmem:[#allocation24_spill] sm:$0xff] %v8244_v63  ;;  %v8249_v30 = vld [vmem:[%s9268_s3 + $0x184] ss:$8 sps:$4 sm:$0xff]   ;;  %v8254_v12 = vld [vmem:[%s9268_s3 + $0x180] ss:$8 sps:$4 sm:$0xff]  }
 0x1bf   : > { %9481 = vst [vmem:[#allocation9_spill] sm:$0xff] %v8128_v61  ;;  %v2088_v18 = vpop.f32.mrf.mxu0  ;;  %v2159_v55 = vpop.f32.mrf.mxu1  ;;  %9497 = vst [vmem:[#allocation25_spill] sm:$0xff] %v8249_v30 }
 0x1c0   : > { %9482 = vst [vmem:[#allocation31_spill] sm:$0xff] %v8130_v62  ;;  %9484 = vst [vmem:[#allocation10_spill] sm:$0xff] %v8135_v53  ;;  %v8140_v7 = vadd.f32 %v2159_v55, %v2088_v18  ;;  %v8160_v17 = vpack.c.bf16 %v8130_v62, %v2049_v51  ;;  %3069 = vmatpush1.bf16.msra.mxu0 %v8154_v29  ;;  %v8235_v51 = vld [vmem:[%s9268_s3 + $0x190] ss:$8 sps:$4 sm:$0xff]  }
 0x1c1   : > { %v2090_v19 = vpop.f32.mrf.mxu0  ;;  %v2161_v8 = vpop.f32.mrf.mxu1  ;;  %3540 = vmatpush1.bf16.msra.mxu1 %v5940_v38  ;;  %3070 = vmatprep.subr.bf16.mxu0 %v8174_v2  ;;  %9495 = vst [vmem:[#allocation18_spill] sm:$0xff] %v8235_v51  ;;  %9498 = vst [vmem:[#allocation27_spill] sm:$0xff] %v8254_v12 }
 0x1c2   : > { %9487 = vst [vmem:[#allocation35_spill] sm:$0xff] %v8160_v17  ;;  %v8162_v42 = vadd.f32 %v2161_v8, %v2090_v19  ;;  %3254 = vmatmul.mubr.bf16.gmra.mxu1 %v2943_v43  ;;  %3541 = vmatprep.subr.bf16.mxu1 %v5948_v26 }
 0x1c3   : > { %v8165_v58 = vpop.f32.mrf.mxu0  ;;  %v8167_v15 = vpop.f32.mrf.mxu1  ;;  %3565 = vmatprep.mubr.bf16.mxu1 %v9383_v14 }
 0x1c4   : > { %3071 = vmatpush1.bf16.msra.mxu0 %v8182_v23 }
 0x1c5   : > { %v2096_v25 = vpop.f32.mrf.mxu0  ;;  %v2167_v36 = vpop.f32.mrf.mxu1  ;;  %3542 = vmatpush1.bf16.msra.mxu1 %v5946_v27  ;;  %3072 = vmatprep.subr.bf16.mxu0 %v8196_v57 }
 0x1c6   : > { %v8187_v0 = vadd.f32 %v2167_v36, %v2096_v25  ;;  %3543 = vmatprep.subr.bf16.mxu1 %v5954_v31 }
 0x1c7   : > { %v2098_v28 = vpop.f32.mrf.mxu0  ;;  %v2169_v21 = vpop.f32.mrf.mxu1 }
 0x1c8   : > { %v8190_v9 = vadd.f32 %v2169_v21, %v2098_v28  ;;  %3073 = vmatpush1.bf16.msra.mxu0 %v8204_v56 }
 0x1c9   : > { %v2100_v32 = vpop.f32.mrf.mxu0  ;;  %v2171_v33 = vpop.f32.mrf.mxu1  ;;  %3544 = vmatpush1.bf16.msra.mxu1 %v5952_v11  ;;  %3074 = vmatprep.subr.bf16.mxu0 %v8220_v52 }
 0x1ca   : > { %v8209_v16 = vadd.f32 %v2171_v33, %v2100_v32  ;;  %3545 = vmatprep.subr.bf16.mxu1 %v8225_v20 }
 0x1cb   : > { %v8212_v10 = vpop.f32.mrf.mxu0  ;;  %v8214_v1 = vpop.f32.mrf.mxu1 }
 0x1cc   : > { %3075 = vmatpush1.bf16.msra.mxu0 %v8230_v4 }
 0x1cd   : > { %v2106_v6 = vpop.f32.mrf.mxu0  ;;  %v2177_v13 = vpop.f32.mrf.mxu1  ;;  %3546 = vmatpush1.bf16.msra.mxu1 %v8235_v51  ;;  %3362 = vmatprep.subr.bf16.mxu0 %v8244_v63 }
 0x1ce   : > { %v2178_v45 = vadd.f32 %v2177_v13, %v2106_v6  ;;  %3547 = vmatprep.subr.bf16.mxu1 %v8249_v30 }
 0x1cf   : > { %v2108_v46 = vpop.f32.mrf.mxu0  ;;  %v2179_v24 = vpop.f32.mrf.mxu1 }
 0x1d0   : > { %v2180_v39 = vadd.f32 %v2179_v24, %v2108_v46 }
 0x1d1   : > { %v2110_v37 = vpop.f32.mrf.mxu0  ;;  %v2181_v47 = vpop.f32.mrf.mxu1  ;;  %3548 = vmatpush1.bf16.msra.mxu1 %v8254_v12 }
 0x1d2   : > { %v2182_v18 = vadd.f32 %v2181_v47, %v2110_v37  ;;  %3779 = vmatprep.subr.bf16.mxu1 %v8044_v40 }
 0x1d3   : > { %v8258_v55 = vpop.f32.mrf.mxu0  ;;  %v8260_v43 = vpop.f32.mrf.mxu1 }
 0x1d5   : > { %v2116_v59 = vpop.f32.mrf.mxu0  ;;  %v2187_v19 = vpop.f32.mrf.mxu1 }
 0x1d6   : > { %v2188_v8 = vadd.f32 %v2187_v19, %v2116_v59 }
 0x1d7   : > { %v2118_v38 = vpop.f32.mrf.mxu0  ;;  %v2189_v26 = vpop.f32.mrf.mxu1 }
 0x1d8   : > { %v2190_v25 = vadd.f32 %v2189_v26, %v2118_v38 }
 0x1d9   : > { %v2120_v36 = vpop.f32.mrf.mxu0  ;;  %v2191_v27 = vpop.f32.mrf.mxu1 }
 0x1db   : > { %v2121_v28 = vpop.f32.mrf.mxu0  ;;  %v2192_v21 = vpop.f32.mrf.mxu1 }
 0x1dd   : > { %v2228_v31 = vpop.f32.mrf.mxu0  ;;  %v2313_v32 = vpop.f32.mrf.mxu1 }
 0x1de   : > { %v2265_v33 = vadd.f32 %v2228_v31, %v8137_v48 }
 0x1df   : > { %v2230_v11 = vpop.f32.mrf.mxu0  ;;  %v2315_v6 = vpop.f32.mrf.mxu1 }
 0x1e0   : > { %v2350_v13 = vadd.f32 %v2313_v32, %v2265_v33  ;;  %v2266_v46 = vadd.f32 %v2230_v11, %v8140_v7 }
 0x1e1   : > { %v2232_v24 = vpop.f32.mrf.mxu0  ;;  %v2317_v37 = vpop.f32.mrf.mxu1 }
 0x1e2   : > { %v2351_v40 = vadd.f32 %v2315_v6, %v2266_v46  ;;  %v2267_v47 = vadd.f32 %v2232_v24, %v8162_v42 }
 0x1e3   : > { %v8267_v59 = vpop.f32.mrf.mxu0  ;;  %v8269_v19 = vpop.f32.mrf.mxu1 }
 0x1e4   : > { %v2352_v38 = vadd.f32 %v2317_v37, %v2267_v47 }
 0x1e5   : > { %v2238_v26 = vpop.f32.mrf.mxu0  ;;  %v2323_v36 = vpop.f32.mrf.mxu1 }
 0x1e6   : > { %v2269_v27 = vadd.f32 %v2238_v26, %v8187_v0 }
 0x1e7   : > { %v2240_v48 = vpop.f32.mrf.mxu0  ;;  %v2325_v28 = vpop.f32.mrf.mxu1 }
 0x1e8   : > { %v2354_v21 = vadd.f32 %v2323_v36, %v2269_v27  ;;  %v2270_v31 = vadd.f32 %v2240_v48, %v8190_v9 }
 0x1e9   : > { %v2242_v7 = vpop.f32.mrf.mxu0  ;;  %v2327_v32 = vpop.f32.mrf.mxu1 }
 0x1ea   : > { %v2355_v33 = vadd.f32 %v2325_v28, %v2270_v31  ;;  %v2271_v11 = vadd.f32 %v2242_v7, %v8209_v16 }
 0x1eb   : > { %v8274_v42 = vpop.f32.mrf.mxu0  ;;  %v8276_v6 = vpop.f32.mrf.mxu1 }
 0x1ec   : > { %v2356_v46 = vadd.f32 %v2327_v32, %v2271_v11 }
 0x1ed   : > { %v2248_v24 = vpop.f32.mrf.mxu0  ;;  %v2333_v37 = vpop.f32.mrf.mxu1 }
 0x1ee   : > { %v2273_v47 = vadd.f32 %v2248_v24, %v2178_v45 }
 0x1ef   : > { %v2250_v12 = vpop.f32.mrf.mxu0  ;;  %v2335_v0 = vpop.f32.mrf.mxu1 }
 0x1f0   : > { %v2358_v26 = vadd.f32 %v2333_v37, %v2273_v47  ;;  %v2274_v30 = vadd.f32 %v2250_v12, %v2180_v39 }
 0x1f1   : > { %v2252_v36 = vpop.f32.mrf.mxu0  ;;  %v2337_v27 = vpop.f32.mrf.mxu1 }
 0x1f2   : > { %v2359_v9 = vadd.f32 %v2335_v0, %v2274_v30  ;;  %v2275_v48 = vadd.f32 %v2252_v36, %v2182_v18 }
 0x1f3   : > { %v8278_v51 = vpop.f32.mrf.mxu0  ;;  %v8280_v28 = vpop.f32.mrf.mxu1 }
 0x1f4   : > { %9499 = vst [vmem:[#allocation28_spill] sm:$0xff] %v8280_v28  ;;  %v2360_v16 = vadd.f32 %v2337_v27, %v2275_v48 }
 0x1f5   : > { %v2258_v31 = vpop.f32.mrf.mxu0  ;;  %v2343_v7 = vpop.f32.mrf.mxu1 }
 0x1f6   : > { %v2277_v20 = vadd.f32 %v2258_v31, %v2188_v8 }
 0x1f7   : > { %v2260_v32 = vpop.f32.mrf.mxu0  ;;  %v2345_v11 = vpop.f32.mrf.mxu1 }
 0x1f8   : > { %v2362_v17 = vadd.f32 %v2343_v7, %v2277_v20  ;;  %v2278_v45 = vadd.f32 %v2260_v32, %v2190_v25 }
 0x1f9   : > { %v2262_v24 = vpop.f32.mrf.mxu0  ;;  %v2347_v53 = vpop.f32.mrf.mxu1 }
 0x1fa   : > { %v2363_v37 = vadd.f32 %v2345_v11, %v2278_v45 }
 0x1fb   : > { %v2263_v39 = vpop.f32.mrf.mxu0  ;;  %v2348_v12 = vpop.f32.mrf.mxu1 }
 0x1fd   : > { %v2428_v47 = vpop.f32.mrf.mxu0  ;;  %v8282_v30 = vpop.f32.mrf.mxu1 }
 0x1fe   : > { %v8284_v18 = vadd.f32 %v2428_v47, %v2350_v13 }
 0x1ff   : > { %v2430_v0 = vpop.f32.mrf.mxu0  ;;  %v8286_v36 = vpop.f32.mrf.mxu1 }
 0x200   : > { %v8288_v27 = vadd.f32 %v2430_v0, %v2351_v40 }
 0x201   : > { %v2432_v8 = vpop.f32.mrf.mxu0  ;;  %v8290_v48 = vpop.f32.mrf.mxu1 }
 0x202   : > { %v8294_v53 = vadd.f32 %v2432_v8, %v2352_v38 }
 0x203   : > { %v8296_v25 = vpop.f32.mrf.mxu0  ;;  %v8298_v31 = vpop.f32.mrf.mxu1 }
 0x205   : > { %v2438_v7 = vpop.f32.mrf.mxu0  ;;  %v8300_v13 = vpop.f32.mrf.mxu1 }
 0x206   : > { %v8302_v32 = vadd.f32 %v2438_v7, %v2354_v21 }
 0x207   : > { %v2440_v11 = vpop.f32.mrf.mxu0  ;;  %v8304_v40 = vpop.f32.mrf.mxu1 }
 0x208   : > { %9500 = vst [vmem:[#allocation30_spill] sm:$0xff] %v8302_v32  ;;  %v8306_v45 = vadd.f32 %v2440_v11, %v2355_v33 }
 0x209   : > { %v2442_v24 = vpop.f32.mrf.mxu0  ;;  %v8308_v39 = vpop.f32.mrf.mxu1 }
 0x20a   : > { %9501 = vst [vmem:[#allocation32_spill] sm:$0xff] %v8306_v45  ;;  %v8312_v12 = vadd.f32 %v2442_v24, %v2356_v46 }
 0x20b   : > { %v8314_v47 = vpop.f32.mrf.mxu0  ;;  %v8316_v0 = vpop.f32.mrf.mxu1 }
 0x20c   : > { %9502 = vst [vmem:[#allocation34_spill] sm:$0xff] %v8312_v12 }
 0x20d   : > { %v2448_v8 = vpop.f32.mrf.mxu0  ;;  %v8318_v21 = vpop.f32.mrf.mxu1 }
 0x20e   : > { %v8320_v7 = vadd.f32 %v2448_v8, %v2358_v26 }
 0x20f   : > { %v2450_v20 = vpop.f32.mrf.mxu0  ;;  %v8322_v33 = vpop.f32.mrf.mxu1 }
 0x210   : > { %9503 = vst [vmem:[#allocation36_spill] sm:$0xff] %v8320_v7  ;;  %v8324_v11 = vadd.f32 %v2450_v20, %v2359_v9 }
 0x211   : > { %v2452_v44 = vpop.f32.mrf.mxu0  ;;  %v8326_v62 = vpop.f32.mrf.mxu1 }
 0x212   : > { %9504 = vst [vmem:[#allocation37_spill] sm:$0xff] %v8324_v11  ;;  %v8330_v24 = vadd.f32 %v2452_v44, %v2360_v16 }
 0x213   : > { %v8332_v38 = vpop.f32.mrf.mxu0  ;;  %v8334_v61 = vpop.f32.mrf.mxu1 }
 0x214   : > { %9505 = vst [vmem:[#allocation38_spill] sm:$0xff] %v8330_v24  ;;  %9506 = vst [vmem:[#allocation39_spill] sm:$0xff] %v8332_v38 }
 0x215   : > { %9507 = vst [vmem:[#allocation40_spill] sm:$0xff] %v8334_v61  ;;  %v2458_v63 = vpop.f32.mrf.mxu0  ;;  %v2550_v26 = vpop.f32.mrf.mxu1 }
 0x216   : > { %v8336_v8 = vadd.f32 %v2458_v63, %v2362_v17 }
 0x217   : > { %v2460_v4 = vpop.f32.mrf.mxu0  ;;  %v2552_v35 = vpop.f32.mrf.mxu1 }
 0x218   : > { %9508 = vst [vmem:[#allocation41_spill] sm:$0xff] %v8336_v8  ;;  %v8338_v9 = vadd.f32 %v2460_v4, %v2363_v37 }
 0x219   : > { %v2462_v20 = vpop.f32.mrf.mxu0  ;;  %v2554_v52 = vpop.f32.mrf.mxu1 }
 0x21a   : > { %9509 = vst [vmem:[#allocation42_spill] sm:$0xff] %v8338_v9 }
 0x21b   : > { %v2463_v46 = vpop.f32.mrf.mxu0  ;;  %v2555_v44 = vpop.f32.mrf.mxu1 }
 0x21d   : > { %v2591_v16 = vpop.f32.mrf.mxu0  ;;  %v2662_v57 = vpop.f32.mrf.mxu1 }
 0x21e   : > { %v2592_v28 = vadd.f32 %v2591_v16, %v8282_v30  ;;  %v9516_v16 = vmax.f32 %v8284_v18, %v8288_v27 }
 0x21f   : > { %v2593_v23 = vpop.f32.mrf.mxu0  ;;  %v2664_v2 = vpop.f32.mrf.mxu1 }
 0x221   : > { %v2595_v29 = vpop.f32.mrf.mxu0  ;;  %v2666_v22 = vpop.f32.mrf.mxu1 }
 0x223   : > { %v2597_v49 = vpop.f32.mrf.mxu0  ;;  %v2668_v17 = vpop.f32.mrf.mxu1 }
 0x225   : > { %v2601_v63 = vpop.f32.mrf.mxu0  ;;  %v2672_v3 = vpop.f32.mrf.mxu1 }
 0x227   : > { %v2603_v41 = vpop.f32.mrf.mxu0  ;;  %v2674_v4 = vpop.f32.mrf.mxu1 }
 0x229   : > { %v2605_v37 = vpop.f32.mrf.mxu0  ;;  %v8342_v20 = vpop.f32.mrf.mxu1 }
 0x22b   : > { %v2607_v52 = vpop.f32.mrf.mxu0  ;;  %v8344_v60 = vpop.f32.mrf.mxu1 }
 0x22d   : > { %v8346_v46 = vpop.f32.mrf.mxu0  ;;  %v8348_v44 = vpop.f32.mrf.mxu1 }
 0x22e   : > { %9510 = vst [vmem:[#allocation43_spill] sm:$0xff] %v8348_v44 }
 0x22f   : > { %v8350_v56 = vpop.f32.mrf.mxu0  ;;  %v8352_v9 = vpop.f32.mrf.mxu1 }
 0x230   : > { %9511 = vst [vmem:[#allocation44_spill] sm:$0xff] %v8352_v9  ;;  %v2594_v9 = vadd.f32 %v2593_v23, %v8286_v36 }
 0x231   : > { %v8354_v8 = vpop.f32.mrf.mxu0  ;;  %v8356_v34 = vpop.f32.mrf.mxu1 }
 0x232   : > { %9512 = vst [vmem:[#allocation45_spill] sm:$0xff] %v8354_v8  ;;  %9513 = vst [vmem:[#allocation46_spill] sm:$0xff] %v8356_v34  ;;  %v2164_v34 = vadd.f32 %v8167_v15, %v8165_v58  ;;  %v2699_v8 = vadd.f32 %v2662_v57, %v2592_v28 }
 0x233   : > { %v8358_v5 = vpop.f32.mrf.mxu0  ;;  %v8360_v54 = vpop.f32.mrf.mxu1 }
 0x234   : > { %9514 = vst [vmem:[#allocation47_spill] sm:$0xff] %v8358_v5  ;;  %9515 = vst [vmem:[#allocation48_spill] sm:$0xff] %v8360_v54 }
 0x235   : > { %v2621_v24 = vpop.f32.mrf.mxu0  ;;  %v2692_v11 = vpop.f32.mrf.mxu1 }
 0x236   : > { %v2622_v7 = vadd.f32 %v2621_v24, %v2550_v26  ;;  %v2596_v24 = vadd.f32 %v2595_v29, %v8290_v48  ;;  %v2268_v26 = vadd.f32 %v8267_v59, %v2164_v34 }
 0x237   : > { %v2623_v14 = vpop.f32.mrf.mxu0  ;;  %v2694_v38 = vpop.f32.mrf.mxu1 }
 0x238   : > { %v8363_v12 = vadd.f32 %v2692_v11, %v2622_v7  ;;  %v2624_v45 = vadd.f32 %v2623_v14, %v2552_v35  ;;  %v2700_v11 = vadd.f32 %v2664_v2, %v2594_v9  ;;  %v2598_v14 = vadd.f32 %v2597_v49, %v8298_v31 }
 0x239   : > { %v2625_v32 = vpop.f32.mrf.mxu0  ;;  %v2696_v61 = vpop.f32.mrf.mxu1  ;;  %v2701_v36 = vadd.f32 %v2666_v22, %v2596_v24  ;;  %v2174_v49 = vadd.f32 %v8214_v1, %v8212_v10  ;;  %v2606_v31 = vadd.f32 %v2605_v37, %v8308_v39  ;;  %v2614_v24 = vadd.f32 %v8350_v56, %v8322_v33 }
 0x23a   : > { %v8366_v44 = vadd.f32 %v2694_v38, %v2624_v45  ;;  %v2602_v32 = vadd.f32 %v2601_v63, %v8300_v13  ;;  %v2702_v15 = vadd.f32 %v2668_v17, %v2598_v14  ;;  %v2608_v38 = vadd.f32 %v2607_v52, %v8316_v0 }
 0x23b   : > { %v2626_v54 = vpop.f32.mrf.mxu0  ;;  %v2697_v5 = vpop.f32.mrf.mxu1  ;;  %v2612_v0 = vadd.f32 %v8346_v46, %v8318_v21  ;;  %v9517_v46 = vld [vmem:[#allocation45_spill] sm:$0xff] }
 0x23c   : > { %v2353_v54 = vadd.f32 %v8269_v19, %v2268_v26  ;;  %v2604_v5 = vadd.f32 %v2603_v41, %v8304_v40  ;;  %v2703_v48 = vadd.f32 %v2672_v3, %v2602_v32  ;;  %v2272_v41 = vadd.f32 %v8274_v42, %v2174_v49 }
 0x23d   : > { %v2747_v30 = vpop.f32.mrf.mxu0  ;;  %v2862_v7 = vpop.f32.mrf.mxu1  ;;  %v2184_v3 = vadd.f32 %v8260_v43, %v8258_v55  ;;  %v2705_v42 = vadd.f32 %v8342_v20, %v2606_v31  ;;  %v2706_v27 = vadd.f32 %v8344_v60, %v2608_v38 }
 0x23e   : > { %v2784_v35 = vadd.f32 %v2747_v30, %v2699_v8  ;;  %v2468_v2 = vadd.f32 %v8296_v25, %v2353_v54  ;;  %v2704_v40 = vadd.f32 %v2674_v4, %v2604_v5  ;;  %v2357_v18 = vadd.f32 %v8276_v6, %v2272_v41  ;;  %v9521_v54 = vld [vmem:[#allocation47_spill] sm:$0xff] }
 0x23f   : > { %v2749_v61 = vpop.f32.mrf.mxu0  ;;  %v2864_v23 = vpop.f32.mrf.mxu1  ;;  %v2616_v6 = vadd.f32 %v9517_v46, %v8326_v62  ;;  %v9523_v62 = vld [vmem:[#allocation32_spill] sm:$0xff]  ;;  %v8413_v41 = vld [vmem:[%s9268_s3 + $0x170] ss:$8 sps:$4 sm:$0xff]  }
 0x240   : > { %v2785_v45 = vadd.f32 %v2749_v61, %v2700_v11  ;;  %v2899_v34 = vadd.f32 %v2862_v7, %v2784_v35  ;;  %v2480_v39 = vmax.f32 %v8294_v53, %v2468_v2  ;;  %v2276_v11 = vadd.f32 %v8278_v51, %v2184_v3  ;;  %v9518_v35 = vld [vmem:[#allocation43_spill] sm:$0xff] }
 0x241   : > { %v2751_v58 = vpop.f32.mrf.mxu0  ;;  %v2866_v29 = vpop.f32.mrf.mxu1  ;;  %v2472_v21 = vadd.f32 %v8314_v47, %v2357_v18  ;;  %v2707_v61 = vadd.f32 %v9518_v35, %v2612_v0 }
 0x242   : > { %v2900_v57 = vadd.f32 %v2864_v23, %v2785_v45  ;;  %v2786_v59 = vadd.f32 %v2751_v58, %v2701_v36  ;;  %v9519_v36 = vld [vmem:[#allocation44_spill] sm:$0xff] }
 0x243   : > { %v2753_v28 = vpop.f32.mrf.mxu0  ;;  %v2868_v22 = vpop.f32.mrf.mxu1  ;;  %v2708_v32 = vadd.f32 %v9519_v36, %v2614_v24  ;;  %v9520_v45 = vld [vmem:[#allocation40_spill] sm:$0xff] }
 0x244   : > { %v2913_v13 = vmax.f32 %v2899_v34, %v2900_v57  ;;  %v2787_v19 = vadd.f32 %v2753_v28, %v2702_v15  ;;  %v2901_v1 = vadd.f32 %v2866_v29, %v2786_v59  ;;  %v2618_v5 = vadd.f32 %v9521_v54, %v9520_v45  ;;  %v9522_v34 = vld [vmem:[#allocation30_spill] sm:$0xff] }
 0x245   : > { %v2757_v8 = vpop.f32.mrf.mxu0  ;;  %v2872_v9 = vpop.f32.mrf.mxu1  ;;  %v9524_v57 = vmax.f32 %v9522_v34, %v9523_v62  ;;  %v9525_v28 = vld [vmem:[#allocation34_spill] sm:$0xff]  ;;  %v8465_v34 = vld [vmem:[%s9268_s3 + $0x144] ss:$8 sps:$4 sm:$0xff]  }
 0x246   : > { %v2920_v10 = vmax.f32 %v9516_v16, %v2913_v13  ;;  %v2902_v25 = vadd.f32 %v2868_v22, %v2787_v19  ;;  %v2788_v17 = vadd.f32 %v2757_v8, %v2703_v48  ;;  %v2482_v22 = vmax.f32 %v9525_v28, %v2472_v21  ;;  %v9526_v48 = vld [vmem:[#allocation46_spill] sm:$0xff]  ;;  %v8421_v16 = vld [vmem:[%s9268_s3 + $0x164] ss:$8 sps:$4 sm:$0xff]  }
 0x247   : > { %v2759_v63 = vpop.f32.mrf.mxu0  ;;  %v2874_v37 = vpop.f32.mrf.mxu1  ;;  %v2709_v31 = vadd.f32 %v9526_v48, %v2616_v6 }
 0x248   : > { %v2914_v4 = vmax.f32 %v2901_v1, %v2902_v25  ;;  %v2789_v52 = vadd.f32 %v2759_v63, %v2704_v40  ;;  %v2927_v55 = vadd.f32 %v8022_v50, %v2920_v10  ;;  %v2903_v30 = vadd.f32 %v2872_v9, %v2788_v17  ;;  %v9527_v10 = vld [vmem:[#allocation28_spill] sm:$0xff] }
 0x249   : > { %v2761_v43 = vpop.f32.mrf.mxu0  ;;  %v2876_v53 = vpop.f32.mrf.mxu1  ;;  %v2361_v1 = vadd.f32 %v9527_v10, %v2276_v11  ;;  %v9528_v25 = vld [vmem:[#allocation48_spill] sm:$0xff]  ;;  %v9540_v10 = vld [vmem:[#allocation42_spill] sm:$0xff] }
 0x24a   : > { %v2921_v26 = vmax.f32 %v2480_v39, %v2914_v4  ;;  %v2790_v7 = vadd.f32 %v2761_v43, %v2705_v42  ;;  %v2904_v20 = vadd.f32 %v2874_v37, %v2789_v52  ;;  %v2934_v58 = vmax.f32 %v2927_v55, 0.0  ;;  %v9529_v52 = vld [vmem:[#allocation39_spill] sm:$0xff]  ;;  %v8431_v55 = vld [vmem:[%s9268_s3 + $0x160] ss:$8 sps:$4 sm:$0xff]  }
 0x24b   : > { %v2763_v14 = vpop.f32.mrf.mxu0  ;;  %v2878_v60 = vpop.f32.mrf.mxu1  ;;  %v2710_v17 = vadd.f32 %v9528_v25, %v2618_v5  ;;  %v2476_v18 = vadd.f32 %v9529_v52, %v2361_v1  ;;  %v9530_v43 = vmov 0   ;;  %v9545_v52 = vld [vmem:[#allocation33_spill] sm:$0xff] }
 0x24c   : > { %v2928_v56 = vadd.f32 %v8022_v50, %v2921_v26  ;;  %v2915_v33 = vmax.f32 %v2903_v30, %v2904_v20  ;;  %v2791_v23 = vadd.f32 %v2763_v14, %v2706_v27  ;;  %v2905_v51 = vadd.f32 %v2876_v53, %v2790_v7  ;;  %v8441_v20 = vld [vmem:[%s9268_s3 + $0x154] ss:$8 sps:$4 sm:$0xff]   ;;  %v9531_v14 = vld [vmem:[#allocation36_spill] sm:$0xff] }
 0x24d   : > { %v2767_v29 = vpop.f32.mrf.mxu0  ;;  %v2882_v47 = vpop.f32.mrf.mxu1 }
 0x24e   : > { %v2935_v15 = vmax.f32 %v2928_v56, 0.0  ;;  %v2922_v59 = vmax.f32 %v9524_v57, %v2915_v33  ;;  %v2792_v49 = vadd.f32 %v2767_v29, %v2707_v61  ;;  %v2906_v2 = vadd.f32 %v2878_v60, %v2791_v23  ;;  %v9532_v60 = vld [vmem:[#allocation37_spill] sm:$0xff]  ;;  %v9534_v23 = vld [vmem:[#allocation38_spill] sm:$0xff] }
 0x24f   : > { %v2769_v13 = vpop.f32.mrf.mxu0  ;;  %v2884_v19 = vpop.f32.mrf.mxu1  ;;  %v9533_v35 = vmax.f32 %v9531_v14, %v9532_v60  ;;  %v2484_v36 = vmax.f32 %v9534_v23, %v2476_v18  ;;  %v9550_v14 = vld [vmem:[#allocation14_spill] sm:$0xff]  ;;  %v9553_v23 = vld [vmem:[#allocation17_spill] sm:$0xff] }
 0x250   : > { %v8415_v40 = vpack.c.bf16 %v2935_v15, %v2934_v58  ;;  %v2929_v38 = vadd.f32 %v8022_v50, %v2922_v59  ;;  %v2916_v8 = vmax.f32 %v2905_v51, %v2906_v2  ;;  %v2793_v9 = vadd.f32 %v2769_v13, %v2708_v32  ;;  %v9535_v32 = vld [vmem:[#allocation20_spill] sm:$0xff]  ;;  %v9537_v2 = vld [vmem:[#allocation7_spill] sm:$0xff] }
 0x251   : > { %v2907_v3 = vadd.f32 %v2882_v47, %v2792_v49  ;;  %v2771_v39 = vpop.f32.mrf.mxu0  ;;  %v2886_v63 = vpop.f32.mrf.mxu1  ;;  %v9536_v47 = vld [vmem:[#allocation19_spill] sm:$0xff]  ;;  %v8477_v13 = vld [vmem:[%s9268_s3 + $0x140] ss:$8 sps:$4 sm:$0xff]  }
 0x252   : > { %v2936_v37 = vmax.f32 %v2929_v38, 0.0  ;;  %v2923_v42 = vmax.f32 %v2482_v22, %v2916_v8  ;;  %v2794_v0 = vadd.f32 %v2771_v39, %v2709_v31  ;;  %v2908_v4 = vadd.f32 %v2884_v19, %v2793_v9  ;;  %3093 = vmatmul.mubr.bf16.vlgmr.msra.gmra.mxu0 %v8415_v40  ;;  %v9538_v19 = vld [vmem:[#allocation26_spill] sm:$0xff]  ;;  %v9539_v9 = vld [vmem:[#allocation41_spill] sm:$0xff] }
 0x253   : > { %3363 = vmatpush1.bf16.msra.mxu0 %v8413_v41  ;;  %v2773_v27 = vpop.f32.mrf.mxu0  ;;  %v2888_v24 = vpop.f32.mrf.mxu1  ;;  %3102 = vmatprep.mubr.bf16.mxu0 %v9530_v43  ;;  %v9541_v1 = vmax.f32 %v9539_v9, %v9540_v10  ;;  %v9543_v39 = vld [vmem:[#allocation22_spill] sm:$0xff]  ;;  %v8704_v9 = vld [vmem:[%s9268_s3 + $0x200] ss:$8 sps:$4 sm:$0xff]  }
 0x254   : > { %v8434_v53 = vpack.c.bf16 %v2936_v37, %v2935_v15  ;;  %v2930_v26 = vadd.f32 %v8022_v50, %v2923_v42  ;;  %v2917_v30 = vmax.f32 %v2907_v3, %v2908_v4  ;;  %v2795_v7 = vadd.f32 %v2773_v27, %v2710_v17  ;;  %3364 = vmatprep.subr.bf16.mxu0 %v8421_v16  ;;  %v9542_v17 = vld [vmem:[#allocation8_spill] sm:$0xff]  ;;  %v8504_v3 = vld [vmem:[%s9268_s3 + $0x130] ss:$8 sps:$4 sm:$0xff]   ;;  %v8536_v27 = vld [vmem:[%s9268_s3 + $0x114] ss:$8 sps:$4 sm:$0xff]  }
 0x255   : > { %v2909_v11 = vadd.f32 %v2886_v63, %v2794_v0  ;;  %v2777_v21 = vpop.f32.mrf.mxu0  ;;  %v2892_v46 = vpop.f32.mrf.mxu1  ;;  %v8517_v42 = vld [vmem:[%s9268_s3 + $0x124] ss:$8 sps:$4 sm:$0xff]   ;;  %v8525_v4 = vld [vmem:[%s9268_s3 + $0x120] ss:$8 sps:$4 sm:$0xff]   ;;  %v8574_v60 = vld [vmem:[%s9268_s3 + $0x270] ss:$8 sps:$4 sm:$0xff]  }
 0x256   : > { %v2937_v6 = vmax.f32 %v2930_v26, 0.0  ;;  %v2924_v61 = vmax.f32 %v9533_v35, %v2917_v30  ;;  %v2796_v56 = vadd.f32 %v2777_v21, %v8363_v12  ;;  %v2910_v33 = vadd.f32 %v2888_v24, %v2795_v7  ;;  %3566 = vmatmul.mubr.bf16.vlgmr.msra.gmra.mxu1 %v8434_v53  ;;  %v8456_v12 = vld [vmem:[%s9268_s3 + $0x150] ss:$8 sps:$4 sm:$0xff]   ;;  %v9544_v0 = vld [vmem:[#allocation29_spill] sm:$0xff]  ;;  %v6152_v10 = vld [vmem:[%s9268_s3 + $0x74] ss:$8 sps:$4 sm:$0xff]  }
 0x257   : > { %3365 = vmatpush1.bf16.msra.mxu0 %v8431_v55  ;;  %3780 = vmatpush1.bf16.msra.mxu1 %v9535_v32  ;;  %v2779_v45 = vpop.f32.mrf.mxu0  ;;  %v2894_v54 = vpop.f32.mrf.mxu1  ;;  %v9546_v24 = vld [vmem:[#allocation11_spill] sm:$0xff]  ;;  %v8553_v7 = vld [vmem:[%s9268_s3 + $0x104] ss:$8 sps:$4 sm:$0xff]   ;;  %v8560_v21 = vld [vmem:[%s9268_s3 + $0x100] ss:$8 sps:$4 sm:$0xff]  }
 0x258   : > { %v2931_v5 = vadd.f32 %v8022_v50, %v2924_v61  ;;  %v2918_v58 = vmax.f32 %v2909_v11, %v2910_v33  ;;  %v2797_v51 = vadd.f32 %v2779_v45, %v8366_v44  ;;  %v2911_v29 = vadd.f32 %v2892_v46, %v2796_v56  ;;  %3366 = vmatprep.subr.bf16.mxu0 %v8441_v20  ;;  %v8546_v26 = vld [vmem:[%s9268_s3 + $0x110] ss:$8 sps:$4 sm:$0xff]   ;;  %v9548_v11 = vld [vmem:[#allocation12_spill] sm:$0xff]  ;;  %v9549_v46 = vld [vmem:[#allocation13_spill] sm:$0xff] }
 0x259   : > { %3781 = vmatprep.subr.bf16.mxu1 %v9536_v47  ;;  %v8460_v15 = vpack.c.bf16 %v2937_v6, %v2936_v37  ;;  %3575 = vmatprep.mubr.bf16.mxu1 %v9530_v43  ;;  %v2896_v44 = vpop.f32.mrf.mxu1  ;;  %v2781_v62 = vpop.f32.mrf.mxu0  ;;  %v9547_v30 = vld [vmem:[#allocation23_spill] sm:$0xff]  ;;  %v8581_v61 = vld [vmem:[%s9268_s3 + $0x264] ss:$8 sps:$4 sm:$0xff]   ;;  %v9552_v33 = vld [vmem:[#allocation6_spill] sm:$0xff] }
 0x25a   : > { %v8468_v57 = vmax.f32 %v2931_v5, 0.0  ;;  %v2925_v59 = vmax.f32 %v2484_v36, %v2918_v58  ;;  %v2912_v49 = vadd.f32 %v2894_v54, %v2797_v51  ;;  %v9551_v35 = vld [vmem:[#allocation15_spill] sm:$0xff]  ;;  %v8593_v32 = vld [vmem:[%s9268_s3 + $0x260] ss:$8 sps:$4 sm:$0xff]  }
 0x25b   : > { %3103 = vmatmul.mubr.bf16.gmra.mxu0 %v8460_v15  ;;  %3782 = vmatpush1.bf16.msra.mxu1 %v9537_v2  ;;  %v2897_v28 = vpop.f32.mrf.mxu1  ;;  %v2782_v22 = vpop.f32.mrf.mxu0  ;;  %v9554_v45 = vld [vmem:[#allocation24_spill] sm:$0xff]  ;;  %v8601_v54 = vld [vmem:[%s9268_s3 + $0x254] ss:$8 sps:$4 sm:$0xff]   ;;  %v8614_v51 = vld [vmem:[%s9268_s3 + $0x250] ss:$8 sps:$4 sm:$0xff]  }
 0x25c   : > { %v2932_v48 = vadd.f32 %v8022_v50, %v2925_v59  ;;  %v2919_v31 = vmax.f32 %v2911_v29, %v2912_v49  ;;  %3367 = vmatpush1.bf16.msra.mxu0 %v8456_v12  ;;  %3783 = vmatprep.subr.bf16.mxu1 %v9538_v19  ;;  %v8481_v38 = vpack.c.bf16 %v8468_v57, %v2937_v6  ;;  %v8488_v50 = vld [vmem:[%s9268_s3 + $0x134] ss:$8 sps:$4 sm:$0xff]   ;;  %v8621_v29 = vld [vmem:[%s9268_s3 + $0x244] ss:$8 sps:$4 sm:$0xff]   ;;  %v8654_v59 = vld [vmem:[%s9268_s3 + $0x230] ss:$8 sps:$4 sm:$0xff]  }
 0x25d   : > { %3368 = vmatprep.subr.bf16.mxu0 %v8465_v34  ;;  %3112 = vmatprep.mubr.bf16.mxu0 %v9530_v43  ;;  %v8512_v37 = vpack.c.bf16 %v8468_v57, %v8468_v57  ;;  %v8567_v6 = vld [vmem:[%s9268_s3 + $0x274] ss:$8 sps:$4 sm:$0xff]   ;;  %v9555_v47 = vld [vmem:[#allocation9_spill] sm:$0xff]  ;;  %v8690_v19 = vld [vmem:[%s9268_s3 + $0x210] ss:$8 sps:$4 sm:$0xff]  }
 0x25e   : > { %v8490_v8 = vmax.f32 %v2932_v48, 0.0  ;;  %v8495_v25 = vmax.f32 %v9541_v1, %v2919_v31  ;;  %3576 = vmatmul.mubr.bf16.gmra.mxu1 %v8481_v38  ;;  %v8641_v62 = vld [vmem:[%s9268_s3 + $0x234] ss:$8 sps:$4 sm:$0xff]   ;;  %v9557_v1 = vld [vmem:[#allocation21_spill] sm:$0xff] }
 0x25f   : > { %3784 = vmatpush1.bf16.msra.mxu1 %v9542_v17  ;;  %3585 = vmatprep.mubr.bf16.mxu1 %v9530_v43  ;;  %v9556_v49 = vld [vmem:[#allocation31_spill] sm:$0xff] }
 0x260   : > { %3369 = vmatpush1.bf16.msra.mxu0 %v8477_v13  ;;  %3785 = vmatprep.subr.bf16.mxu1 %v9543_v39  ;;  %v4043_v63 = vpack.c.bf16 %v8490_v8, %v8468_v57  ;;  %v8530_v18 = vpack.c.bf16 %v8490_v8, %v8490_v8  ;;  %v3264_v2 = vpack.c.bf16 %v9556_v49, %v9556_v49  ;;  %v8681_v48 = vld [vmem:[%s9268_s3 + $0x214] ss:$8 sps:$4 sm:$0xff]   ;;  %v6153_v17 = vld [vmem:[%s9268_s3 + $0x70] ss:$8 sps:$4 sm:$0xff]   ;;  %v6155_v39 = vld [vmem:[%s9268_s3 + $0x60] ss:$8 sps:$4 sm:$0xff]  }
 0x261   : > { %3370 = vmatprep.subr.bf16.mxu0 %v8488_v50  ;;  %v6178_v57 = vld [vmem:[%s9268_s3 + $0x1b0] ss:$8 sps:$4 sm:$0xff]   ;;  %v6244_v49 = vmov 0.0  }
 0x263   : > { %3113 = vmatmul.mubr.bf16.gmra.mxu0 %v8512_v37  ;;  %3786 = vmatpush1.bf16.msra.mxu1 %v9544_v0  ;;  %v9558_v0 = vld [vmem:[#allocation10_spill] sm:$0xff] }
 0x264   : > { %3371 = vmatpush1.bf16.msra.mxu0 %v8504_v3  ;;  %3787 = vmatprep.subr.bf16.mxu1 %v9545_v52  ;;  %v9559_v52 = vld [vmem:[#allocation35_spill] sm:$0xff] }
 0x265   : > { %3372 = vmatprep.subr.bf16.mxu0 %v8517_v42  ;;  %3394 = vmatprep.mubr.bf16.mxu0 %v9530_v43 }
 0x266   : > { %3586 = vmatmul.mubr.bf16.gmra.mxu1 %v8530_v18 }
 0x267   : > { %3788 = vmatpush1.bf16.msra.mxu1 %v9546_v24  ;;  %3811 = vmatprep.mubr.bf16.mxu1 %v9530_v43 }
 0x268   : > { %3373 = vmatpush1.bf16.msra.mxu0 %v8525_v4  ;;  %3789 = vmatprep.subr.bf16.mxu1 %v9547_v30  ;;  %v6160_v30 = vld [vmem:[%s9268_s3 + $0x40] ss:$8 sps:$4 sm:$0xff]  }
 0x269   : > { %3374 = vmatprep.subr.bf16.mxu0 %v8536_v27 }
 0x26b   : > { %3790 = vmatpush1.bf16.msra.mxu1 %v9548_v11  ;;  %v6161_v11 = vld [vmem:[%s9268_s3 + $0x34] ss:$8 sps:$4 sm:$0xff]  }
 0x26c   : > { %3375 = vmatpush1.bf16.msra.mxu0 %v8546_v26  ;;  %3791 = vmatprep.subr.bf16.mxu1 %v9549_v46  ;;  %v6164_v46 = vld [vmem:[%s9268_s3 + $0x20] ss:$8 sps:$4 sm:$0xff]  }
 0x26d   : > { %3376 = vmatprep.subr.bf16.mxu0 %v8553_v7 }
 0x26f   : > { %3792 = vmatpush1.bf16.msra.mxu1 %v9550_v14  ;;  %v6167_v14 = vld [vmem:[%s9268_s3 + $0x4] ss:$8 sps:$4 sm:$0xff]  }
 0x270   : > { %3377 = vmatpush1.bf16.msra.mxu0 %v8560_v21  ;;  %3793 = vmatprep.subr.bf16.mxu1 %v9551_v35  ;;  %v6169_v35 = vld [vmem:[%s9268_s3 + $0x1f4] ss:$8 sps:$4 sm:$0xff]  }
 0x271   : > { %3703 = vmatprep.subr.bf16.mxu0 %v8567_v6 }
 0x272   : > { %v8583_v56 = vpop.f32.mrf.mxu1 }
 0x273   : > { %3395 = vmatmul.mubr.bf16.vlgmr.msra.gmra.mxu0 %v9552_v33  ;;  %3794 = vmatpush1.bf16.msra.mxu1 %v9553_v23  ;;  %v6173_v23 = vld [vmem:[%s9268_s3 + $0x1d4] ss:$8 sps:$4 sm:$0xff]  }
 0x274   : > { %3704 = vmatpush1.bf16.msra.mxu0 %v8574_v60  ;;  %v8588_v36 = vpop.f32.mrf.mxu1  ;;  %3901 = vmatprep.subr.bf16.mxu1 %v9554_v45  ;;  %v6174_v45 = vld [vmem:[%s9268_s3 + $0x1d0] ss:$8 sps:$4 sm:$0xff]  }
 0x275   : > { %3705 = vmatprep.subr.bf16.mxu0 %v8581_v61  ;;  %3404 = vmatprep.mubr.bf16.mxu0 %v9530_v43 }
 0x276   : > { %3812 = vmatmul.mubr.bf16.vlgmr.msra.gmra.mxu1 %v9552_v33  ;;  %v8604_v5 = vpop.f32.mrf.mxu1  ;;  %v6171_v33 = vld [vmem:[%s9268_s3 + $0x1e4] ss:$8 sps:$4 sm:$0xff]  }
 0x277   : > { %3902 = vmatpush1.bf16.msra.mxu1 %v8413_v41  ;;  %3821 = vmatprep.mubr.bf16.mxu1 %v9530_v43 }
 0x278   : > { %3706 = vmatpush1.bf16.msra.mxu0 %v8593_v32  ;;  %v8609_v58 = vpop.f32.mrf.mxu1  ;;  %3903 = vmatprep.subr.bf16.mxu1 %v8421_v16  ;;  %v8633_v16 = vld [vmem:[%s9268_s3 + $0x240] ss:$8 sps:$4 sm:$0xff]  }
 0x279   : > { %3707 = vmatprep.subr.bf16.mxu0 %v8601_v54 }
 0x27a   : > { %v8623_v41 = vpop.f32.mrf.mxu1 }
 0x27b   : > { %3405 = vmatmul.mubr.bf16.gmra.mxu0 %v9555_v47  ;;  %3904 = vmatpush1.bf16.msra.mxu1 %v8431_v55 }
 0x27c   : > { %3708 = vmatpush1.bf16.msra.mxu0 %v8614_v51  ;;  %v8628_v44 = vpop.f32.mrf.mxu1  ;;  %3905 = vmatprep.subr.bf16.mxu1 %v8441_v20 }
 0x27d   : > { %3709 = vmatprep.subr.bf16.mxu0 %v8621_v29  ;;  %3414 = vmatprep.mubr.bf16.mxu0 %v9530_v43 }
 0x27e   : > { %3822 = vmatmul.mubr.bf16.gmra.mxu1 %v9555_v47  ;;  %v8644_v55 = vpop.f32.mrf.mxu1  ;;  %v9561_v47 = vld [vmem:[#allocation18_spill] sm:$0xff] }
 0x27f   : > { %3906 = vmatpush1.bf16.msra.mxu1 %v8456_v12  ;;  %3831 = vmatprep.mubr.bf16.mxu1 %v9530_v43  ;;  %v8663_v12 = vld [vmem:[%s9268_s3 + $0x224] ss:$8 sps:$4 sm:$0xff]  }
 0x280   : > { %3710 = vmatpush1.bf16.msra.mxu0 %v8633_v16  ;;  %v8649_v20 = vpop.f32.mrf.mxu1  ;;  %3907 = vmatprep.subr.bf16.mxu1 %v8465_v34  ;;  %v8674_v34 = vld [vmem:[%s9268_s3 + $0x220] ss:$8 sps:$4 sm:$0xff]  }
 0x281   : > { %3711 = vmatprep.subr.bf16.mxu0 %v8641_v62 }
 0x282   : > { %v8665_v28 = vpop.f32.mrf.mxu1 }
 0x283   : > { %3415 = vmatmul.mubr.bf16.gmra.mxu0 %v3264_v2  ;;  %3908 = vmatpush1.bf16.msra.mxu1 %v8477_v13 }
 0x284   : > { %3712 = vmatpush1.bf16.msra.mxu0 %v8654_v59  ;;  %v8669_v22 = vpop.f32.mrf.mxu1  ;;  %3909 = vmatprep.subr.bf16.mxu1 %v8488_v50  ;;  %v8697_v50 = vld [vmem:[%s9268_s3 + $0x204] ss:$8 sps:$4 sm:$0xff]  }
 0x285   : > { %3713 = vmatprep.subr.bf16.mxu0 %v8663_v12  ;;  %3735 = vmatprep.mubr.bf16.mxu0 %v9530_v43 }
 0x286   : > { %3832 = vmatmul.mubr.bf16.gmra.mxu1 %v3264_v2  ;;  %v3259_v31 = vpop.f32.mrf.mxu1  ;;  %v6013_v2 = vld [vmem:[%s9270_s5 + $0x78] sm:$0xff]  }
 0x287   : > { %3910 = vmatpush1.bf16.msra.mxu1 %v8504_v3  ;;  %3933 = vmatprep.mubr.bf16.mxu1 %v9530_v43  ;;  %v6154_v3 = vld [vmem:[%s9268_s3 + $0x64] ss:$8 sps:$4 sm:$0xff]  }
 0x288   : > { %3714 = vmatpush1.bf16.msra.mxu0 %v8674_v34  ;;  %v3260_v13 = vpop.f32.mrf.mxu1  ;;  %3911 = vmatprep.subr.bf16.mxu1 %v8517_v42  ;;  %v8734_v42 = vld [vmem:[%s9267_s2] ss:$0 sm:$0xff] }
 0x289   : > { %3715 = vmatprep.subr.bf16.mxu0 %v8681_v48  ;;  %v6018_v31 = vld [vmem:[%s9270_s5 + $0x20] sm:$0xff]  }
 0x28b   : > { %3912 = vmatpush1.bf16.msra.mxu1 %v8525_v4  ;;  %v2044_v4 = vadd.f32 %v8734_v42, %v9558_v0 }
 0x28c   : > { %3716 = vmatpush1.bf16.msra.mxu0 %v8690_v19  ;;  %3913 = vmatprep.subr.bf16.mxu1 %v8536_v27  ;;  %v6158_v27 = vld [vmem:[%s9268_s3 + $0x50] ss:$8 sps:$4 sm:$0xff]  }
 0x28d   : > { %3717 = vmatprep.subr.bf16.mxu0 %v8697_v50  ;;  %v2051_v24 = vmax.f32 %v2044_v4, 0.0  ;;  %v6023_v4 = vld [vmem:[%s9270_s5 + $0x50] sm:$0xff]  }
 0x28f   : > { %3914 = vmatpush1.bf16.msra.mxu1 %v8546_v26  ;;  %v6159_v26 = vld [vmem:[%s9268_s3 + $0x44] ss:$8 sps:$4 sm:$0xff]  }
 0x290   : > { %3718 = vmatpush1.bf16.msra.mxu0 %v8704_v9  ;;  %3915 = vmatprep.subr.bf16.mxu1 %v8553_v7  ;;  %v8758_v7 = vpack.c.bf16 %v2051_v24, %v2051_v24 }
 0x291   : > { %3840 = vmatprep.subr.bf16.mxu0 %v6152_v10 }
 0x293   : > { %3736 = vmatmul.mubr.bf16.vlgmr.msra.gmra.mxu0 %v9557_v1  ;;  %3916 = vmatpush1.bf16.msra.mxu1 %v8560_v21  ;;  %v6163_v21 = vld [vmem:[%s9268_s3 + $0x24] ss:$8 sps:$4 sm:$0xff]  }
 0x294   : > { %3841 = vmatpush1.bf16.msra.mxu0 %v6153_v17  ;;  %4045 = vmatprep.subr.bf16.mxu1 %v8567_v6  ;;  %v6165_v6 = vld [vmem:[%s9268_s3 + $0x14] ss:$8 sps:$4 sm:$0xff]  }
 0x295   : > { %3842 = vmatprep.subr.bf16.mxu0 %v6154_v3  ;;  %3745 = vmatprep.mubr.bf16.mxu0 %v9530_v43  ;;  %v6021_v17 = vld [vmem:[%s9270_s5 + $0x58] sm:$0xff]   ;;  %v6022_v3 = vld [vmem:[%s9270_s5 + $0x10] sm:$0xff]  }
 0x296   : > { %3934 = vmatmul.mubr.bf16.vlgmr.msra.gmra.mxu1 %v8434_v53  ;;  %v6157_v53 = vld [vmem:[%s9268_s3 + $0x54] ss:$8 sps:$4 sm:$0xff]  }
 0x297   : > { %4046 = vmatpush1.bf16.msra.mxu1 %v8574_v60  ;;  %3943 = vmatprep.mubr.bf16.mxu1 %v9530_v43  ;;  %v6168_v60 = vld [vmem:[%s9268_s3] ss:$8 sps:$4 sm:$0xff]  }
 0x298   : > { %3843 = vmatpush1.bf16.msra.mxu0 %v6155_v39  ;;  %4047 = vmatprep.subr.bf16.mxu1 %v8581_v61  ;;  %v6170_v61 = vld [vmem:[%s9268_s3 + $0x1f0] ss:$8 sps:$4 sm:$0xff]  }
 0x299   : > { %3844 = vmatprep.subr.bf16.mxu0 %v6157_v53  ;;  %v6024_v53 = vld [vmem:[%s9270_s5 + $0x8] sm:$0xff]  }
 0x29b   : > { %3746 = vmatmul.mubr.bf16.gmra.mxu0 %v9559_v52  ;;  %4048 = vmatpush1.bf16.msra.mxu1 %v8593_v32  ;;  %v2933_v32 = vadd.f32 %v8734_v42, %v8495_v25  ;;  %v6176_v25 = vld [vmem:[%s9268_s3 + $0x1c0] ss:$8 sps:$4 sm:$0xff]  }
 0x29c   : > { %3845 = vmatpush1.bf16.msra.mxu0 %v6158_v27  ;;  %4049 = vmatprep.subr.bf16.mxu1 %v8601_v54  ;;  %v6175_v54 = vld [vmem:[%s9268_s3 + $0x1c4] ss:$8 sps:$4 sm:$0xff]  }
 0x29d   : > { %3846 = vmatprep.subr.bf16.mxu0 %v6159_v26  ;;  %3755 = vmatprep.mubr.bf16.mxu0 %v9530_v43 }
 0x29e   : > { %3944 = vmatmul.mubr.bf16.gmra.mxu1 %v8481_v38  ;;  %v6162_v38 = vld [vmem:[%s9268_s3 + $0x30] ss:$8 sps:$4 sm:$0xff]  }
 0x29f   : > { %4050 = vmatpush1.bf16.msra.mxu1 %v8614_v51  ;;  %3953 = vmatprep.mubr.bf16.mxu1 %v9530_v43  ;;  %v6177_v51 = vld [vmem:[%s9268_s3 + $0x1b4] ss:$8 sps:$4 sm:$0xff]  }
 0x2a0   : > { %3847 = vmatpush1.bf16.msra.mxu0 %v6160_v30  ;;  %4051 = vmatprep.subr.bf16.mxu1 %v8621_v29  ;;  %v6180_v29 = vld [vmem:[%s9268_s3 + $0x1a0] ss:$8 sps:$4 sm:$0xff]  }
 0x2a1   : > { %3848 = vmatprep.subr.bf16.mxu0 %v6161_v11  ;;  %v6025_v30 = vld [vmem:[%s9270_s5 + $0x48] sm:$0xff]  }
 0x2a3   : > { %3756 = vmatmul.mubr.bf16.gmra.mxu0 %v8758_v7  ;;  %4052 = vmatpush1.bf16.msra.mxu1 %v8633_v16  ;;  %v9562_v16 = vld [vmem:[#allocation25_spill] sm:$0xff] }
 0x2a4   : > { %3849 = vmatpush1.bf16.msra.mxu0 %v6162_v38  ;;  %4053 = vmatprep.subr.bf16.mxu1 %v8641_v62  ;;  %v9563_v62 = vld [vmem:[#allocation27_spill] sm:$0xff] }
 0x2a5   : > { %3850 = vmatprep.subr.bf16.mxu0 %v6163_v21  ;;  %3872 = vmatprep.mubr.bf16.mxu0 %v9530_v43 }
 0x2a6   : > { %3954 = vmatmul.mubr.bf16.gmra.mxu1 %v8530_v18  ;;  %v6166_v18 = vld [vmem:[%s9268_s3 + $0x10] ss:$8 sps:$4 sm:$0xff]  }
 0x2a7   : > { %4054 = vmatpush1.bf16.msra.mxu1 %v8654_v59  ;;  %4077 = vmatprep.mubr.bf16.mxu1 %v9530_v43  ;;  %v6012_v59 = vld [vmem:[%s9270_s5 + $0x38] sm:$0xff]  }
 0x2a8   : > { %3851 = vmatpush1.bf16.msra.mxu0 %v6164_v46  ;;  %4055 = vmatprep.subr.bf16.mxu1 %v8663_v12  ;;  %v6015_v12 = vld [vmem:[%s9270_s5 + $0x70] sm:$0xff]  }
 0x2a9   : > { %3852 = vmatprep.subr.bf16.mxu0 %v6165_v6 }
 0x2ab   : > { %4056 = vmatpush1.bf16.msra.mxu1 %v8674_v34  ;;  %v6016_v34 = vld [vmem:[%s9270_s5 + $0x28] sm:$0xff]  }
 0x2ac   : > { %3853 = vmatpush1.bf16.msra.mxu0 %v6166_v18  ;;  %4057 = vmatprep.subr.bf16.mxu1 %v8681_v48  ;;  %v6017_v48 = vld [vmem:[%s9270_s5 + $0x68] sm:$0xff]   ;;  %v6027_v18 = vld [vmem:[%s9270_s5 + $0x40] sm:$0xff]  }
 0x2ad   : > { %3854 = vmatprep.subr.bf16.mxu0 %v6167_v14 }
 0x2af   : > { %4058 = vmatpush1.bf16.msra.mxu1 %v8690_v19  ;;  %v6019_v19 = vld [vmem:[%s9270_s5 + $0x60] sm:$0xff]  }
 0x2b0   : > { %3855 = vmatpush1.bf16.msra.mxu0 %v6168_v60  ;;  %4059 = vmatprep.subr.bf16.mxu1 %v8697_v50  ;;  %v6020_v50 = vld [vmem:[%s9270_s5 + $0x18] sm:$0xff]  }
 0x2b1   : > { %3972 = vmatprep.subr.bf16.mxu0 %v6169_v35 }
 0x2b3   : > { %3873 = vmatmul.mubr.bf16.vlgmr.msra.gmra.mxu0 %v8415_v40  ;;  %4060 = vmatpush1.bf16.msra.mxu1 %v8704_v9  ;;  %v6172_v40 = vld [vmem:[%s9268_s3 + $0x1e0] ss:$8 sps:$4 sm:$0xff]  }
 0x2b4   : > { %3973 = vmatpush1.bf16.msra.mxu0 %v6170_v61  ;;  %3882 = vmatprep.mubr.bf16.mxu0 %v9530_v43 }
 0x2b5   : > { %3974 = vmatprep.subr.bf16.mxu0 %v6171_v33  ;;  %5578 = vmatprep.subr.bf16.mxu1 %v6244_v49 }
 0x2b6   : > { %4078 = vmatmul.mubr.bf16.vlgmr.msra.gmra.mxu1 %v8460_v15 }
 0x2b7   : > { %4087 = vmatprep.mubr.bf16.mxu1 %v9530_v43  ;;  %5579 = vmatpush3.bf16.msra.mxu1 %v6012_v59 }
 0x2b8   : > { %3975 = vmatpush1.bf16.msra.mxu0 %v6172_v40  ;;  %5580 = vmatprep.subr.bf16.mxu1 %v6244_v49 }
 0x2b9   : > { %3976 = vmatprep.subr.bf16.mxu0 %v6173_v23 }
 0x2bb   : > { %3883 = vmatmul.mubr.bf16.gmra.mxu0 %v8460_v15  ;;  %v2940_v15 = vmax.f32 %v2933_v32, 0.0 }
 0x2bc   : > { %3977 = vmatpush1.bf16.msra.mxu0 %v6174_v45  ;;  %3892 = vmatprep.mubr.bf16.mxu0 %v9530_v43 }
 0x2bd   : > { %3978 = vmatprep.subr.bf16.mxu0 %v6175_v54  ;;  %v4044_v8 = vpack.c.bf16 %v2940_v15, %v2940_v15 }
 0x2be   : > { %4088 = vmatmul.mubr.bf16.gmra.mxu1 %v4043_v63  ;;  %v6179_v63 = vld [vmem:[%s9268_s3 + $0x1a4] ss:$8 sps:$4 sm:$0xff]  }
 0x2bf   : > { %4097 = vmatprep.mubr.bf16.mxu1 %v9530_v43 }
 0x2c0   : > { %3979 = vmatpush1.bf16.msra.mxu0 %v6176_v25 }
 0x2c1   : > { %3980 = vmatprep.subr.bf16.mxu0 %v6177_v51 }
 0x2c3   : > { %3893 = vmatmul.mubr.bf16.gmra.mxu0 %v8512_v37  ;;  %v9560_v37 = vld [vmem:[#allocation16_spill] sm:$0xff] }
 0x2c4   : > { %3981 = vmatpush1.bf16.msra.mxu0 %v6178_v57  ;;  %4004 = vmatprep.mubr.bf16.mxu0 %v9530_v43 }
 0x2c5   : > { %3982 = vmatprep.subr.bf16.mxu0 %v6179_v63 }
 0x2c6   : > { %4098 = vmatmul.mubr.bf16.gmra.mxu1 %v4044_v8 }
 0x2c7   : > { %5594 = vmatprep.mubr.msk.bf16.mxu1 %vm6245_vm0, %v6244_v49 }
 0x2c8   : > { %3983 = vmatpush1.bf16.msra.mxu0 %v6180_v29 }
 0x2c9   : > { %3984 = vmatprep.subr.bf16.mxu0 %v9560_v37 }
 0x2cc   : > { %3985 = vmatpush1.bf16.msra.mxu0 %v9561_v47 }
 0x2cd   : > { %3986 = vmatprep.subr.bf16.mxu0 %v9562_v16 }
 0x2d0   : > { %3987 = vmatpush1.bf16.msra.mxu0 %v9563_v62 }
 0x2d1   : > { %5558 = vmatprep.subr.bf16.mxu0 %v6244_v49 }
 0x2d3   : > { %4005 = vmatmul.mubr.bf16.vlgmr.msra.gmra.mxu0 %v9557_v1 }
 0x2d4   : > { %4014 = vmatprep.mubr.bf16.mxu0 %v9530_v43  ;;  %5559 = vmatpush3.bf16.msra.mxu0 %v6013_v2 }
 0x2d5   : > { %5560 = vmatprep.subr.bf16.mxu0 %v6244_v49 }
 0x2d8   : > { %5561 = vmatpush3.bf16.msra.mxu0 %v6015_v12 }
 0x2d9   : > { %5562 = vmatprep.subr.bf16.mxu0 %v6244_v49 }
 0x2db   : > { %4015 = vmatmul.mubr.bf16.gmra.mxu0 %v9559_v52 }
 0x2dc   : > { %4024 = vmatprep.mubr.bf16.mxu0 %v9530_v43  ;;  %v6014_v43 = vld [vmem:[%s9270_s5 + $0x30] sm:$0xff]   ;;  %5563 = vmatpush3.bf16.msra.mxu0 %v6017_v48 }
 0x2dd   : > { %5581 = vmatpush3.bf16.msra.mxu1 %v6014_v43  ;;  %5564 = vmatprep.subr.bf16.mxu0 %v6244_v49 }
 0x2de   : > { %5582 = vmatprep.subr.bf16.mxu1 %v6244_v49 }
 0x2e0   : > { %5565 = vmatpush3.bf16.msra.mxu0 %v6019_v19 }
 0x2e1   : > { %5583 = vmatpush3.bf16.msra.mxu1 %v6016_v34  ;;  %5566 = vmatprep.subr.bf16.mxu0 %v6244_v49 }
 0x2e2   : > { %5584 = vmatprep.subr.bf16.mxu1 %v6244_v49 }
 0x2e3   : > { %4025 = vmatmul.mubr.bf16.gmra.mxu0 %v8758_v7  ;;  %v6026_v7 = vld [vmem:[%s9270_s5] sm:$0xff]  }
 0x2e4   : > { %5567 = vmatpush3.bf16.msra.mxu0 %v6021_v17  ;;  %5574 = vmatprep.mubr.msk.bf16.mxu0 %vm6245_vm0, %v6244_v49 }
 0x2e5   : > { %5585 = vmatpush3.bf16.msra.mxu1 %v6018_v31  ;;  %5568 = vmatprep.subr.bf16.mxu0 %v6244_v49 }
 0x2e6   : > { %5586 = vmatprep.subr.bf16.mxu1 %v6244_v49 }
 0x2e8   : > { %5569 = vmatpush3.bf16.msra.mxu0 %v6023_v4 }
 0x2e9   : > { %5587 = vmatpush3.bf16.msra.mxu1 %v6020_v50  ;;  %5570 = vmatprep.subr.bf16.mxu0 %v6244_v49 }
 0x2ea   : > { %5588 = vmatprep.subr.bf16.mxu1 %v6244_v49 }
 0x2ec   : > { %5571 = vmatpush3.bf16.msra.mxu0 %v6025_v30 }
 0x2ed   : > { %5589 = vmatpush3.bf16.msra.mxu1 %v6022_v3  ;;  %5572 = vmatprep.subr.bf16.mxu0 %v6244_v49 }
 0x2ee   : > { %5590 = vmatprep.subr.bf16.mxu1 %v6244_v49 }
 0x2f0   : > { %5573 = vmatpush3.bf16.msra.mxu0 %v6027_v18 }
 0x2f1   : > { %5591 = vmatpush3.bf16.msra.mxu1 %v6024_v53  ;;  %5598 = vmatprep.subr.bf16.mxu0 %v6244_v49 }
 0x2f2   : > { %5592 = vmatprep.subr.bf16.mxu1 %v6244_v49 }
 0x2f5   : > { %5593 = vmatpush3.bf16.msra.mxu1 %v6026_v7 }
 0x2f6   : > { %5618 = vmatprep.subr.bf16.mxu1 %v6244_v49 }
 0x312   : > { %v3094_v13 = vpop.f32.mrf.mxu0 }
 0x313   : > { %v3236_v45 = vadd.f32 %v8583_v56, %v3094_v13 }
 0x314   : > { %v3096_v9 = vpop.f32.mrf.mxu0 }
 0x315   : > { %v3238_v15 = vadd.f32 %v8588_v36, %v3096_v9 }
 0x316   : > { %v3098_v10 = vpop.f32.mrf.mxu0  ;;  %v3567_v1 = vpop.f32.mrf.mxu1 }
 0x317   : > { %v3240_v57 = vadd.f32 %v8604_v5, %v3098_v10 }
 0x318   : > { %v3100_v39 = vpop.f32.mrf.mxu0  ;;  %v3569_v42 = vpop.f32.mrf.mxu1 }
 0x319   : > { %v3242_v47 = vadd.f32 %v8609_v58, %v3100_v39 }
 0x31a   : > { %v3571_v0 = vpop.f32.mrf.mxu1 }
 0x31b   : > { %v3104_v52 = vpop.f32.mrf.mxu0 }
 0x31c   : > { %v3573_v27 = vpop.f32.mrf.mxu1  ;;  %v3246_v56 = vadd.f32 %v8623_v41, %v3104_v52 }
 0x31d   : > { %v3106_v24 = vpop.f32.mrf.mxu0 }
 0x31e   : > { %v3577_v26 = vpop.f32.mrf.mxu1  ;;  %v3248_v5 = vadd.f32 %v8628_v44, %v3106_v24 }
 0x31f   : > { %v3108_v11 = vpop.f32.mrf.mxu0 }
 0x320   : > { %v3579_v38 = vpop.f32.mrf.mxu1  ;;  %v3250_v58 = vadd.f32 %v8644_v55, %v3108_v11 }
 0x321   : > { %v3110_v21 = vpop.f32.mrf.mxu0 }
 0x322   : > { %v3581_v46 = vpop.f32.mrf.mxu1  ;;  %v3252_v41 = vadd.f32 %v8649_v20, %v3110_v21 }
 0x323   : > { %v3114_v6 = vpop.f32.mrf.mxu0 }
 0x324   : > { %v3583_v14 = vpop.f32.mrf.mxu1  ;;  %v3256_v44 = vadd.f32 %v8665_v28, %v3114_v6 }
 0x325   : > { %v3116_v60 = vpop.f32.mrf.mxu0 }
 0x326   : > { %v3587_v35 = vpop.f32.mrf.mxu1  ;;  %v3258_v55 = vadd.f32 %v8669_v22, %v3116_v60 }
 0x327   : > { %v3118_v61 = vpop.f32.mrf.mxu0 }
 0x328   : > { %v3589_v33 = vpop.f32.mrf.mxu1 }
 0x329   : > { %v3119_v40 = vpop.f32.mrf.mxu0 }
 0x32a   : > { %v3591_v23 = vpop.f32.mrf.mxu1 }
 0x32c   : > { %v3592_v32 = vpop.f32.mrf.mxu1 }
 0x333   : > { %v3396_v54 = vpop.f32.mrf.mxu0 }
 0x334   : > { %v3423_v25 = vadd.f32 %v3396_v54, %v3236_v45 }
 0x335   : > { %v3398_v51 = vpop.f32.mrf.mxu0 }
 0x336   : > { %v3424_v8 = vadd.f32 %v3398_v51, %v3238_v15  ;;  %v8929_v63 = vpop.f32.mrf.mxu1  ;;  %v3594_v29 = vadd.f32 %v3567_v1, %v3423_v25 }
 0x337   : > { %v3400_v37 = vpop.f32.mrf.mxu0 }
 0x338   : > { %v3425_v16 = vadd.f32 %v3400_v37, %v3240_v57  ;;  %v8932_v62 = vpop.f32.mrf.mxu1  ;;  %v3595_v59 = vadd.f32 %v3569_v42, %v3424_v8 }
 0x339   : > { %v3402_v2 = vpop.f32.mrf.mxu0 }
 0x33a   : > { %v3426_v43 = vadd.f32 %v3402_v2, %v3242_v47  ;;  %v8935_v36 = vpop.f32.mrf.mxu1  ;;  %v3596_v12 = vadd.f32 %v3571_v0, %v3425_v16 }
 0x33b   : > { %v3406_v34 = vpop.f32.mrf.mxu0 }
 0x33c   : > { %v3427_v48 = vadd.f32 %v3406_v34, %v3246_v56  ;;  %v8938_v31 = vpop.f32.mrf.mxu1  ;;  %v3597_v13 = vadd.f32 %v3573_v27, %v3426_v43 }
 0x33d   : > { %v3408_v19 = vpop.f32.mrf.mxu0 }
 0x33e   : > { %v3428_v50 = vadd.f32 %v3408_v19, %v3248_v5  ;;  %v8941_v9 = vpop.f32.mrf.mxu1  ;;  %v3598_v10 = vadd.f32 %v3577_v26, %v3427_v48 }
 0x33f   : > { %v3410_v1 = vpop.f32.mrf.mxu0 }
 0x340   : > { %v3429_v17 = vadd.f32 %v3410_v1, %v3250_v58  ;;  %v8944_v3 = vpop.f32.mrf.mxu1  ;;  %v3599_v39 = vadd.f32 %v3579_v38, %v3428_v50 }
 0x341   : > { %v3412_v42 = vpop.f32.mrf.mxu0 }
 0x342   : > { %v3430_v0 = vadd.f32 %v3412_v42, %v3252_v41  ;;  %v8947_v4 = vpop.f32.mrf.mxu1  ;;  %v3600_v53 = vadd.f32 %v3581_v46, %v3429_v17 }
 0x343   : > { %v3416_v52 = vpop.f32.mrf.mxu0 }
 0x344   : > { %v3431_v27 = vadd.f32 %v3416_v52, %v3256_v44  ;;  %v8950_v24 = vpop.f32.mrf.mxu1  ;;  %v3601_v26 = vadd.f32 %v3583_v14, %v3430_v0 }
 0x345   : > { %v3418_v30 = vpop.f32.mrf.mxu0 }
 0x346   : > { %v3432_v20 = vadd.f32 %v3418_v30, %v3258_v55  ;;  %v8952_v7 = vpop.f32.mrf.mxu1  ;;  %v3602_v11 = vadd.f32 %v3587_v35, %v3431_v27 }
 0x347   : > { %v3420_v38 = vpop.f32.mrf.mxu0 }
 0x348   : > { %v8954_v21 = vpop.f32.mrf.mxu1  ;;  %v3603_v28 = vadd.f32 %v3589_v33, %v3432_v20 }
 0x349   : > { %v3421_v6 = vpop.f32.mrf.mxu0 }
 0x34a   : > { %v3837_v18 = vpop.f32.mrf.mxu1 }
 0x34c   : > { %v3838_v61 = vpop.f32.mrf.mxu1 }
 0x353   : > { %v3737_v46 = vpop.f32.mrf.mxu0 }
 0x354   : > { %v8956_v40 = vadd.f32 %v3737_v46, %v3594_v29 }
 0x355   : > { %v3739_v22 = vpop.f32.mrf.mxu0 }
 0x356   : > { %v8958_v60 = vadd.f32 %v3739_v22, %v3595_v59  ;;  %v8960_v23 = vpop.f32.mrf.mxu1 }
 0x357   : > { %v3741_v14 = vpop.f32.mrf.mxu0 }
 0x358   : > { %v3774_v32 = vmax.f32 %v8956_v40, %v8958_v60  ;;  %v8964_v35 = vadd.f32 %v3741_v14, %v3596_v12  ;;  %v8966_v45 = vpop.f32.mrf.mxu1  ;;  %v6028_v40 = vld [vmem:[%s9270_s5 + $0xf8] sm:$0xff]  }
 0x359   : > { %v3743_v33 = vpop.f32.mrf.mxu0 }
 0x35a   : > { %v8968_v54 = vadd.f32 %v3743_v33, %v3597_v13  ;;  %v8970_v15 = vpop.f32.mrf.mxu1 }
 0x35b   : > { %v3747_v25 = vpop.f32.mrf.mxu0 }
 0x35c   : > { %v3775_v51 = vmax.f32 %v8964_v35, %v8968_v54  ;;  %v8974_v57 = vadd.f32 %v3747_v25, %v3598_v10  ;;  %v8976_v8 = vpop.f32.mrf.mxu1 }
 0x35d   : > { %v3749_v29 = vpop.f32.mrf.mxu0 }
 0x35e   : > { %v8978_v37 = vadd.f32 %v3749_v29, %v3599_v39  ;;  %v3945_v47 = vpop.f32.mrf.mxu1 }
 0x35f   : > { %v3751_v16 = vpop.f32.mrf.mxu0 }
 0x360   : > { %v3776_v59 = vmax.f32 %v8974_v57, %v8978_v37  ;;  %v8982_v2 = vadd.f32 %v3751_v16, %v3600_v53  ;;  %v3947_v56 = vpop.f32.mrf.mxu1 }
 0x361   : > { %v3753_v43 = vpop.f32.mrf.mxu0 }
 0x362   : > { %v8984_v12 = vadd.f32 %v3753_v43, %v3601_v26  ;;  %v3949_v34 = vpop.f32.mrf.mxu1 }
 0x363   : > { %v3757_v5 = vpop.f32.mrf.mxu0 }
 0x364   : > { %v3777_v48 = vmax.f32 %v8982_v2, %v8984_v12  ;;  %v8988_v13 = vadd.f32 %v3757_v5, %v3602_v11  ;;  %v3951_v19 = vpop.f32.mrf.mxu1  ;;  %v6033_v12 = vld [vmem:[%s9270_s5 + $0xa8] sm:$0xff]  }
 0x365   : > { %v3759_v58 = vpop.f32.mrf.mxu0 }
 0x366   : > { %v8990_v50 = vadd.f32 %v3759_v58, %v3603_v28  ;;  %v3955_v10 = vpop.f32.mrf.mxu1 }
 0x367   : > { %v3761_v1 = vpop.f32.mrf.mxu0 }
 0x368   : > { %v3778_v41 = vmax.f32 %v8988_v13, %v8990_v50  ;;  %v3957_v17 = vpop.f32.mrf.mxu1  ;;  %v6035_v13 = vld [vmem:[%s9270_s5 + $0xa0] sm:$0xff]   ;;  %v6036_v50 = vld [vmem:[%s9270_s5 + $0xd8] sm:$0xff]  }
 0x369   : > { %v3762_v39 = vpop.f32.mrf.mxu0 }
 0x36a   : > { %v3959_v42 = vpop.f32.mrf.mxu1 }
 0x36c   : > { %v3960_v44 = vpop.f32.mrf.mxu1 }
 0x373   : > { %v3874_v0 = vpop.f32.mrf.mxu0 }
 0x375   : > { %v3876_v53 = vpop.f32.mrf.mxu0 }
 0x376   : > { %v4079_v52 = vpop.f32.mrf.mxu1 }
 0x377   : > { %v3878_v55 = vpop.f32.mrf.mxu0 }
 0x378   : > { %v4081_v27 = vpop.f32.mrf.mxu1 }
 0x379   : > { %v3880_v26 = vpop.f32.mrf.mxu0 }
 0x37a   : > { %v4083_v30 = vpop.f32.mrf.mxu1 }
 0x37b   : > { %v3884_v20 = vpop.f32.mrf.mxu0 }
 0x37c   : > { %v3885_v11 = vadd.f32 %v3884_v20, %v8941_v9  ;;  %v4085_v38 = vpop.f32.mrf.mxu1 }
 0x37d   : > { %v3886_v28 = vpop.f32.mrf.mxu0 }
 0x37e   : > { %v3887_v6 = vadd.f32 %v3886_v28, %v8944_v3  ;;  %v4089_v18 = vpop.f32.mrf.mxu1  ;;  %v3966_v61 = vadd.f32 %v3945_v47, %v3885_v11 }
 0x37f   : > { %v3888_v46 = vpop.f32.mrf.mxu0 }
 0x380   : > { %v3889_v22 = vadd.f32 %v3888_v46, %v8947_v4  ;;  %v4091_v14 = vpop.f32.mrf.mxu1  ;;  %v3967_v33 = vadd.f32 %v3947_v56, %v3887_v6 }
 0x381   : > { %v3890_v25 = vpop.f32.mrf.mxu0 }
 0x382   : > { %v3891_v29 = vadd.f32 %v3890_v25, %v8950_v24  ;;  %v4093_v16 = vpop.f32.mrf.mxu1  ;;  %v3968_v43 = vadd.f32 %v3949_v34, %v3889_v22  ;;  %v3875_v24 = vadd.f32 %v3874_v0, %v8929_v63  ;;  %v3877_v34 = vadd.f32 %v3876_v53, %v8932_v62 }
 0x383   : > { %v3894_v5 = vpop.f32.mrf.mxu0 }
 0x384   : > { %v3895_v58 = vadd.f32 %v3894_v5, %v8952_v7  ;;  %v4095_v9 = vpop.f32.mrf.mxu1  ;;  %v3969_v1 = vadd.f32 %v3951_v19, %v3891_v29  ;;  %v3879_v7 = vadd.f32 %v3878_v55, %v8935_v36  ;;  %v3962_v19 = vadd.f32 %v8960_v23, %v3875_v24 }
 0x385   : > { %v3896_v39 = vpop.f32.mrf.mxu0 }
 0x386   : > { %v3897_v3 = vadd.f32 %v3896_v39, %v8954_v21  ;;  %v4099_v42 = vpop.f32.mrf.mxu1  ;;  %v3970_v47 = vadd.f32 %v3955_v10, %v3895_v58  ;;  %v3881_v21 = vadd.f32 %v3880_v26, %v8938_v31  ;;  %v3963_v10 = vadd.f32 %v8966_v45, %v3877_v34  ;;  %v9013_v31 = vld [vmem:[%s9269_s4] ss:$0 sm:$0xff] }
 0x387   : > { %v3898_v44 = vpop.f32.mrf.mxu0 }
 0x388   : > { %v9000_v20 = vpop.f32.mrf.mxu1  ;;  %v3971_v4 = vadd.f32 %v3957_v17, %v3897_v3  ;;  %v3964_v17 = vadd.f32 %v8970_v15, %v3879_v7  ;;  %v3965_v62 = vadd.f32 %v8976_v8, %v3881_v21  ;;  %v6038_v21 = vld [vmem:[%s9270_s5 + $0xd0] sm:$0xff]  }
 0x389   : > { %v3899_v56 = vpop.f32.mrf.mxu0 }
 0x38a   : > { %v4103_v11 = vpop.f32.mrf.mxu1 }
 0x38c   : > { %v4104_v28 = vpop.f32.mrf.mxu1 }
 0x393   : > { %v4006_v6 = vpop.f32.mrf.mxu0 }
 0x394   : > { %v4033_v46 = vadd.f32 %v4006_v6, %v3962_v19  ;;  %v6031_v6 = vld [vmem:[%s9270_s5 + $0xb0] sm:$0xff]  }
 0x395   : > { %v4008_v22 = vpop.f32.mrf.mxu0 }
 0x396   : > { %v4034_v25 = vadd.f32 %v4008_v22, %v3963_v10  ;;  %v4106_v5 = vadd.f32 %v4079_v52, %v4033_v46  ;;  %v6039_v46 = vld [vmem:[%s9270_s5 + $0x90] sm:$0xff]   ;;  %v6040_v10 = vld [vmem:[%s9270_s5 + $0xc8] sm:$0xff]  }
 0x397   : > { %v4010_v29 = vpop.f32.mrf.mxu0 }
 0x398   : > { %v4107_v58 = vadd.f32 %v4081_v27, %v4034_v25  ;;  %v4035_v63 = vadd.f32 %v4010_v29, %v3964_v17  ;;  %v6041_v25 = vld [vmem:[%s9270_s5 + $0x88] sm:$0xff]   ;;  %v6042_v17 = vld [vmem:[%s9270_s5 + $0xc0] sm:$0xff]  }
 0x399   : > { %v4012_v0 = vpop.f32.mrf.mxu0 }
 0x39a   : > { %v4116_v36 = vmax.f32 %v4106_v5, %v4107_v58  ;;  %v4036_v53 = vadd.f32 %v4012_v0, %v3965_v62  ;;  %v4108_v15 = vadd.f32 %v4083_v30, %v4035_v63  ;;  %v6043_v58 = vld [vmem:[%s9270_s5 + $0x80] sm:$0xff]   ;;  %v6044_v0 = vld [vmem:[%s9270_s5 + $0x138] sm:$0xff]  }
 0x39b   : > { %v4016_v23 = vpop.f32.mrf.mxu0 }
 0x39c   : > { %v4121_v45 = vmax.f32 %v3774_v32, %v4116_v36  ;;  %v4109_v55 = vadd.f32 %v4085_v38, %v4036_v53  ;;  %v4037_v52 = vadd.f32 %v4016_v23, %v3966_v61  ;;  %v6045_v53 = vld [vmem:[%s9270_s5 + $0x130] sm:$0xff]   ;;  %v6047_v23 = vld [vmem:[%s9270_s5 + $0x120] sm:$0xff]  }
 0x39d   : > { %v4018_v27 = vpop.f32.mrf.mxu0 }
 0x39e   : > { %v4133_v26 = vadd.f32 %v9013_v31, %v4121_v45  ;;  %v4117_v8 = vmax.f32 %v4108_v15, %v4109_v55  ;;  %v4038_v39 = vadd.f32 %v4018_v27, %v3967_v33  ;;  %v4110_v11 = vadd.f32 %v4089_v18, %v4037_v52  ;;  %v6048_v45 = vld [vmem:[%s9270_s5 + $0x118] sm:$0xff]   ;;  %v6049_v15 = vld [vmem:[%s9270_s5 + $0x110] sm:$0xff]   ;;  %v6050_v55 = vld [vmem:[%s9270_s5 + $0x108] sm:$0xff]  }
 0x39f   : > { %v4020_v3 = vpop.f32.mrf.mxu0  ;;  %v6051_v52 = vld [vmem:[%s9270_s5 + $0x100] sm:$0xff]  }
 0x3a0   : > { %v4138_v44 = vmax.f32 %v4133_v26, 0.0  ;;  %v4122_v56 = vmax.f32 %v3775_v51, %v4117_v8  ;;  %v4111_v28 = vadd.f32 %v4091_v14, %v4038_v39  ;;  %v4039_v24 = vadd.f32 %v4020_v3, %v3968_v43  ;;  %v6029_v43 = vld [vmem:[%s9270_s5 + $0xb8] sm:$0xff]   ;;  %v6053_v39 = vld [vmem:[%s9272_s7 + $0x30] sm:$0xff]   ;;  %v6054_v3 = vld [vmem:[%s9272_s7 + $0x28] sm:$0xff]  }
 0x3a1   : > { %v4022_v34 = vpop.f32.mrf.mxu0  ;;  %v6052_v8 = vld [vmem:[%s9272_s7 + $0x38] sm:$0xff]  }
 0x3a2   : > { %v4143_v60 = vpack.c.bf16 %v4138_v44, %v4138_v44  ;;  %v4134_v32 = vadd.f32 %v9013_v31, %v4122_v56  ;;  %v4118_v30 = vmax.f32 %v4110_v11, %v4111_v28  ;;  %v4040_v38 = vadd.f32 %v4022_v34, %v3969_v1  ;;  %v6030_v1 = vld [vmem:[%s9270_s5 + $0xf0] sm:$0xff]   ;;  %v6055_v44 = vld [vmem:[%s9272_s7 + $0x20] sm:$0xff]   ;;  %v6056_v56 = vld [vmem:[%s9272_s7 + $0x18] sm:$0xff]  }
 0x3a3   : > { %v4026_v61 = vpop.f32.mrf.mxu0  ;;  %v4112_v51 = vadd.f32 %v4093_v16, %v4039_v24  ;;  %v6057_v11 = vld [vmem:[%s9272_s7 + $0x10] sm:$0xff]   ;;  %v6058_v28 = vld [vmem:[%s9272_s7 + $0x8] sm:$0xff]   ;;  %v6059_v24 = vld [vmem:[%s9272_s7] sm:$0xff]  }
 0x3a4   : > { %v4139_v33 = vmax.f32 %v4134_v32, 0.0  ;;  %v4123_v35 = vmax.f32 %v3776_v59, %v4118_v30  ;;  %v4041_v54 = vadd.f32 %v4026_v61, %v3970_v47  ;;  %5595 = vmatmul.mubr.bf16.vlgmr.msra.gmra.mxu1 %v4143_v60  ;;  %v4113_v18 = vadd.f32 %v4095_v9, %v4040_v38  ;;  %v6060_v34 = vld [vmem:[%s9274_s9 + $0x38] sm:$0xff]   ;;  %v6062_v60 = vld [vmem:[%s9274_s9 + $0x28] sm:$0xff]   ;;  %v6063_v32 = vld [vmem:[%s9274_s9 + $0x20] sm:$0xff]  }
 0x3a5   : > { %5619 = vmatpush3.bf16.msra.mxu1 %v6028_v40  ;;  %v4028_v14 = vpop.f32.mrf.mxu0  ;;  %5634 = vmatprep.mubr.msk.bf16.mxu1 %vm6245_vm0, %v6244_v49  ;;  %v6061_v40 = vld [vmem:[%s9274_s9 + $0x30] sm:$0xff]   ;;  %v6064_v30 = vld [vmem:[%s9274_s9 + $0x18] sm:$0xff]  }
 0x3a6   : > { %v4160_v7 = vpack.c.bf16 %v4139_v33, %v4139_v33  ;;  %v4114_v57 = vadd.f32 %v4099_v42, %v4041_v54  ;;  %v4042_v37 = vadd.f32 %v4028_v14, %v3971_v4  ;;  %5620 = vmatprep.subr.bf16.mxu1 %v6244_v49  ;;  %v4119_v59 = vmax.f32 %v4112_v51, %v4113_v18  ;;  %v6032_v42 = vld [vmem:[%s9270_s5 + $0xe8] sm:$0xff]   ;;  %v6065_v38 = vld [vmem:[%s9274_s9 + $0x10] sm:$0xff]  }
 0x3a7   : > { %v4030_v16 = vpop.f32.mrf.mxu0  ;;  %v4135_v29 = vadd.f32 %v9013_v31, %v4123_v35 }
 0x3a8   : > { %v4115_v9 = vadd.f32 %v9000_v20, %v4042_v37  ;;  %5575 = vmatmul.mubr.bf16.vlgmr.msra.gmra.mxu0 %v4160_v7  ;;  %v4124_v47 = vmax.f32 %v3777_v48, %v4119_v59  ;;  %v6034_v48 = vld [vmem:[%s9270_s5 + $0xe0] sm:$0xff]  }
 0x3a9   : > { %5599 = vmatpush3.bf16.msra.mxu0 %v6029_v43  ;;  %5621 = vmatpush3.bf16.msra.mxu1 %v6030_v1  ;;  %v4031_v19 = vpop.f32.mrf.mxu0  ;;  %v4140_v63 = vmax.f32 %v4135_v29, 0.0 }
 0x3aa   : > { %v4120_v4 = vmax.f32 %v4114_v57, %v4115_v9  ;;  %5600 = vmatprep.subr.bf16.mxu0 %v6244_v49  ;;  %5622 = vmatprep.subr.bf16.mxu1 %v6244_v49  ;;  %v4136_v22 = vadd.f32 %v9013_v31, %v4124_v47 }
 0x3ab   : > { %5614 = vmatprep.mubr.msk.bf16.mxu0 %vm6245_vm0, %v6244_v49  ;;  %v4354_v36 = vpack.c.bf16 %v4140_v63, %v4140_v63 }
 0x3ac   : > { %v4125_v2 = vmax.f32 %v3778_v41, %v4120_v4  ;;  %v6037_v41 = vld [vmem:[%s9270_s5 + $0x98] sm:$0xff]   ;;  %v4141_v5 = vmax.f32 %v4136_v22, 0.0  ;;  %v5473_v22 = vld [vmem:[%s9273_s8] ss:$0 sm:$0xff] }
 0x3ad   : > { %5601 = vmatpush3.bf16.msra.mxu0 %v6031_v6  ;;  %5623 = vmatpush3.bf16.msra.mxu1 %v6032_v42 }
 0x3ae   : > { %v9062_v20 = vadd.f32 %v9013_v31, %v4125_v2  ;;  %5602 = vmatprep.subr.bf16.mxu0 %v6244_v49  ;;  %5624 = vmatprep.subr.bf16.mxu1 %v6244_v49  ;;  %v4461_v62 = vpack.c.bf16 %v4141_v5, %v4141_v5  ;;  %v6046_v31 = vld [vmem:[%s9270_s5 + $0x128] sm:$0xff]   ;;  %v5472_v2 = vld [vmem:[%s9271_s6] ss:$0 sm:$0xff] }
 0x3b0   : > { %v4142_v27 = vmax.f32 %v9062_v20, 0.0 }
 0x3b1   : > { %5603 = vmatpush3.bf16.msra.mxu0 %v6033_v12  ;;  %5625 = vmatpush3.bf16.msra.mxu1 %v6034_v48 }
 0x3b2   : > { %5604 = vmatprep.subr.bf16.mxu0 %v6244_v49  ;;  %5626 = vmatprep.subr.bf16.mxu1 %v6244_v49  ;;  %v4568_v26 = vpack.c.bf16 %v4142_v27, %v4142_v27 }
 0x3b5   : > { %5605 = vmatpush3.bf16.msra.mxu0 %v6035_v13  ;;  %5627 = vmatpush3.bf16.msra.mxu1 %v6036_v50 }
 0x3b6   : > { %5606 = vmatprep.subr.bf16.mxu0 %v6244_v49  ;;  %5628 = vmatprep.subr.bf16.mxu1 %v6244_v49 }
 0x3b9   : > { %5607 = vmatpush3.bf16.msra.mxu0 %v6037_v41  ;;  %5629 = vmatpush3.bf16.msra.mxu1 %v6038_v21 }
 0x3ba   : > { %5608 = vmatprep.subr.bf16.mxu0 %v6244_v49  ;;  %5630 = vmatprep.subr.bf16.mxu1 %v6244_v49 }
 0x3bd   : > { %5609 = vmatpush3.bf16.msra.mxu0 %v6039_v46  ;;  %5631 = vmatpush3.bf16.msra.mxu1 %v6040_v10  ;;  %v6066_v46 = vld [vmem:[%s9274_s9 + $0x8] sm:$0xff]   ;;  %v6067_v10 = vld [vmem:[%s9274_s9] sm:$0xff]  }
 0x3be   : > { %5610 = vmatprep.subr.bf16.mxu0 %v6244_v49  ;;  %5632 = vmatprep.subr.bf16.mxu1 %v6244_v49 }
 0x3c1   : > { %5611 = vmatpush3.bf16.msra.mxu0 %v6041_v25  ;;  %5633 = vmatpush3.bf16.msra.mxu1 %v6042_v17 }
 0x3c2   : > { %5612 = vmatprep.subr.bf16.mxu0 %v6244_v49  ;;  %5658 = vmatprep.subr.bf16.mxu1 %v6244_v49 }
 0x3c4   : > { %5635 = vmatmul.mubr.bf16.vlgmr.msra.gmra.mxu1 %v4461_v62 }
 0x3c5   : > { %5613 = vmatpush3.bf16.msra.mxu0 %v6043_v58  ;;  %5674 = vmatprep.mubr.msk.bf16.mxu1 %vm6245_vm0, %v6244_v49 }
 0x3c6   : > { %5638 = vmatprep.subr.bf16.mxu0 %v6244_v49  ;;  %5659 = vmatpush3.bf16.msra.mxu1 %v6052_v8 }
 0x3c7   : > { %5660 = vmatprep.subr.bf16.mxu1 %v6244_v49 }
 0x3c8   : > { %5615 = vmatmul.mubr.bf16.vlgmr.msra.gmra.mxu0 %v4354_v36 }
 0x3c9   : > { %5639 = vmatpush3.bf16.msra.mxu0 %v6044_v0  ;;  %5654 = vmatprep.mubr.msk.bf16.mxu0 %vm6245_vm0, %v6244_v49 }
 0x3ca   : > { %5640 = vmatprep.subr.bf16.mxu0 %v6244_v49  ;;  %5661 = vmatpush3.bf16.msra.mxu1 %v6053_v39 }
 0x3cb   : > { %5662 = vmatprep.subr.bf16.mxu1 %v6244_v49 }
 0x3cd   : > { %5641 = vmatpush3.bf16.msra.mxu0 %v6045_v53 }
 0x3ce   : > { %5642 = vmatprep.subr.bf16.mxu0 %v6244_v49  ;;  %5663 = vmatpush3.bf16.msra.mxu1 %v6054_v3 }
 0x3cf   : > { %5664 = vmatprep.subr.bf16.mxu1 %v6244_v49 }
 0x3d1   : > { %5643 = vmatpush3.bf16.msra.mxu0 %v6046_v31 }
 0x3d2   : > { %5644 = vmatprep.subr.bf16.mxu0 %v6244_v49  ;;  %5665 = vmatpush3.bf16.msra.mxu1 %v6055_v44 }
 0x3d3   : > { %5666 = vmatprep.subr.bf16.mxu1 %v6244_v49 }
 0x3d5   : > { %5645 = vmatpush3.bf16.msra.mxu0 %v6047_v23 }
 0x3d6   : > { %5646 = vmatprep.subr.bf16.mxu0 %v6244_v49  ;;  %5667 = vmatpush3.bf16.msra.mxu1 %v6056_v56 }
 0x3d7   : > { %5668 = vmatprep.subr.bf16.mxu1 %v6244_v49 }
 0x3d9   : > { %5647 = vmatpush3.bf16.msra.mxu0 %v6048_v45 }
 0x3da   : > { %5648 = vmatprep.subr.bf16.mxu0 %v6244_v49  ;;  %5669 = vmatpush3.bf16.msra.mxu1 %v6057_v11 }
 0x3db   : > { %5670 = vmatprep.subr.bf16.mxu1 %v6244_v49 }
 0x3dd   : > { %5649 = vmatpush3.bf16.msra.mxu0 %v6049_v15 }
 0x3de   : > { %5650 = vmatprep.subr.bf16.mxu0 %v6244_v49  ;;  %5671 = vmatpush3.bf16.msra.mxu1 %v6058_v28 }
 0x3df   : > { %5672 = vmatprep.subr.bf16.mxu1 %v6244_v49 }
 0x3e1   : > { %5651 = vmatpush3.bf16.msra.mxu0 %v6050_v55 }
 0x3e2   : > { %5652 = vmatprep.subr.bf16.mxu0 %v6244_v49  ;;  %5673 = vmatpush3.bf16.msra.mxu1 %v6059_v24 }
 0x3e5   : > { %5653 = vmatpush3.bf16.msra.mxu0 %v6051_v52 }
 0x3e6   : > { %5678 = vmatprep.subr.bf16.mxu0 %v6244_v49 }
 0x3e8   : > { %5655 = vmatmul.mubr.bf16.vlgmr.msra.gmra.mxu0 %v4568_v26 }
 0x3e9   : > { %5694 = vmatprep.mubr.msk.bf16.mxu0 %vm6245_vm0, %v6244_v49  ;;  %5679 = vmatpush3.bf16.msra.mxu0 %v6060_v34 }
 0x3ea   : > { %5680 = vmatprep.subr.bf16.mxu0 %v6244_v49 }
 0x3ed   : > { %5681 = vmatpush3.bf16.msra.mxu0 %v6061_v40 }
 0x3ee   : > { %5682 = vmatprep.subr.bf16.mxu0 %v6244_v49 }
 0x3f1   : > { %5683 = vmatpush3.bf16.msra.mxu0 %v6062_v60 }
 0x3f2   : > { %5684 = vmatprep.subr.bf16.mxu0 %v6244_v49 }
 0x3f5   : > { %5685 = vmatpush3.bf16.msra.mxu0 %v6063_v32 }
 0x3f6   : > { %5686 = vmatprep.subr.bf16.mxu0 %v6244_v49 }
 0x3f9   : > { %5687 = vmatpush3.bf16.msra.mxu0 %v6064_v30 }
 0x3fa   : > { %5688 = vmatprep.subr.bf16.mxu0 %v6244_v49 }
 0x3fd   : > { %5689 = vmatpush3.bf16.msra.mxu0 %v6065_v38 }
 0x3fe   : > { %5690 = vmatprep.subr.bf16.mxu0 %v6244_v49 }
 0x401   : > { %5691 = vmatpush3.bf16.msra.mxu0 %v6066_v46 }
 0x402   : > { %5692 = vmatprep.subr.bf16.mxu0 %v6244_v49  ;;  %v5482_v49 = vld [vmem:[%s9275_s10] ss:$0 sm:$0xff] }
 0x405   : > { %5693 = vmatpush3.bf16.msra.mxu0 %v6067_v10 }
 0x464   : > { %v4348_v61 = vpop.f32.mrf.mxu1 }
 0x466   : > { %v5596_v33 = vpop.f32.mrf.mxu1 }
 0x468   : > { %v4260_v35 = vpop.f32.mrf.mxu0  ;;  %v4351_v54 = vpop.f32.mrf.mxu1 }
 0x469   : > { %v4349_v19 = vadd.f32 %v4348_v61, %v4260_v35 }
 0x46a   : > { %v5576_v51 = vpop.f32.mrf.mxu0  ;;  %v5597_v18 = vpop.f32.mrf.mxu1 }
 0x46c   : > { %v4263_v14 = vpop.f32.mrf.mxu0 }
 0x46e   : > { %v5577_v43 = vpop.f32.mrf.mxu0 }
 0x484   : > { %v4561_v1 = vpop.f32.mrf.mxu1 }
 0x486   : > { %v5636_v7 = vpop.f32.mrf.mxu1 }
 0x488   : > { %v4454_v57 = vpop.f32.mrf.mxu0  ;;  %v4564_v37 = vpop.f32.mrf.mxu1 }
 0x489   : > { %v4460_v6 = vadd.f32 %v4454_v57, %v4349_v19 }
 0x48a   : > { %v5616_v59 = vpop.f32.mrf.mxu0  ;;  %v5637_v16 = vpop.f32.mrf.mxu1 }
 0x48b   : > { %v4567_v42 = vadd.f32 %v4561_v1, %v4460_v6 }
 0x48c   : > { %v4457_v9 = vpop.f32.mrf.mxu0 }
 0x48e   : > { %v5617_v47 = vpop.f32.mrf.mxu0 }
 0x4a8   : > { %v4668_v4 = vpop.f32.mrf.mxu0 }
 0x4a9   : > { %v4674_v12 = vadd.f32 %v4668_v4, %v4567_v42 }
 0x4aa   : > { %v5656_v48 = vpop.f32.mrf.mxu0 }
 0x4ab   : > { %v4682_v20 = vadd.f32 %v5472_v2, %v4674_v12 }
 0x4ac   : > { %v4671_v13 = vpop.f32.mrf.mxu0 }
 0x4ad   : > { %v4683_v50 = vmax.f32 %v4682_v20, 0.0 }
 0x4ae   : > { %v5657_v41 = vpop.f32.mrf.mxu0 }
 0x4af   : > { %v4684_v21 = vpack.c.bf16 %v4683_v50, %v4683_v50 }
 0x4b1   : > { %5675 = vmatmul.mubr.bf16.vlgmr.msra.gmra.mxu1 %v4684_v21 }
 0x571   : > { %v4790_v25 = vpop.f32.mrf.mxu1 }
 0x572   : > { %v4791_v17 = vadd.f32 %v5473_v22, %v4790_v25 }
 0x573   : > { %v5676_v29 = vpop.f32.mrf.mxu1 }
 0x574   : > { %v4796_v5 = vmax.f32 %v4791_v17, 0.0 }
 0x575   : > { %v4793_v58 = vpop.f32.mrf.mxu1 }
 0x576   : > { %v4797_v63 = vpack.c.bf16 %v4796_v5, %v4796_v5 }
 0x577   : > { %v5677_v62 = vpop.f32.mrf.mxu1 }
 0x578   : > { %5695 = vmatmul.mubr.bf16.vlgmr.msra.gmra.mxu0 %v4797_v63 }
 0x638   : > { %v4903_v0 = vpop.f32.mrf.mxu0 }
 0x639   : > { %v4904_v36 = vadd.f32 %v5482_v49, %v4903_v0 }
 0x63a   : > { %v5696_v53 = vpop.f32.mrf.mxu0 }
 0x63b   : > { %4909 = vst [vmem:[%s551_s30] sm:$0xff] %v4904_v36 }
 0x63c   : > { %v4906_v31 = vpop.f32.mrf.mxu0 }
 0x63d   : > { %6194 = shalt.err (!%p6191_p5)
}
 0x63e   : > { %s6195_s29 = scalar_lea.hbm %s9222_s22, 128  ;;  %s6199_s14 = scalar_lea.hbm %s9276_s11, 256 }
 0x63f   : > { %p6196_p7 = scmp.ne.s32.totalorder %s9222_s22, %s6195_s29  ;;  %p6200_p12 = scmp.lt.s32.totalorder %s9222_s22, %s9276_s11 }
 0x640   : > { %p6201_p13 = scmp.lt.s32.totalorder %s6199_s14, %s6195_s29 }
 0x641   : > { %p6197_p10 = pnand %p6196_p7, %p6345_p6 }
 0x642   : > { %p6202_p0 = por %p6201_p13, %p6200_p12 }
 0x643   : > { %p6198_p11 = pneg %p6197_p10 }
 0x645   : > { %p6203_p1 = pnand %p6202_p0, %p6198_p11 }
 0x647   : > { %6206 = shalt.err (!%p6203_p1)
}
 0x648   : > { %5698 = dma.vmem_to_hbm [thread:$0]  (%p6345_p6), %s9224_s15, 128, %s9222_s22, %s4911_s12   ;;  %v5697_v23 = vpop.f32.mrf.mxu0 }
 0x649 PF: > { %s4936_s25 = sand.u32 1, %s6229_s17   ;;  %p5701_p2 = pnand %p4991_p9, %p6349_p8 }
 0x64a   : > { %s4937_s0 = scalar_lea.sflag [#allocation4], %s4936_s25 }
 0x64b   : > { %p5702_p3 = pneg %p5701_p2 }
 0x64d   : > { %6224 = dma.done.wait (%p5702_p3), %s4937_s0, 128  }
 0x64e   : > { %6226 = vsyncadd (%p5702_p3), %s4937_s0, 4294967168  ;;  %p21_p4 = scmp.ge.s32.totalorder %s6330_s23, 4   ;;  %s9564_s17 = smov %s6233_s18 }
 0x64f   : > { %s9565_s18 = smov %s6237_s19  ;;  %s9566_s19 = smov %s6343_s26 }
 0x650   : > { %s9567_s20 = smov %s6330_s23  ;;  %23 = sbr.rel (!%p21_p4) target bundleno = 5 (0x5), region = 164 }
 0x655   :  { %4942 = vsyncpa [#allocation4], 1 }
 0x656   :  { %4944 = vsyncpa [#allocation4 + $0x1], 1 }

</bundles_post_ra>
